<compile_context>
chip_gen: v5e
topology: v5e:2x2
jax: 0.10.0
libtpu: 0.0.40
codegen_flags: <defaults>
</compile_context>

<pallas_src>
import functools

import jax
import jax.numpy as jnp
from jax.experimental import pallas as pl
from jax.experimental.pallas import tpu as pltpu  # noqa: F401  (kept for TPU-specific params if needed)


def _round_up(n, m):
    return -(-n // m) * m


# ----------------------------- Pallas kernels -----------------------------

def _conv_pool_relu_kernel(cols_ref, w_ref, b_ref, o_ref, *, bp):
    """cols_ref: (4*bp, K) im2col rows grouped as 4 pooling-quadrant chunks.
    w_ref: (K, Npad), b_ref: (1, Npad).  Computes conv GEMM + bias, then the 2x2
    max-pool as an elementwise max of the 4 row-chunks, then ReLU."""
    acc = jnp.dot(cols_ref[...], w_ref[...], preferred_element_type=jnp.float32)
    acc = acc + b_ref[...]
    q0 = acc[0 * bp:1 * bp]
    q1 = acc[1 * bp:2 * bp]
    q2 = acc[2 * bp:3 * bp]
    q3 = acc[3 * bp:4 * bp]
    pooled = jnp.maximum(jnp.maximum(q0, q1), jnp.maximum(q2, q3))
    o_ref[...] = jnp.maximum(pooled, 0.0)


def _mlp2_kernel(x_ref, w1_ref, b1_ref, w2_ref, b2_ref, o_ref, *,
                 do_log_softmax, n_valid):
    """Fused  Linear -> ReLU -> Linear  (optionally -> log_softmax over n_valid cols)."""
    h = jnp.dot(x_ref[...], w1_ref[...], preferred_element_type=jnp.float32) + b1_ref[...]
    h = jnp.maximum(h, 0.0)
    o = jnp.dot(h, w2_ref[...], preferred_element_type=jnp.float32) + b2_ref[...]
    if do_log_softmax:
        col = jax.lax.broadcasted_iota(jnp.int32, o.shape, 1)
        o = jnp.where(col < n_valid, o, jnp.float32(-1e30))   # mask padded classes
        m = jnp.max(o, axis=-1, keepdims=True)
        s = o - m
        lse = jnp.log(jnp.sum(jnp.exp(s), axis=-1, keepdims=True))
        o = s - lse
    o_ref[...] = o


# ----------------------------- kernel wrappers -----------------------------

def conv_pool_relu(x, w, b):
    """VALID stride-1 conv (torch weight layout (Cout,Cin,KH,KW)) followed by 2x2/stride-2
    max-pool and ReLU, all fused in one Pallas kernel.
    x: (B, H, W, Cin) NHWC f32  ->  (B, PH, PW, Cout) NHWC f32."""
    B, H, W, Cin = x.shape
    Cout, _, KH, KW = w.shape
    OH, OW = H - KH + 1, W - KW + 1
    PH, PW = OH // 2, OW // 2
    K = KH * KW * Cin
    n_pad = _round_up(Cout, 128)

    # im2col over all conv output positions; patch flatten order (kh, kw, cin).
    cols = jnp.stack(
        [x[:, i:i + OH, j:j + OW, :] for i in range(KH) for j in range(KW)], axis=3)
    cols = cols.reshape(B, OH, OW, K)

    # Group rows by pooling quadrant (dy, dx); identical (b, ph, pw) row order per chunk.
    bp = B * PH * PW
    bp_pad = _round_up(bp, 8)
    quads = []
    for dy in (0, 1):
        for dx in (0, 1):
            q = cols[:, dy:2 * PH:2, dx:2 * PW:2, :].reshape(bp, K)
            q = jnp.pad(q, ((0, bp_pad - bp), (0, 0)))
            quads.append(q)
    cols_q = jnp.concatenate(quads, axis=0).astype(jnp.float32)       # (4*bp_pad, K)

    w_mat = jnp.transpose(w, (2, 3, 1, 0)).reshape(K, Cout)
    w_pad = jnp.pad(w_mat, ((0, 0), (0, n_pad - Cout))).astype(jnp.float32)
    b_pad = jnp.pad(b, (0, n_pad - Cout)).reshape(1, n_pad).astype(jnp.float32)

    out = pl.pallas_call(
        functools.partial(_conv_pool_relu_kernel, bp=bp_pad),
        out_shape=jax.ShapeDtypeStruct((bp_pad, n_pad), jnp.float32),
        grid=(1,),
        in_specs=[
            pl.BlockSpec((4 * bp_pad, K), lambda i: (0, 0)),
            pl.BlockSpec((K, n_pad), lambda i: (0, 0)),
            pl.BlockSpec((1, n_pad), lambda i: (0, 0)),
        ],
        out_specs=pl.BlockSpec((bp_pad, n_pad), lambda i: (0, 0)),
    )(cols_q, w_pad, b_pad)

    return out[:bp, :Cout].reshape(B, PH, PW, Cout)


def mlp2(x, w1, b1, w2, b2, *, do_log_softmax=False, n_valid=0):
    """Fused Linear(+ReLU)+Linear(+optional log_softmax). Torch weight layout (out, in).
    All feature dims padded to multiples of 128 for lane-dense loads/stores."""
    B, din = x.shape
    h1 = w1.shape[0]
    h2 = w2.shape[0]
    k_pad = _round_up(din, 128)
    h_pad = _round_up(h1, 128)
    n_pad = _round_up(h2, 128)

    x_p = jnp.pad(x.astype(jnp.float32), ((0, 0), (0, k_pad - din)))
    w1_p = jnp.pad(w1.T.astype(jnp.float32), ((0, k_pad - din), (0, h_pad - h1)))
    b1_p = jnp.pad(b1.astype(jnp.float32), (0, h_pad - h1)).reshape(1, h_pad)
    w2_p = jnp.pad(w2.T.astype(jnp.float32), ((0, h_pad - h1), (0, n_pad - h2)))
    b2_p = jnp.pad(b2.astype(jnp.float32), (0, n_pad - h2)).reshape(1, n_pad)

    out = pl.pallas_call(
        functools.partial(_mlp2_kernel, do_log_softmax=do_log_softmax, n_valid=n_valid),
        out_shape=jax.ShapeDtypeStruct((B, n_pad), jnp.float32),
        grid=(1,),
        in_specs=[
            pl.BlockSpec((B, k_pad), lambda i: (0, 0)),
            pl.BlockSpec((k_pad, h_pad), lambda i: (0, 0)),
            pl.BlockSpec((1, h_pad), lambda i: (0, 0)),
            pl.BlockSpec((h_pad, n_pad), lambda i: (0, 0)),
            pl.BlockSpec((1, n_pad), lambda i: (0, 0)),
        ],
        out_specs=pl.BlockSpec((B, n_pad), lambda i: (0, 0)),
    )(x_p, w1_p, b1_p, w2_p, b2_p)

    return out[:, :h2]


# ----------------------------- JAX glue: affine_grid + grid_sample -----------------------------

def affine_grid_sample(x_img, theta):
    """F.affine_grid + F.grid_sample (bilinear, zeros padding, align_corners=False) for a
    single-channel image, via a 4-tap gather.  x_img: (B, H, W), theta: (B, 2, 3).
    # TODO(synk): the data-dependent bilinear gather stays in XLA (jnp.take_along_axis);
    #             there is no clean/portable Pallas TPU gather for per-pixel indices."""
    B, H, W = x_img.shape
    xs = (2.0 * jnp.arange(W, dtype=jnp.float32) + 1.0) / W - 1.0
    ys = (2.0 * jnp.arange(H, dtype=jnp.float32) + 1.0) / H - 1.0
    base = jnp.stack([
        jnp.broadcast_to(xs[None, :], (H, W)),
        jnp.broadcast_to(ys[:, None], (H, W)),
        jnp.ones((H, W), jnp.float32),
    ], axis=-1)                                            # (H, W, 3)
    g = jnp.einsum('hwk,bjk->bhwj', base, theta)           # (B, H, W, 2) -> (x, y)
    ix = ((g[..., 0] + 1.0) * W - 1.0) / 2.0
    iy = ((g[..., 1] + 1.0) * H - 1.0) / 2.0
    ix0 = jnp.floor(ix)
    iy0 = jnp.floor(iy)
    ix1 = ix0 + 1.0
    iy1 = iy0 + 1.0
    wx1 = ix - ix0
    wx0 = 1.0 - wx1
    wy1 = iy - iy0
    wy0 = 1.0 - wy1

    x_flat = x_img.reshape(B, H * W).astype(jnp.float32)

    def tap(xi, yi, w):
        valid = (xi >= 0) & (xi <= W - 1) & (yi >= 0) & (yi <= H - 1)
        idx = (jnp.clip(yi, 0, H - 1) * W + jnp.clip(xi, 0, W - 1)).astype(jnp.int32)
        vals = jnp.take_along_axis(x_flat, idx.reshape(B, H * W), axis=1).reshape(B, H, W)
        return jnp.where(valid, w, 0.0) * vals

    out = (tap(ix0, iy0, wx0 * wy0) + tap(ix1, iy0, wx1 * wy0) +
           tap(ix0, iy1, wx0 * wy1) + tap(ix1, iy1, wx1 * wy1))
    return out                                             # (B, H, W)


# ----------------------------- parameters -----------------------------

def _uniform(key, shape, bound):
    return jax.random.uniform(key, shape, jnp.float32, -bound, bound)


def init_params(key):
    keys = jax.random.split(key, 14)
    p = {}

    def conv_init(kw, kb, cout, cin, k):
        bound = 1.0 / float(jnp.sqrt(cin * k * k))
        return _uniform(kw, (cout, cin, k, k), bound), _uniform(kb, (cout,), bound)

    def lin_init(kw, kb, out_f, in_f):
        bound = 1.0 / float(jnp.sqrt(in_f))
        return _uniform(kw, (out_f, in_f), bound), _uniform(kb, (out_f,), bound)

    p['conv1_w'], p['conv1_b'] = conv_init(keys[0], keys[1], 10, 1, 5)
    p['conv2_w'], p['conv2_b'] = conv_init(keys[2], keys[3], 20, 10, 5)
    p['fc1_w'], p['fc1_b'] = lin_init(keys[4], keys[5], 50, 320)
    p['fc2_w'], p['fc2_b'] = lin_init(keys[6], keys[7], 10, 50)
    p['loc_conv1_w'], p['loc_conv1_b'] = conv_init(keys[8], keys[9], 8, 1, 7)
    p['loc_conv2_w'], p['loc_conv2_b'] = conv_init(keys[10], keys[11], 10, 8, 5)
    p['fc_loc1_w'], p['fc_loc1_b'] = lin_init(keys[12], keys[13], 32, 90)
    # fc_loc[2]: zero weight, identity-transform bias (exactly as in the PyTorch __init__)
    p['fc_loc2_w'] = jnp.zeros((6, 32), jnp.float32)
    p['fc_loc2_b'] = jnp.array([1, 0, 0, 0, 1, 0], jnp.float32)
    return p


# ----------------------------- forward -----------------------------

def net_forward(params, x_nchw):
    B, C, H, W = x_nchw.shape                   # expects (B, 1, 28, 28)
    x_nhwc = jnp.transpose(x_nchw, (0, 2, 3, 1)).astype(jnp.float32)

    # ---- stn: localization network (fused conv+pool+relu kernels) ----
    l1 = conv_pool_relu(x_nhwc, params['loc_conv1_w'], params['loc_conv1_b'])  # (B,11,11,8)
    l2 = conv_pool_relu(l1, params['loc_conv2_w'], params['loc_conv2_b'])      # (B,3,3,10)
    xs = jnp.transpose(l2, (0, 3, 1, 2)).reshape(B, 10 * 3 * 3)                # torch .view order
    theta = mlp2(xs, params['fc_loc1_w'], params['fc_loc1_b'],
                 params['fc_loc2_w'], params['fc_loc2_b'])                     # (B, 6)
    theta = theta.reshape(B, 2, 3)

    # ---- affine_grid + grid_sample (4-tap bilinear gather, zeros, align_corners=False) ----
    xw = affine_grid_sample(x_nchw[:, 0].astype(jnp.float32), theta)           # (B, 28, 28)
    xw = xw[..., None]                                                         # NHWC

    # ---- main classifier ----
    p1 = conv_pool_relu(xw, params['conv1_w'], params['conv1_b'])              # (B,12,12,10)
    # TODO(synk): Dropout2d / F.dropout are identity here (eval-mode semantics); training-mode
    #             stochastic masking is not implemented.
    p2 = conv_pool_relu(p1, params['conv2_w'], params['conv2_b'])              # (B,4,4,20)
    feat = jnp.transpose(p2, (0, 3, 1, 2)).reshape(B, 320)                     # torch .view(-1, 320)
    out = mlp2(feat, params['fc1_w'], params['fc1_b'],
               params['fc2_w'], params['fc2_b'],
               do_log_softmax=True, n_valid=10)                                # (B, 10) log-probs
    return out


if __name__ == "__main__":
    key = jax.random.PRNGKey(0)
    pkey, xkey = jax.random.split(key)
    params = init_params(pkey)
    x = jax.random.normal(xkey, (2, 1, 28, 28), jnp.float32)

    out = jax.jit(net_forward)(params, x)
    out = jax.block_until_ready(out)

    assert out.shape == (2, 10)
    assert bool(jnp.all(jnp.isfinite(out)))
    # log_softmax rows must (log-)sum to ~1
    assert bool(jnp.allclose(jnp.sum(jnp.exp(out), axis=1), 1.0, atol=1e-4))
    print("KERNEL_OK")
</pallas_src>

<mosaic_0001>
module attributes {stable_mosaic.version = 11 : i64} {
  func.func @_conv_pool_relu_kernel(%arg0: i32, %arg1: memref<992x49xf32, #tpu.memory_space<vmem>>, %arg2: memref<49x128xf32, #tpu.memory_space<vmem>>, %arg3: memref<1x128xf32, #tpu.memory_space<vmem>>, %arg4: memref<248x128xf32, #tpu.memory_space<vmem>>) attributes {dimension_semantics = [#tpu.dimension_semantics<arbitrary>], iteration_bounds = array<i64: 1>, scalar_prefetch = 0 : i64, scratch_operands = 0 : i64, tpu.core_type = #tpu.core_type<tc>, window_params = [{pipeline_mode = #tpu.pipeline_mode<synchronous>, transform_indices = @transform_0, window_bounds = array<i64: 992, 49>}, {pipeline_mode = #tpu.pipeline_mode<synchronous>, transform_indices = @transform_1, window_bounds = array<i64: 49, 128>}, {pipeline_mode = #tpu.pipeline_mode<synchronous>, transform_indices = @transform_2, window_bounds = array<i64: 1, 128>}, {pipeline_mode = #tpu.pipeline_mode<synchronous>, transform_indices = @transform_3, window_bounds = array<i64: 248, 128>}]} {
    %c0 = arith.constant 0 : index
    %c0_0 = arith.constant 0 : index
    %0 = vector.load %arg1[%c0, %c0_0] : memref<992x49xf32, #tpu.memory_space<vmem>>, vector<992x49xf32>
    %c0_1 = arith.constant 0 : index
    %c0_2 = arith.constant 0 : index
    %1 = vector.load %arg2[%c0_1, %c0_2] : memref<49x128xf32, #tpu.memory_space<vmem>>, vector<49x128xf32>
    %cst = arith.constant dense<0.000000e+00> : vector<992x128xf32>
    %2 = tpu.matmul %0, %1, %cst {dimension_numbers = #tpu.dot_dimension_numbers<[1], [0], [0], [1], [0, 0, 1, 1], [], []>} : vector<992x49xf32>, vector<49x128xf32>, vector<992x128xf32> -> vector<992x128xf32>
    %c0_3 = arith.constant 0 : index
    %c0_4 = arith.constant 0 : index
    %3 = vector.load %arg3[%c0_3, %c0_4] : memref<1x128xf32, #tpu.memory_space<vmem>>, vector<1x128xf32>
    %4 = vector.broadcast %3 : vector<1x128xf32> to vector<992x128xf32>
    %5 = arith.addf %2, %4 : vector<992x128xf32>
    %6 = vector.extract_strided_slice %5 {offsets = [0, 0], sizes = [248, 128], strides = [1, 1]} : vector<992x128xf32> to vector<248x128xf32>
    %7 = vector.extract_strided_slice %5 {offsets = [248, 0], sizes = [248, 128], strides = [1, 1]} : vector<992x128xf32> to vector<248x128xf32>
    %8 = vector.extract_strided_slice %5 {offsets = [496, 0], sizes = [248, 128], strides = [1, 1]} : vector<992x128xf32> to vector<248x128xf32>
    %9 = vector.extract_strided_slice %5 {offsets = [744, 0], sizes = [248, 128], strides = [1, 1]} : vector<992x128xf32> to vector<248x128xf32>
    %10 = arith.maximumf %6, %7 : vector<248x128xf32>
    %11 = arith.maximumf %8, %9 : vector<248x128xf32>
    %12 = arith.maximumf %10, %11 : vector<248x128xf32>
    %cst_5 = arith.constant 0.000000e+00 : f32
    %13 = vector.broadcast %cst_5 : f32 to vector<248x128xf32>
    %14 = arith.maximumf %12, %13 : vector<248x128xf32>
    %c0_6 = arith.constant 0 : index
    %c0_7 = arith.constant 0 : index
    %15 = vector.load %arg4[%c0_6, %c0_7] : memref<248x128xf32, #tpu.memory_space<vmem>>, vector<248x128xf32>
    tpu.vector_store %arg4[%c0_6, %c0_7], %14 {strides = array<i32>} : memref<248x128xf32, #tpu.memory_space<vmem>>, vector<248x128xf32>,
    return
  }
  func.func @transform_0(%arg0: i32) -> (i32, i32) {
    %c0_i32 = arith.constant 0 : i32
    %c0_i32_0 = arith.constant 0 : i32
    %c0_i32_1 = arith.constant 0 : i32
    return %c0_i32, %c0_i32_0 : i32, i32
  }
  func.func @transform_1(%arg0: i32) -> (i32, i32) {
    %c0_i32 = arith.constant 0 : i32
    %c0_i32_0 = arith.constant 0 : i32
    %c0_i32_1 = arith.constant 0 : i32
    return %c0_i32, %c0_i32_0 : i32, i32
  }
  func.func @transform_2(%arg0: i32) -> (i32, i32) {
    %c0_i32 = arith.constant 0 : i32
    %c0_i32_0 = arith.constant 0 : i32
    %c0_i32_1 = arith.constant 0 : i32
    return %c0_i32, %c0_i32_0 : i32, i32
  }
  func.func @transform_3(%arg0: i32) -> (i32, i32) {
    %c0_i32 = arith.constant 0 : i32
    %c0_i32_0 = arith.constant 0 : i32
    %c0_i32_1 = arith.constant 0 : i32
    return %c0_i32, %c0_i32_0 : i32, i32
  }
}

module attributes {stable_mosaic.version = 11 : i64} {
  func.func @_conv_pool_relu_kernel(%arg0: i32, %arg1: memref<96x200xf32, #tpu.memory_space<vmem>>, %arg2: memref<200x128xf32, #tpu.memory_space<vmem>>, %arg3: memref<1x128xf32, #tpu.memory_space<vmem>>, %arg4: memref<24x128xf32, #tpu.memory_space<vmem>>) attributes {dimension_semantics = [#tpu.dimension_semantics<arbitrary>], iteration_bounds = array<i64: 1>, scalar_prefetch = 0 : i64, scratch_operands = 0 : i64, tpu.core_type = #tpu.core_type<tc>, window_params = [{pipeline_mode = #tpu.pipeline_mode<synchronous>, transform_indices = @transform_0, window_bounds = array<i64: 96, 200>}, {pipeline_mode = #tpu.pipeline_mode<synchronous>, transform_indices = @transform_1, window_bounds = array<i64: 200, 128>}, {pipeline_mode = #tpu.pipeline_mode<synchronous>, transform_indices = @transform_2, window_bounds = array<i64: 1, 128>}, {pipeline_mode = #tpu.pipeline_mode<synchronous>, transform_indices = @transform_3, window_bounds = array<i64: 24, 128>}]} {
    %c0 = arith.constant 0 : index
    %c0_0 = arith.constant 0 : index
    %0 = vector.load %arg1[%c0, %c0_0] : memref<96x200xf32, #tpu.memory_space<vmem>>, vector<96x200xf32>
    %c0_1 = arith.constant 0 : index
    %c0_2 = arith.constant 0 : index
    %1 = vector.load %arg2[%c0_1, %c0_2] : memref<200x128xf32, #tpu.memory_space<vmem>>, vector<200x128xf32>
    %cst = arith.constant dense<0.000000e+00> : vector<96x128xf32>
    %2 = tpu.matmul %0, %1, %cst {dimension_numbers = #tpu.dot_dimension_numbers<[1], [0], [0], [1], [0, 0, 1, 1], [], []>} : vector<96x200xf32>, vector<200x128xf32>, vector<96x128xf32> -> vector<96x128xf32>
    %c0_3 = arith.constant 0 : index
    %c0_4 = arith.constant 0 : index
    %3 = vector.load %arg3[%c0_3, %c0_4] : memref<1x128xf32, #tpu.memory_space<vmem>>, vector<1x128xf32>
    %4 = vector.broadcast %3 : vector<1x128xf32> to vector<96x128xf32>
    %5 = arith.addf %2, %4 : vector<96x128xf32>
    %6 = vector.extract_strided_slice %5 {offsets = [0, 0], sizes = [24, 128], strides = [1, 1]} : vector<96x128xf32> to vector<24x128xf32>
    %7 = vector.extract_strided_slice %5 {offsets = [24, 0], sizes = [24, 128], strides = [1, 1]} : vector<96x128xf32> to vector<24x128xf32>
    %8 = vector.extract_strided_slice %5 {offsets = [48, 0], sizes = [24, 128], strides = [1, 1]} : vector<96x128xf32> to vector<24x128xf32>
    %9 = vector.extract_strided_slice %5 {offsets = [72, 0], sizes = [24, 128], strides = [1, 1]} : vector<96x128xf32> to vector<24x128xf32>
    %10 = arith.maximumf %6, %7 : vector<24x128xf32>
    %11 = arith.maximumf %8, %9 : vector<24x128xf32>
    %12 = arith.maximumf %10, %11 : vector<24x128xf32>
    %cst_5 = arith.constant 0.000000e+00 : f32
    %13 = vector.broadcast %cst_5 : f32 to vector<24x128xf32>
    %14 = arith.maximumf %12, %13 : vector<24x128xf32>
    %c0_6 = arith.constant 0 : index
    %c0_7 = arith.constant 0 : index
    %15 = vector.load %arg4[%c0_6, %c0_7] : memref<24x128xf32, #tpu.memory_space<vmem>>, vector<24x128xf32>
    tpu.vector_store %arg4[%c0_6, %c0_7], %14 {strides = array<i32>} : memref<24x128xf32, #tpu.memory_space<vmem>>, vector<24x128xf32>,
    return
  }
  func.func @transform_0(%arg0: i32) -> (i32, i32) {
    %c0_i32 = arith.constant 0 : i32
    %c0_i32_0 = arith.constant 0 : i32
    %c0_i32_1 = arith.constant 0 : i32
    return %c0_i32, %c0_i32_0 : i32, i32
  }
  func.func @transform_1(%arg0: i32) -> (i32, i32) {
    %c0_i32 = arith.constant 0 : i32
    %c0_i32_0 = arith.constant 0 : i32
    %c0_i32_1 = arith.constant 0 : i32
    return %c0_i32, %c0_i32_0 : i32, i32
  }
  func.func @transform_2(%arg0: i32) -> (i32, i32) {
    %c0_i32 = arith.constant 0 : i32
    %c0_i32_0 = arith.constant 0 : i32
    %c0_i32_1 = arith.constant 0 : i32
    return %c0_i32, %c0_i32_0 : i32, i32
  }
  func.func @transform_3(%arg0: i32) -> (i32, i32) {
    %c0_i32 = arith.constant 0 : i32
    %c0_i32_0 = arith.constant 0 : i32
    %c0_i32_1 = arith.constant 0 : i32
    return %c0_i32, %c0_i32_0 : i32, i32
  }
}

module attributes {stable_mosaic.version = 11 : i64} {
  func.func @_mlp2_kernel(%arg0: i32, %arg1: memref<2x128xf32, #tpu.memory_space<vmem>>, %arg2: memref<128x128xf32, #tpu.memory_space<vmem>>, %arg3: memref<1x128xf32, #tpu.memory_space<vmem>>, %arg4: memref<128x128xf32, #tpu.memory_space<vmem>>, %arg5: memref<1x128xf32, #tpu.memory_space<vmem>>, %arg6: memref<2x128xf32, #tpu.memory_space<vmem>>) attributes {dimension_semantics = [#tpu.dimension_semantics<arbitrary>], iteration_bounds = array<i64: 1>, scalar_prefetch = 0 : i64, scratch_operands = 0 : i64, tpu.core_type = #tpu.core_type<tc>, window_params = [{pipeline_mode = #tpu.pipeline_mode<synchronous>, transform_indices = @transform_0, window_bounds = array<i64: 2, 128>}, {pipeline_mode = #tpu.pipeline_mode<synchronous>, transform_indices = @transform_1, window_bounds = array<i64: 128, 128>}, {pipeline_mode = #tpu.pipeline_mode<synchronous>, transform_indices = @transform_2, window_bounds = array<i64: 1, 128>}, {pipeline_mode = #tpu.pipeline_mode<synchronous>, transform_indices = @transform_3, window_bounds = array<i64: 128, 128>}, {pipeline_mode = #tpu.pipeline_mode<synchronous>, transform_indices = @transform_4, window_bounds = array<i64: 1, 128>}, {pipeline_mode = #tpu.pipeline_mode<synchronous>, transform_indices = @transform_5, window_bounds = array<i64: 2, 128>}]} {
    %c0 = arith.constant 0 : index
    %c0_0 = arith.constant 0 : index
    %0 = vector.load %arg1[%c0, %c0_0] : memref<2x128xf32, #tpu.memory_space<vmem>>, vector<2x128xf32>
    %c0_1 = arith.constant 0 : index
    %c0_2 = arith.constant 0 : index
    %1 = vector.load %arg2[%c0_1, %c0_2] : memref<128x128xf32, #tpu.memory_space<vmem>>, vector<128x128xf32>
    %cst = arith.constant dense<0.000000e+00> : vector<2x128xf32>
    %2 = tpu.matmul %0, %1, %cst {dimension_numbers = #tpu.dot_dimension_numbers<[1], [0], [0], [1], [0, 0, 1, 1], [], []>} : vector<2x128xf32>, vector<128x128xf32>, vector<2x128xf32> -> vector<2x128xf32>
    %c0_3 = arith.constant 0 : index
    %c0_4 = arith.constant 0 : index
    %3 = vector.load %arg3[%c0_3, %c0_4] : memref<1x128xf32, #tpu.memory_space<vmem>>, vector<1x128xf32>
    %4 = vector.broadcast %3 : vector<1x128xf32> to vector<2x128xf32>
    %5 = arith.addf %2, %4 : vector<2x128xf32>
    %cst_5 = arith.constant 0.000000e+00 : f32
    %6 = vector.broadcast %cst_5 : f32 to vector<2x128xf32>
    %7 = arith.maximumf %5, %6 : vector<2x128xf32>
    %c0_6 = arith.constant 0 : index
    %c0_7 = arith.constant 0 : index
    %8 = vector.load %arg4[%c0_6, %c0_7] : memref<128x128xf32, #tpu.memory_space<vmem>>, vector<128x128xf32>
    %cst_8 = arith.constant dense<0.000000e+00> : vector<2x128xf32>
    %9 = tpu.matmul %7, %8, %cst_8 {dimension_numbers = #tpu.dot_dimension_numbers<[1], [0], [0], [1], [0, 0, 1, 1], [], []>} : vector<2x128xf32>, vector<128x128xf32>, vector<2x128xf32> -> vector<2x128xf32>
    %c0_9 = arith.constant 0 : index
    %c0_10 = arith.constant 0 : index
    %10 = vector.load %arg5[%c0_9, %c0_10] : memref<1x128xf32, #tpu.memory_space<vmem>>, vector<1x128xf32>
    %11 = vector.broadcast %10 : vector<1x128xf32> to vector<2x128xf32>
    %12 = arith.addf %9, %11 : vector<2x128xf32>
    %c0_11 = arith.constant 0 : index
    %c0_12 = arith.constant 0 : index
    %13 = vector.load %arg6[%c0_11, %c0_12] : memref<2x128xf32, #tpu.memory_space<vmem>>, vector<2x128xf32>
    tpu.vector_store %arg6[%c0_11, %c0_12], %12 {strides = array<i32>} : memref<2x128xf32, #tpu.memory_space<vmem>>, vector<2x128xf32>,
    return
  }
  func.func @transform_0(%arg0: i32) -> (i32, i32) {
    %c0_i32 = arith.constant 0 : i32
    %c0_i32_0 = arith.constant 0 : i32
    %c0_i32_1 = arith.constant 0 : i32
    return %c0_i32, %c0_i32_0 : i32, i32
  }
  func.func @transform_1(%arg0: i32) -> (i32, i32) {
    %c0_i32 = arith.constant 0 : i32
    %c0_i32_0 = arith.constant 0 : i32
    %c0_i32_1 = arith.constant 0 : i32
    return %c0_i32, %c0_i32_0 : i32, i32
  }
  func.func @transform_2(%arg0: i32) -> (i32, i32) {
    %c0_i32 = arith.constant 0 : i32
    %c0_i32_0 = arith.constant 0 : i32
    %c0_i32_1 = arith.constant 0 : i32
    return %c0_i32, %c0_i32_0 : i32, i32
  }
  func.func @transform_3(%arg0: i32) -> (i32, i32) {
    %c0_i32 = arith.constant 0 : i32
    %c0_i32_0 = arith.constant 0 : i32
    %c0_i32_1 = arith.constant 0 : i32
    return %c0_i32, %c0_i32_0 : i32, i32
  }
  func.func @transform_4(%arg0: i32) -> (i32, i32) {
    %c0_i32 = arith.constant 0 : i32
    %c0_i32_0 = arith.constant 0 : i32
    %c0_i32_1 = arith.constant 0 : i32
    return %c0_i32, %c0_i32_0 : i32, i32
  }
  func.func @transform_5(%arg0: i32) -> (i32, i32) {
    %c0_i32 = arith.constant 0 : i32
    %c0_i32_0 = arith.constant 0 : i32
    %c0_i32_1 = arith.constant 0 : i32
    return %c0_i32, %c0_i32_0 : i32, i32
  }
}

module attributes {stable_mosaic.version = 11 : i64} {
  func.func @_conv_pool_relu_kernel(%arg0: i32, %arg1: memref<1152x25xf32, #tpu.memory_space<vmem>>, %arg2: memref<25x128xf32, #tpu.memory_space<vmem>>, %arg3: memref<1x128xf32, #tpu.memory_space<vmem>>, %arg4: memref<288x128xf32, #tpu.memory_space<vmem>>) attributes {dimension_semantics = [#tpu.dimension_semantics<arbitrary>], iteration_bounds = array<i64: 1>, scalar_prefetch = 0 : i64, scratch_operands = 0 : i64, tpu.core_type = #tpu.core_type<tc>, window_params = [{pipeline_mode = #tpu.pipeline_mode<synchronous>, transform_indices = @transform_0, window_bounds = array<i64: 1152, 25>}, {pipeline_mode = #tpu.pipeline_mode<synchronous>, transform_indices = @transform_1, window_bounds = array<i64: 25, 128>}, {pipeline_mode = #tpu.pipeline_mode<synchronous>, transform_indices = @transform_2, window_bounds = array<i64: 1, 128>}, {pipeline_mode = #tpu.pipeline_mode<synchronous>, transform_indices = @transform_3, window_bounds = array<i64: 288, 128>}]} {
    %c0 = arith.constant 0 : index
    %c0_0 = arith.constant 0 : index
    %0 = vector.load %arg1[%c0, %c0_0] : memref<1152x25xf32, #tpu.memory_space<vmem>>, vector<1152x25xf32>
    %c0_1 = arith.constant 0 : index
    %c0_2 = arith.constant 0 : index
    %1 = vector.load %arg2[%c0_1, %c0_2] : memref<25x128xf32, #tpu.memory_space<vmem>>, vector<25x128xf32>
    %cst = arith.constant dense<0.000000e+00> : vector<1152x128xf32>
    %2 = tpu.matmul %0, %1, %cst {dimension_numbers = #tpu.dot_dimension_numbers<[1], [0], [0], [1], [0, 0, 1, 1], [], []>} : vector<1152x25xf32>, vector<25x128xf32>, vector<1152x128xf32> -> vector<1152x128xf32>
    %c0_3 = arith.constant 0 : index
    %c0_4 = arith.constant 0 : index
    %3 = vector.load %arg3[%c0_3, %c0_4] : memref<1x128xf32, #tpu.memory_space<vmem>>, vector<1x128xf32>
    %4 = vector.broadcast %3 : vector<1x128xf32> to vector<1152x128xf32>
    %5 = arith.addf %2, %4 : vector<1152x128xf32>
    %6 = vector.extract_strided_slice %5 {offsets = [0, 0], sizes = [288, 128], strides = [1, 1]} : vector<1152x128xf32> to vector<288x128xf32>
    %7 = vector.extract_strided_slice %5 {offsets = [288, 0], sizes = [288, 128], strides = [1, 1]} : vector<1152x128xf32> to vector<288x128xf32>
    %8 = vector.extract_strided_slice %5 {offsets = [576, 0], sizes = [288, 128], strides = [1, 1]} : vector<1152x128xf32> to vector<288x128xf32>
    %9 = vector.extract_strided_slice %5 {offsets = [864, 0], sizes = [288, 128], strides = [1, 1]} : vector<1152x128xf32> to vector<288x128xf32>
    %10 = arith.maximumf %6, %7 : vector<288x128xf32>
    %11 = arith.maximumf %8, %9 : vector<288x128xf32>
    %12 = arith.maximumf %10, %11 : vector<288x128xf32>
    %cst_5 = arith.constant 0.000000e+00 : f32
    %13 = vector.broadcast %cst_5 : f32 to vector<288x128xf32>
    %14 = arith.maximumf %12, %13 : vector<288x128xf32>
    %c0_6 = arith.constant 0 : index
    %c0_7 = arith.constant 0 : index
    %15 = vector.load %arg4[%c0_6, %c0_7] : memref<288x128xf32, #tpu.memory_space<vmem>>, vector<288x128xf32>
    tpu.vector_store %arg4[%c0_6, %c0_7], %14 {strides = array<i32>} : memref<288x128xf32, #tpu.memory_space<vmem>>, vector<288x128xf32>,
    return
  }
  func.func @transform_0(%arg0: i32) -> (i32, i32) {
    %c0_i32 = arith.constant 0 : i32
    %c0_i32_0 = arith.constant 0 : i32
    %c0_i32_1 = arith.constant 0 : i32
    return %c0_i32, %c0_i32_0 : i32, i32
  }
  func.func @transform_1(%arg0: i32) -> (i32, i32) {
    %c0_i32 = arith.constant 0 : i32
    %c0_i32_0 = arith.constant 0 : i32
    %c0_i32_1 = arith.constant 0 : i32
    return %c0_i32, %c0_i32_0 : i32, i32
  }
  func.func @transform_2(%arg0: i32) -> (i32, i32) {
    %c0_i32 = arith.constant 0 : i32
    %c0_i32_0 = arith.constant 0 : i32
    %c0_i32_1 = arith.constant 0 : i32
    return %c0_i32, %c0_i32_0 : i32, i32
  }
  func.func @transform_3(%arg0: i32) -> (i32, i32) {
    %c0_i32 = arith.constant 0 : i32
    %c0_i32_0 = arith.constant 0 : i32
    %c0_i32_1 = arith.constant 0 : i32
    return %c0_i32, %c0_i32_0 : i32, i32
  }
}

module attributes {stable_mosaic.version = 11 : i64} {
  func.func @_conv_pool_relu_kernel(%arg0: i32, %arg1: memref<128x250xf32, #tpu.memory_space<vmem>>, %arg2: memref<250x128xf32, #tpu.memory_space<vmem>>, %arg3: memref<1x128xf32, #tpu.memory_space<vmem>>, %arg4: memref<32x128xf32, #tpu.memory_space<vmem>>) attributes {dimension_semantics = [#tpu.dimension_semantics<arbitrary>], iteration_bounds = array<i64: 1>, scalar_prefetch = 0 : i64, scratch_operands = 0 : i64, tpu.core_type = #tpu.core_type<tc>, window_params = [{pipeline_mode = #tpu.pipeline_mode<synchronous>, transform_indices = @transform_0, window_bounds = array<i64: 128, 250>}, {pipeline_mode = #tpu.pipeline_mode<synchronous>, transform_indices = @transform_1, window_bounds = array<i64: 250, 128>}, {pipeline_mode = #tpu.pipeline_mode<synchronous>, transform_indices = @transform_2, window_bounds = array<i64: 1, 128>}, {pipeline_mode = #tpu.pipeline_mode<synchronous>, transform_indices = @transform_3, window_bounds = array<i64: 32, 128>}]} {
    %c0 = arith.constant 0 : index
    %c0_0 = arith.constant 0 : index
    %0 = vector.load %arg1[%c0, %c0_0] : memref<128x250xf32, #tpu.memory_space<vmem>>, vector<128x250xf32>
    %c0_1 = arith.constant 0 : index
    %c0_2 = arith.constant 0 : index
    %1 = vector.load %arg2[%c0_1, %c0_2] : memref<250x128xf32, #tpu.memory_space<vmem>>, vector<250x128xf32>
    %cst = arith.constant dense<0.000000e+00> : vector<128x128xf32>
    %2 = tpu.matmul %0, %1, %cst {dimension_numbers = #tpu.dot_dimension_numbers<[1], [0], [0], [1], [0, 0, 1, 1], [], []>} : vector<128x250xf32>, vector<250x128xf32>, vector<128x128xf32> -> vector<128x128xf32>
    %c0_3 = arith.constant 0 : index
    %c0_4 = arith.constant 0 : index
    %3 = vector.load %arg3[%c0_3, %c0_4] : memref<1x128xf32, #tpu.memory_space<vmem>>, vector<1x128xf32>
    %4 = vector.broadcast %3 : vector<1x128xf32> to vector<128x128xf32>
    %5 = arith.addf %2, %4 : vector<128x128xf32>
    %6 = vector.extract_strided_slice %5 {offsets = [0, 0], sizes = [32, 128], strides = [1, 1]} : vector<128x128xf32> to vector<32x128xf32>
    %7 = vector.extract_strided_slice %5 {offsets = [32, 0], sizes = [32, 128], strides = [1, 1]} : vector<128x128xf32> to vector<32x128xf32>
    %8 = vector.extract_strided_slice %5 {offsets = [64, 0], sizes = [32, 128], strides = [1, 1]} : vector<128x128xf32> to vector<32x128xf32>
    %9 = vector.extract_strided_slice %5 {offsets = [96, 0], sizes = [32, 128], strides = [1, 1]} : vector<128x128xf32> to vector<32x128xf32>
    %10 = arith.maximumf %6, %7 : vector<32x128xf32>
    %11 = arith.maximumf %8, %9 : vector<32x128xf32>
    %12 = arith.maximumf %10, %11 : vector<32x128xf32>
    %cst_5 = arith.constant 0.000000e+00 : f32
    %13 = vector.broadcast %cst_5 : f32 to vector<32x128xf32>
    %14 = arith.maximumf %12, %13 : vector<32x128xf32>
    %c0_6 = arith.constant 0 : index
    %c0_7 = arith.constant 0 : index
    %15 = vector.load %arg4[%c0_6, %c0_7] : memref<32x128xf32, #tpu.memory_space<vmem>>, vector<32x128xf32>
    tpu.vector_store %arg4[%c0_6, %c0_7], %14 {strides = array<i32>} : memref<32x128xf32, #tpu.memory_space<vmem>>, vector<32x128xf32>,
    return
  }
  func.func @transform_0(%arg0: i32) -> (i32, i32) {
    %c0_i32 = arith.constant 0 : i32
    %c0_i32_0 = arith.constant 0 : i32
    %c0_i32_1 = arith.constant 0 : i32
    return %c0_i32, %c0_i32_0 : i32, i32
  }
  func.func @transform_1(%arg0: i32) -> (i32, i32) {
    %c0_i32 = arith.constant 0 : i32
    %c0_i32_0 = arith.constant 0 : i32
    %c0_i32_1 = arith.constant 0 : i32
    return %c0_i32, %c0_i32_0 : i32, i32
  }
  func.func @transform_2(%arg0: i32) -> (i32, i32) {
    %c0_i32 = arith.constant 0 : i32
    %c0_i32_0 = arith.constant 0 : i32
    %c0_i32_1 = arith.constant 0 : i32
    return %c0_i32, %c0_i32_0 : i32, i32
  }
  func.func @transform_3(%arg0: i32) -> (i32, i32) {
    %c0_i32 = arith.constant 0 : i32
    %c0_i32_0 = arith.constant 0 : i32
    %c0_i32_1 = arith.constant 0 : i32
    return %c0_i32, %c0_i32_0 : i32, i32
  }
}

module attributes {stable_mosaic.version = 11 : i64} {
  func.func @_mlp2_kernel(%arg0: i32, %arg1: memref<2x384xf32, #tpu.memory_space<vmem>>, %arg2: memref<384x128xf32, #tpu.memory_space<vmem>>, %arg3: memref<1x128xf32, #tpu.memory_space<vmem>>, %arg4: memref<128x128xf32, #tpu.memory_space<vmem>>, %arg5: memref<1x128xf32, #tpu.memory_space<vmem>>, %arg6: memref<2x128xf32, #tpu.memory_space<vmem>>) attributes {dimension_semantics = [#tpu.dimension_semantics<arbitrary>], iteration_bounds = array<i64: 1>, scalar_prefetch = 0 : i64, scratch_operands = 0 : i64, tpu.core_type = #tpu.core_type<tc>, window_params = [{pipeline_mode = #tpu.pipeline_mode<synchronous>, transform_indices = @transform_0, window_bounds = array<i64: 2, 384>}, {pipeline_mode = #tpu.pipeline_mode<synchronous>, transform_indices = @transform_1, window_bounds = array<i64: 384, 128>}, {pipeline_mode = #tpu.pipeline_mode<synchronous>, transform_indices = @transform_2, window_bounds = array<i64: 1, 128>}, {pipeline_mode = #tpu.pipeline_mode<synchronous>, transform_indices = @transform_3, window_bounds = array<i64: 128, 128>}, {pipeline_mode = #tpu.pipeline_mode<synchronous>, transform_indices = @transform_4, window_bounds = array<i64: 1, 128>}, {pipeline_mode = #tpu.pipeline_mode<synchronous>, transform_indices = @transform_5, window_bounds = array<i64: 2, 128>}]} {
    %c0 = arith.constant 0 : index
    %c0_0 = arith.constant 0 : index
    %0 = vector.load %arg1[%c0, %c0_0] : memref<2x384xf32, #tpu.memory_space<vmem>>, vector<2x384xf32>
    %c0_1 = arith.constant 0 : index
    %c0_2 = arith.constant 0 : index
    %1 = vector.load %arg2[%c0_1, %c0_2] : memref<384x128xf32, #tpu.memory_space<vmem>>, vector<384x128xf32>
    %cst = arith.constant dense<0.000000e+00> : vector<2x128xf32>
    %2 = tpu.matmul %0, %1, %cst {dimension_numbers = #tpu.dot_dimension_numbers<[1], [0], [0], [1], [0, 0, 1, 1], [], []>} : vector<2x384xf32>, vector<384x128xf32>, vector<2x128xf32> -> vector<2x128xf32>
    %c0_3 = arith.constant 0 : index
    %c0_4 = arith.constant 0 : index
    %3 = vector.load %arg3[%c0_3, %c0_4] : memref<1x128xf32, #tpu.memory_space<vmem>>, vector<1x128xf32>
    %4 = vector.broadcast %3 : vector<1x128xf32> to vector<2x128xf32>
    %5 = arith.addf %2, %4 : vector<2x128xf32>
    %cst_5 = arith.constant 0.000000e+00 : f32
    %6 = vector.broadcast %cst_5 : f32 to vector<2x128xf32>
    %7 = arith.maximumf %5, %6 : vector<2x128xf32>
    %c0_6 = arith.constant 0 : index
    %c0_7 = arith.constant 0 : index
    %8 = vector.load %arg4[%c0_6, %c0_7] : memref<128x128xf32, #tpu.memory_space<vmem>>, vector<128x128xf32>
    %cst_8 = arith.constant dense<0.000000e+00> : vector<2x128xf32>
    %9 = tpu.matmul %7, %8, %cst_8 {dimension_numbers = #tpu.dot_dimension_numbers<[1], [0], [0], [1], [0, 0, 1, 1], [], []>} : vector<2x128xf32>, vector<128x128xf32>, vector<2x128xf32> -> vector<2x128xf32>
    %c0_9 = arith.constant 0 : index
    %c0_10 = arith.constant 0 : index
    %10 = vector.load %arg5[%c0_9, %c0_10] : memref<1x128xf32, #tpu.memory_space<vmem>>, vector<1x128xf32>
    %11 = vector.broadcast %10 : vector<1x128xf32> to vector<2x128xf32>
    %12 = arith.addf %9, %11 : vector<2x128xf32>
    %13 = tpu.iota {dimensions = array<i32: 1>} : vector<2x128xi32>
    %c10_i32 = arith.constant 10 : i32
    %14 = vector.broadcast %c10_i32 : i32 to vector<2x128xi32>
    %15 = arith.cmpi slt, %13, %14 : vector<2x128xi32>
    %cst_11 = arith.constant -1.000000e+30 : f32
    %16 = vector.broadcast %cst_11 : f32 to vector<2x128xf32>
    %17 = arith.select %15, %12, %16 : vector<2x128xi1>, vector<2x128xf32>
    %cst_12 = arith.constant dense<0xFF800000> : vector<2xf32>
    %18 = vector.multi_reduction <maximumf>, %17, %cst_12 [1] : vector<2x128xf32> to vector<2xf32>
    %19 = vector.shape_cast %18 : vector<2xf32> to vector<2x1xf32>
    %20 = vector.broadcast %19 : vector<2x1xf32> to vector<2x128xf32>
    %21 = arith.subf %17, %20 : vector<2x128xf32>
    %22 = math.exp %21 : vector<2x128xf32>
    %cst_13 = arith.constant dense<0.000000e+00> : vector<2xf32>
    %23 = vector.multi_reduction <add>, %22, %cst_13 [1] : vector<2x128xf32> to vector<2xf32>
    %24 = vector.shape_cast %23 : vector<2xf32> to vector<2x1xf32>
    %25 = math.log %24 : vector<2x1xf32>
    %26 = vector.broadcast %25 : vector<2x1xf32> to vector<2x128xf32>
    %27 = arith.subf %21, %26 : vector<2x128xf32>
    %c0_14 = arith.constant 0 : index
    %c0_15 = arith.constant 0 : index
    %28 = vector.load %arg6[%c0_14, %c0_15] : memref<2x128xf32, #tpu.memory_space<vmem>>, vector<2x128xf32>
    tpu.vector_store %arg6[%c0_14, %c0_15], %27 {strides = array<i32>} : memref<2x128xf32, #tpu.memory_space<vmem>>, vector<2x128xf32>,
    return
  }
  func.func @transform_0(%arg0: i32) -> (i32, i32) {
    %c0_i32 = arith.constant 0 : i32
    %c0_i32_0 = arith.constant 0 : i32
    %c0_i32_1 = arith.constant 0 : i32
    return %c0_i32, %c0_i32_0 : i32, i32
  }
  func.func @transform_1(%arg0: i32) -> (i32, i32) {
    %c0_i32 = arith.constant 0 : i32
    %c0_i32_0 = arith.constant 0 : i32
    %c0_i32_1 = arith.constant 0 : i32
    return %c0_i32, %c0_i32_0 : i32, i32
  }
  func.func @transform_2(%arg0: i32) -> (i32, i32) {
    %c0_i32 = arith.constant 0 : i32
    %c0_i32_0 = arith.constant 0 : i32
    %c0_i32_1 = arith.constant 0 : i32
    return %c0_i32, %c0_i32_0 : i32, i32
  }
  func.func @transform_3(%arg0: i32) -> (i32, i32) {
    %c0_i32 = arith.constant 0 : i32
    %c0_i32_0 = arith.constant 0 : i32
    %c0_i32_1 = arith.constant 0 : i32
    return %c0_i32, %c0_i32_0 : i32, i32
  }
  func.func @transform_4(%arg0: i32) -> (i32, i32) {
    %c0_i32 = arith.constant 0 : i32
    %c0_i32_0 = arith.constant 0 : i32
    %c0_i32_1 = arith.constant 0 : i32
    return %c0_i32, %c0_i32_0 : i32, i32
  }
  func.func @transform_5(%arg0: i32) -> (i32, i32) {
    %c0_i32 = arith.constant 0 : i32
    %c0_i32_0 = arith.constant 0 : i32
    %c0_i32_1 = arith.constant 0 : i32
    return %c0_i32, %c0_i32_0 : i32, i32
  }
}

</mosaic_0001>

<bundles_post_ra>
// kernel: net_forward.6
= control target key start
LH: loop header
LB: loop body
LE: loop exit
PB: predicated region body
PF: predicated region fallthrough
CT: control target
= control target key end

     0   :  { %vm522_vm0 = vcmask 1040384   ;;  %vm149_vm1 = vcmask 400384   ;;  %s1980_s1 = inlined_call_operand.vmem [shape: f32[49,128], index: 1, kind: input, shape index: {}]   ;;  %s1981_s0 = inlined_call_operand.vmem [shape: f32[992,49], index: 0, kind: input, shape index: {}]   ;;  %s1982_s2 = inlined_call_operand.vmem [shape: f32[1,128], index: 2, kind: input, shape index: {}]   ;;  %s1983_s3 = inlined_call_operand.vmem [shape: f32[248,128], index: 3, kind: output, shape index: {}]  }
   0x1   :  { %v144_v0 = vld [vmem:[%s1980_s1 + $0x30] sm:$0x1]  ;;  %v143_v1 = vld [vmem:[%s1980_s1 + $0x28] sm:$0xff]  ;;  %v142_v2 = vld [vmem:[%s1980_s1 + $0x20] sm:$0xff] }
   0x2   :  { %1200 = vmatpush.msk.msra.mxu2 %vm522_vm0, %v144_v0  ;;  %1201 = vmatpush.msk.msra.mxu3 %vm522_vm0, %v144_v0  ;;  %v141_v3 = vld [vmem:[%s1980_s1 + $0x18] sm:$0xff]  ;;  %v140_v4 = vld [vmem:[%s1980_s1 + $0x10] sm:$0xff]  ;;  %v139_v5 = vld [vmem:[%s1980_s1 + $0x8] sm:$0xff] }
   0x3   :  { %1074 = vmatpush.msk.msra.mxu0 %vm522_vm0, %v144_v0  ;;  %1199 = vmatpush.msk.msra.mxu1 %vm522_vm0, %v144_v0  ;;  %v138_v6 = vld [vmem:[%s1980_s1] sm:$0xff]  ;;  %v76_v7 = vld [vmem:[%s1981_s0 + $0x1f0] sm:$0xff]  ;;  %v107_v8 = vld [vmem:[%s1981_s0 + $0x2e8] sm:$0xff] }
   0x4   :  { %1203 = vmatpush.msra.mxu2 %v143_v1  ;;  %1204 = vmatpush.msra.mxu3 %v143_v1  ;;  %v14_v9 = vld [vmem:[%s1981_s0] sm:$0xff]  ;;  %v45_v10 = vld [vmem:[%s1981_s0 + $0xf8] sm:$0xff]  ;;  %v108_v12 = vld [vmem:[%s1981_s0 + $0x2f0] sm:$0xff] }
   0x5   :  { %536 = vmatpush.msra.mxu0 %v143_v1  ;;  %1202 = vmatpush.msra.mxu1 %v143_v1  ;;  %v77_v11 = vld [vmem:[%s1981_s0 + $0x1f8] sm:$0xff]  ;;  %v15_v13 = vld [vmem:[%s1981_s0 + $0x8] sm:$0xff]  ;;  %v46_v14 = vld [vmem:[%s1981_s0 + $0x100] sm:$0xff] }
   0x6   :  { %1206 = vmatpush.msra.mxu2 %v142_v2  ;;  %1207 = vmatpush.msra.mxu3 %v142_v2  ;;  %v78_v15 = vld [vmem:[%s1981_s0 + $0x200] sm:$0xff]  ;;  %v109_v16 = vld [vmem:[%s1981_s0 + $0x2f8] sm:$0xff]  ;;  %v16_v17 = vld [vmem:[%s1981_s0 + $0x10] sm:$0xff] }
   0x7   :  { %537 = vmatpush.msra.mxu0 %v142_v2  ;;  %1205 = vmatpush.msra.mxu1 %v142_v2  ;;  %v47_v18 = vld [vmem:[%s1981_s0 + $0x108] sm:$0xff]  ;;  %v110_v20 = vld [vmem:[%s1981_s0 + $0x300] sm:$0xff]  ;;  %v17_v21 = vld [vmem:[%s1981_s0 + $0x18] sm:$0xff] }
   0x8   :  { %1209 = vmatpush.msra.mxu2 %v141_v3  ;;  %1210 = vmatpush.msra.mxu3 %v141_v3  ;;  %v79_v19 = vld [vmem:[%s1981_s0 + $0x208] sm:$0xff]  ;;  %v48_v22 = vld [vmem:[%s1981_s0 + $0x110] sm:$0xff]  ;;  %v18_v25 = vld [vmem:[%s1981_s0 + $0x20] sm:$0xff] }
   0x9   :  { %538 = vmatpush.msra.mxu0 %v141_v3  ;;  %1208 = vmatpush.msra.mxu1 %v141_v3  ;;  %v80_v23 = vld [vmem:[%s1981_s0 + $0x210] sm:$0xff]  ;;  %v111_v24 = vld [vmem:[%s1981_s0 + $0x308] sm:$0xff]  ;;  %v49_v26 = vld [vmem:[%s1981_s0 + $0x118] sm:$0xff] }
   0xa   :  { %1212 = vmatpush.msra.mxu2 %v140_v4  ;;  %1213 = vmatpush.msra.mxu3 %v140_v4  ;;  %v81_v27 = vld [vmem:[%s1981_s0 + $0x218] sm:$0xff]  ;;  %v112_v28 = vld [vmem:[%s1981_s0 + $0x310] sm:$0xff]  ;;  %v19_v29 = vld [vmem:[%s1981_s0 + $0x28] sm:$0xff] }
   0xb   :  { %539 = vmatpush.msra.mxu0 %v140_v4  ;;  %1211 = vmatpush.msra.mxu1 %v140_v4  ;;  %v50_v30 = vld [vmem:[%s1981_s0 + $0x120] sm:$0xff]  ;;  %v113_v32 = vld [vmem:[%s1981_s0 + $0x318] sm:$0xff]  ;;  %v20_v33 = vld [vmem:[%s1981_s0 + $0x30] sm:$0xff] }
   0xc   :  { %1215 = vmatpush.msra.mxu2 %v139_v5  ;;  %1216 = vmatpush.msra.mxu3 %v139_v5  ;;  %v82_v31 = vld [vmem:[%s1981_s0 + $0x220] sm:$0xff]  ;;  %v51_v34 = vld [vmem:[%s1981_s0 + $0x128] sm:$0xff]  ;;  %v21_v37 = vld [vmem:[%s1981_s0 + $0x38] sm:$0xff] }
   0xd   :  { %540 = vmatpush.msra.mxu0 %v139_v5  ;;  %1214 = vmatpush.msra.mxu1 %v139_v5  ;;  %v83_v35 = vld [vmem:[%s1981_s0 + $0x228] sm:$0xff]  ;;  %v114_v36 = vld [vmem:[%s1981_s0 + $0x320] sm:$0xff]  ;;  %v52_v38 = vld [vmem:[%s1981_s0 + $0x130] sm:$0xff] }
   0xe   :  { %1218 = vmatpush.msra.mxu2 %v138_v6  ;;  %1219 = vmatpush.msra.mxu3 %v138_v6  ;;  %v84_v39 = vld [vmem:[%s1981_s0 + $0x230] sm:$0xff]  ;;  %v115_v40 = vld [vmem:[%s1981_s0 + $0x328] sm:$0xff]  ;;  %v22_v41 = vld [vmem:[%s1981_s0 + $0x40] sm:$0xff] }
   0xf   :  { %1137 = vmatmul.msk.f32.vlgmr.msra.gmra.mxu2 %vm149_vm1, %v76_v7  ;;  %1168 = vmatmul.msk.f32.vlgmr.msra.gmra.mxu3 %vm149_vm1, %v107_v8  ;;  %v53_v42 = vld [vmem:[%s1981_s0 + $0x138] sm:$0xff]  ;;  %v116_v44 = vld [vmem:[%s1981_s0 + $0x330] sm:$0xff]  ;;  %v23_v45 = vld [vmem:[%s1981_s0 + $0x48] sm:$0xff] }
  0x10   :  { %541 = vmatpush.msra.mxu0 %v138_v6  ;;  %1217 = vmatpush.msra.mxu1 %v138_v6  ;;  %v85_v43 = vld [vmem:[%s1981_s0 + $0x238] sm:$0xff]  ;;  %v54_v46 = vld [vmem:[%s1981_s0 + $0x140] sm:$0xff]  ;;  %v24_v49 = vld [vmem:[%s1981_s0 + $0x50] sm:$0xff] }
  0x11   :  { %1075 = vmatmul.msk.f32.vlgmr.msra.gmra.mxu0 %vm149_vm1, %v14_v9  ;;  %1106 = vmatmul.msk.f32.vlgmr.msra.gmra.mxu1 %vm149_vm1, %v45_v10  ;;  %v86_v47 = vld [vmem:[%s1981_s0 + $0x240] sm:$0xff]  ;;  %v117_v48 = vld [vmem:[%s1981_s0 + $0x338] sm:$0xff]  ;;  %v55_v50 = vld [vmem:[%s1981_s0 + $0x148] sm:$0xff] }
  0x12   :  { %v87_v51 = vld [vmem:[%s1981_s0 + $0x248] sm:$0xff]  ;;  %v118_v52 = vld [vmem:[%s1981_s0 + $0x340] sm:$0xff]  ;;  %v25_v53 = vld [vmem:[%s1981_s0 + $0x58] sm:$0xff] }
  0x13   :  { %v56_v54 = vld [vmem:[%s1981_s0 + $0x150] sm:$0xff]  ;;  %v119_v56 = vld [vmem:[%s1981_s0 + $0x348] sm:$0xff]  ;;  %v26_v57 = vld [vmem:[%s1981_s0 + $0x60] sm:$0xff] }
  0x14   :  { %v88_v55 = vld [vmem:[%s1981_s0 + $0x250] sm:$0xff]  ;;  %v57_v58 = vld [vmem:[%s1981_s0 + $0x158] sm:$0xff]  ;;  %v27_v61 = vld [vmem:[%s1981_s0 + $0x68] sm:$0xff] }
  0x15   :  { %v89_v59 = vld [vmem:[%s1981_s0 + $0x258] sm:$0xff]  ;;  %v120_v60 = vld [vmem:[%s1981_s0 + $0x350] sm:$0xff]  ;;  %v58_v62 = vld [vmem:[%s1981_s0 + $0x160] sm:$0xff] }
  0x16   :  { %v90_v63 = vld [vmem:[%s1981_s0 + $0x260] sm:$0xff]  ;;  %v121_v0 = vld [vmem:[%s1981_s0 + $0x358] sm:$0xff]  ;;  %v28_v1 = vld [vmem:[%s1981_s0 + $0x70] sm:$0xff] }
  0x17   :  { %1138 = vmatmul.msk.f32.gmra.mxu2 %vm149_vm1, %v77_v11  ;;  %1169 = vmatmul.msk.f32.gmra.mxu3 %vm149_vm1, %v108_v12  ;;  %v59_v2 = vld [vmem:[%s1981_s0 + $0x168] sm:$0xff]  ;;  %v122_v4 = vld [vmem:[%s1981_s0 + $0x360] sm:$0xff]  ;;  %v29_v5 = vld [vmem:[%s1981_s0 + $0x78] sm:$0xff] }
  0x18   :  { %v91_v3 = vld [vmem:[%s1981_s0 + $0x268] sm:$0xff]  ;;  %v60_v6 = vld [vmem:[%s1981_s0 + $0x170] sm:$0xff]  ;;  %v1522_v7 = vld [vmem:[%s1982_s2] ss:$0 sm:$0xff] }
  0x19   :  { %1076 = vmatmul.msk.f32.gmra.mxu0 %vm149_vm1, %v15_v13  ;;  %1107 = vmatmul.msk.f32.gmra.mxu1 %vm149_vm1, %v46_v14  ;;  %v92_v8 = vld [vmem:[%s1981_s0 + $0x270] sm:$0xff]  ;;  %v123_v9 = vld [vmem:[%s1981_s0 + $0x368] sm:$0xff]  ;;  %v30_v12 = vld [vmem:[%s1981_s0 + $0x80] sm:$0xff] }
  0x1a   :  { %v61_v13 = vld [vmem:[%s1981_s0 + $0x178] sm:$0xff] }
  0x1f   :  { %1139 = vmatmul.msk.f32.gmra.mxu2 %vm149_vm1, %v78_v15  ;;  %1170 = vmatmul.msk.f32.gmra.mxu3 %vm149_vm1, %v109_v16 }
  0x21   :  { %1077 = vmatmul.msk.f32.gmra.mxu0 %vm149_vm1, %v16_v17  ;;  %1108 = vmatmul.msk.f32.gmra.mxu1 %vm149_vm1, %v47_v18 }
  0x27   :  { %1140 = vmatmul.msk.f32.gmra.mxu2 %vm149_vm1, %v79_v19  ;;  %1171 = vmatmul.msk.f32.gmra.mxu3 %vm149_vm1, %v110_v20 }
  0x29   :  { %1078 = vmatmul.msk.f32.gmra.mxu0 %vm149_vm1, %v17_v21  ;;  %1109 = vmatmul.msk.f32.gmra.mxu1 %vm149_vm1, %v48_v22  ;;  %v93_v21 = vld [vmem:[%s1981_s0 + $0x278] sm:$0xff]  ;;  %v124_v22 = vld [vmem:[%s1981_s0 + $0x370] sm:$0xff] }
  0x2f   :  { %1141 = vmatmul.msk.f32.gmra.mxu2 %vm149_vm1, %v80_v23  ;;  %1172 = vmatmul.msk.f32.gmra.mxu3 %vm149_vm1, %v111_v24 }
  0x31   :  { %1079 = vmatmul.msk.f32.gmra.mxu0 %vm149_vm1, %v18_v25  ;;  %1110 = vmatmul.msk.f32.gmra.mxu1 %vm149_vm1, %v49_v26  ;;  %v31_v26 = vld [vmem:[%s1981_s0 + $0x88] sm:$0xff] }
  0x37   :  { %1142 = vmatmul.msk.f32.gmra.mxu2 %vm149_vm1, %v81_v27  ;;  %1173 = vmatmul.msk.f32.gmra.mxu3 %vm149_vm1, %v112_v28  ;;  %v62_v27 = vld [vmem:[%s1981_s0 + $0x180] sm:$0xff] }
  0x39   :  { %1080 = vmatmul.msk.f32.gmra.mxu0 %vm149_vm1, %v19_v29  ;;  %1111 = vmatmul.msk.f32.gmra.mxu1 %vm149_vm1, %v50_v30 }
  0x3f   :  { %1143 = vmatmul.msk.f32.gmra.mxu2 %vm149_vm1, %v82_v31  ;;  %1174 = vmatmul.msk.f32.gmra.mxu3 %vm149_vm1, %v113_v32 }
  0x41   :  { %1081 = vmatmul.msk.f32.gmra.mxu0 %vm149_vm1, %v20_v33  ;;  %1112 = vmatmul.msk.f32.gmra.mxu1 %vm149_vm1, %v51_v34 }
  0x47   :  { %1144 = vmatmul.msk.f32.gmra.mxu2 %vm149_vm1, %v83_v35  ;;  %1175 = vmatmul.msk.f32.gmra.mxu3 %vm149_vm1, %v114_v36 }
  0x49   :  { %1082 = vmatmul.msk.f32.gmra.mxu0 %vm149_vm1, %v21_v37  ;;  %1113 = vmatmul.msk.f32.gmra.mxu1 %vm149_vm1, %v52_v38  ;;  %v94_v37 = vld [vmem:[%s1981_s0 + $0x280] sm:$0xff]  ;;  %v125_v38 = vld [vmem:[%s1981_s0 + $0x378] sm:$0xff] }
  0x4f   :  { %1145 = vmatmul.msk.f32.gmra.mxu2 %vm149_vm1, %v84_v39  ;;  %1176 = vmatmul.msk.f32.gmra.mxu3 %vm149_vm1, %v115_v40 }
  0x51   :  { %1083 = vmatmul.msk.f32.gmra.mxu0 %vm149_vm1, %v22_v41  ;;  %1114 = vmatmul.msk.f32.gmra.mxu1 %vm149_vm1, %v53_v42  ;;  %v32_v42 = vld [vmem:[%s1981_s0 + $0x90] sm:$0xff] }
  0x57   :  { %1146 = vmatmul.msk.f32.gmra.mxu2 %vm149_vm1, %v85_v43  ;;  %1177 = vmatmul.msk.f32.gmra.mxu3 %vm149_vm1, %v116_v44  ;;  %v63_v43 = vld [vmem:[%s1981_s0 + $0x188] sm:$0xff] }
  0x59   :  { %1084 = vmatmul.msk.f32.gmra.mxu0 %vm149_vm1, %v23_v45  ;;  %1115 = vmatmul.msk.f32.gmra.mxu1 %vm149_vm1, %v54_v46 }
  0x5f   :  { %1147 = vmatmul.msk.f32.gmra.mxu2 %vm149_vm1, %v86_v47  ;;  %1178 = vmatmul.msk.f32.gmra.mxu3 %vm149_vm1, %v117_v48 }
  0x61   :  { %1085 = vmatmul.msk.f32.gmra.mxu0 %vm149_vm1, %v24_v49  ;;  %1116 = vmatmul.msk.f32.gmra.mxu1 %vm149_vm1, %v55_v50 }
  0x67   :  { %1148 = vmatmul.msk.f32.gmra.mxu2 %vm149_vm1, %v87_v51  ;;  %1179 = vmatmul.msk.f32.gmra.mxu3 %vm149_vm1, %v118_v52 }
  0x69   :  { %1086 = vmatmul.msk.f32.gmra.mxu0 %vm149_vm1, %v25_v53  ;;  %1117 = vmatmul.msk.f32.gmra.mxu1 %vm149_vm1, %v56_v54  ;;  %v95_v53 = vld [vmem:[%s1981_s0 + $0x288] sm:$0xff]  ;;  %v126_v54 = vld [vmem:[%s1981_s0 + $0x380] sm:$0xff] }
  0x6f   :  { %1149 = vmatmul.msk.f32.gmra.mxu2 %vm149_vm1, %v88_v55  ;;  %1180 = vmatmul.msk.f32.gmra.mxu3 %vm149_vm1, %v119_v56 }
  0x71   :  { %1087 = vmatmul.msk.f32.gmra.mxu0 %vm149_vm1, %v26_v57  ;;  %1118 = vmatmul.msk.f32.gmra.mxu1 %vm149_vm1, %v57_v58  ;;  %v33_v58 = vld [vmem:[%s1981_s0 + $0x98] sm:$0xff] }
  0x77   :  { %1150 = vmatmul.msk.f32.gmra.mxu2 %vm149_vm1, %v89_v59  ;;  %1181 = vmatmul.msk.f32.gmra.mxu3 %vm149_vm1, %v120_v60  ;;  %v64_v59 = vld [vmem:[%s1981_s0 + $0x190] sm:$0xff] }
  0x79   :  { %1088 = vmatmul.msk.f32.gmra.mxu0 %vm149_vm1, %v27_v61  ;;  %1119 = vmatmul.msk.f32.gmra.mxu1 %vm149_vm1, %v58_v62 }
  0x7f   :  { %1151 = vmatmul.msk.f32.gmra.mxu2 %vm149_vm1, %v90_v63  ;;  %1182 = vmatmul.msk.f32.gmra.mxu3 %vm149_vm1, %v121_v0 }
  0x81   :  { %1089 = vmatmul.msk.f32.gmra.mxu0 %vm149_vm1, %v28_v1  ;;  %1120 = vmatmul.msk.f32.gmra.mxu1 %vm149_vm1, %v59_v2 }
  0x87   :  { %1152 = vmatmul.msk.f32.gmra.mxu2 %vm149_vm1, %v91_v3  ;;  %1183 = vmatmul.msk.f32.gmra.mxu3 %vm149_vm1, %v122_v4 }
  0x89   :  { %1090 = vmatmul.msk.f32.gmra.mxu0 %vm149_vm1, %v29_v5  ;;  %1121 = vmatmul.msk.f32.gmra.mxu1 %vm149_vm1, %v60_v6  ;;  %v96_v5 = vld [vmem:[%s1981_s0 + $0x290] sm:$0xff]  ;;  %v127_v6 = vld [vmem:[%s1981_s0 + $0x388] sm:$0xff] }
  0x8e   :  { %v543_v10 = vpop.f32.mrf.mxu0  ;;  %v636_v11 = vpop.f32.mrf.mxu1 }
  0x8f   :  { %1153 = vmatmul.msk.f32.gmra.mxu2 %vm149_vm1, %v92_v8  ;;  %1184 = vmatmul.msk.f32.gmra.mxu3 %vm149_vm1, %v123_v9  ;;  %v544_v14 = vadd.f32 %v1522_v7, %v543_v10  ;;  %v637_v15 = vadd.f32 %v1522_v7, %v636_v11  ;;  %v34_v11 = vld [vmem:[%s1981_s0 + $0xa0] sm:$0xff] }
  0x91   :  { %1091 = vmatmul.msk.f32.gmra.mxu0 %vm149_vm1, %v30_v12  ;;  %1122 = vmatmul.msk.f32.gmra.mxu1 %vm149_vm1, %v61_v13  ;;  %v915_v18 = vmax.f32 %v544_v14, %v637_v15  ;;  %v65_v12 = vld [vmem:[%s1981_s0 + $0x198] sm:$0xff] }
  0x92   :  { %v729_v16 = vpop.f32.mrf.mxu2  ;;  %v822_v17 = vpop.f32.mrf.mxu3 }
  0x93   :  { %v730_v19 = vadd.f32 %v1522_v7, %v729_v16  ;;  %v823_v20 = vadd.f32 %v1522_v7, %v822_v17 }
  0x95   :  { %v946_v23 = vmax.f32 %v730_v19, %v823_v20 }
  0x96   :  { %v546_v24 = vpop.f32.mrf.mxu0  ;;  %v639_v25 = vpop.f32.mrf.mxu1 }
  0x97   :  { %v977_v28 = vmax.f32 %v915_v18, %v946_v23  ;;  %1154 = vmatmul.msk.f32.gmra.mxu2 %vm149_vm1, %v93_v21  ;;  %1185 = vmatmul.msk.f32.gmra.mxu3 %vm149_vm1, %v124_v22  ;;  %v547_v29 = vadd.f32 %v1522_v7, %v546_v24  ;;  %v640_v30 = vadd.f32 %v1522_v7, %v639_v25  ;;  %v97_v22 = vld [vmem:[%s1981_s0 + $0x298] sm:$0xff]  ;;  %v128_v23 = vld [vmem:[%s1981_s0 + $0x390] sm:$0xff] }
  0x99   :  { %v1008_v31 = vmax.f32 %v977_v28, 0.0  ;;  %1092 = vmatmul.msk.f32.gmra.mxu0 %vm149_vm1, %v31_v26  ;;  %1123 = vmatmul.msk.f32.gmra.mxu1 %vm149_vm1, %v62_v27  ;;  %v916_v34 = vmax.f32 %v547_v29, %v640_v30  ;;  %v35_v27 = vld [vmem:[%s1981_s0 + $0xa8] sm:$0xff]  ;;  %v66_v28 = vld [vmem:[%s1981_s0 + $0x1a0] sm:$0xff] }
  0x9a   :  { %v732_v32 = vpop.f32.mrf.mxu2  ;;  %v825_v33 = vpop.f32.mrf.mxu3 }
  0x9b   :  { %1039 = vst [vmem:[%s1983_s3] sm:$0xff] %v1008_v31  ;;  %v733_v35 = vadd.f32 %v1522_v7, %v732_v32  ;;  %v826_v36 = vadd.f32 %v1522_v7, %v825_v33 }
  0x9d   :  { %v947_v39 = vmax.f32 %v733_v35, %v826_v36 }
  0x9e   :  { %v549_v40 = vpop.f32.mrf.mxu0  ;;  %v642_v41 = vpop.f32.mrf.mxu1 }
  0x9f   :  { %v978_v44 = vmax.f32 %v916_v34, %v947_v39  ;;  %1155 = vmatmul.msk.f32.gmra.mxu2 %vm149_vm1, %v94_v37  ;;  %1186 = vmatmul.msk.f32.gmra.mxu3 %vm149_vm1, %v125_v38  ;;  %v550_v45 = vadd.f32 %v1522_v7, %v549_v40  ;;  %v643_v46 = vadd.f32 %v1522_v7, %v642_v41  ;;  %v98_v38 = vld [vmem:[%s1981_s0 + $0x2a0] sm:$0xff]  ;;  %v129_v39 = vld [vmem:[%s1981_s0 + $0x398] sm:$0xff] }
  0xa1   :  { %v1009_v47 = vmax.f32 %v978_v44, 0.0  ;;  %1093 = vmatmul.msk.f32.gmra.mxu0 %vm149_vm1, %v32_v42  ;;  %1124 = vmatmul.msk.f32.gmra.mxu1 %vm149_vm1, %v63_v43  ;;  %v917_v50 = vmax.f32 %v550_v45, %v643_v46  ;;  %v36_v43 = vld [vmem:[%s1981_s0 + $0xb0] sm:$0xff]  ;;  %v67_v44 = vld [vmem:[%s1981_s0 + $0x1a8] sm:$0xff] }
  0xa2   :  { %v735_v48 = vpop.f32.mrf.mxu2  ;;  %v828_v49 = vpop.f32.mrf.mxu3 }
  0xa3   :  { %1040 = vst [vmem:[%s1983_s3 + $0x8] sm:$0xff] %v1009_v47  ;;  %v736_v51 = vadd.f32 %v1522_v7, %v735_v48  ;;  %v829_v52 = vadd.f32 %v1522_v7, %v828_v49 }
  0xa5   :  { %v948_v55 = vmax.f32 %v736_v51, %v829_v52 }
  0xa6   :  { %v552_v56 = vpop.f32.mrf.mxu0  ;;  %v645_v57 = vpop.f32.mrf.mxu1 }
  0xa7   :  { %v979_v60 = vmax.f32 %v917_v50, %v948_v55  ;;  %1156 = vmatmul.msk.f32.gmra.mxu2 %vm149_vm1, %v95_v53  ;;  %1187 = vmatmul.msk.f32.gmra.mxu3 %vm149_vm1, %v126_v54  ;;  %v553_v61 = vadd.f32 %v1522_v7, %v552_v56  ;;  %v646_v62 = vadd.f32 %v1522_v7, %v645_v57  ;;  %v99_v54 = vld [vmem:[%s1981_s0 + $0x2a8] sm:$0xff]  ;;  %v130_v55 = vld [vmem:[%s1981_s0 + $0x3a0] sm:$0xff] }
  0xa9   :  { %v1010_v63 = vmax.f32 %v979_v60, 0.0  ;;  %1094 = vmatmul.msk.f32.gmra.mxu0 %vm149_vm1, %v33_v58  ;;  %1125 = vmatmul.msk.f32.gmra.mxu1 %vm149_vm1, %v64_v59  ;;  %v918_v2 = vmax.f32 %v553_v61, %v646_v62  ;;  %v37_v59 = vld [vmem:[%s1981_s0 + $0xb8] sm:$0xff]  ;;  %v68_v60 = vld [vmem:[%s1981_s0 + $0x1b0] sm:$0xff] }
  0xaa   :  { %v738_v0 = vpop.f32.mrf.mxu2  ;;  %v831_v1 = vpop.f32.mrf.mxu3 }
  0xab   :  { %1041 = vst [vmem:[%s1983_s3 + $0x10] sm:$0xff] %v1010_v63  ;;  %v739_v3 = vadd.f32 %v1522_v7, %v738_v0  ;;  %v832_v4 = vadd.f32 %v1522_v7, %v831_v1 }
  0xad   :  { %v949_v8 = vmax.f32 %v739_v3, %v832_v4 }
  0xae   :  { %v555_v9 = vpop.f32.mrf.mxu0  ;;  %v648_v10 = vpop.f32.mrf.mxu1 }
  0xaf   :  { %v980_v13 = vmax.f32 %v918_v2, %v949_v8  ;;  %1157 = vmatmul.msk.f32.gmra.mxu2 %vm149_vm1, %v96_v5  ;;  %1188 = vmatmul.msk.f32.gmra.mxu3 %vm149_vm1, %v127_v6  ;;  %v556_v14 = vadd.f32 %v1522_v7, %v555_v9  ;;  %v649_v15 = vadd.f32 %v1522_v7, %v648_v10  ;;  %v100_v6 = vld [vmem:[%s1981_s0 + $0x2b0] sm:$0xff]  ;;  %v131_v8 = vld [vmem:[%s1981_s0 + $0x3a8] sm:$0xff] }
  0xb1   :  { %v1011_v16 = vmax.f32 %v980_v13, 0.0  ;;  %1095 = vmatmul.msk.f32.gmra.mxu0 %vm149_vm1, %v34_v11  ;;  %1126 = vmatmul.msk.f32.gmra.mxu1 %vm149_vm1, %v65_v12  ;;  %v919_v19 = vmax.f32 %v556_v14, %v649_v15  ;;  %v38_v12 = vld [vmem:[%s1981_s0 + $0xc0] sm:$0xff]  ;;  %v69_v13 = vld [vmem:[%s1981_s0 + $0x1b8] sm:$0xff] }
  0xb2   :  { %v741_v17 = vpop.f32.mrf.mxu2  ;;  %v834_v18 = vpop.f32.mrf.mxu3 }
  0xb3   :  { %1042 = vst [vmem:[%s1983_s3 + $0x18] sm:$0xff] %v1011_v16  ;;  %v742_v20 = vadd.f32 %v1522_v7, %v741_v17  ;;  %v835_v21 = vadd.f32 %v1522_v7, %v834_v18 }
  0xb5   :  { %v950_v24 = vmax.f32 %v742_v20, %v835_v21 }
  0xb6   :  { %v558_v25 = vpop.f32.mrf.mxu0  ;;  %v651_v26 = vpop.f32.mrf.mxu1 }
  0xb7   :  { %v981_v29 = vmax.f32 %v919_v19, %v950_v24  ;;  %1158 = vmatmul.msk.f32.gmra.mxu2 %vm149_vm1, %v97_v22  ;;  %1189 = vmatmul.msk.f32.gmra.mxu3 %vm149_vm1, %v128_v23  ;;  %v559_v30 = vadd.f32 %v1522_v7, %v558_v25  ;;  %v652_v31 = vadd.f32 %v1522_v7, %v651_v26  ;;  %v101_v23 = vld [vmem:[%s1981_s0 + $0x2b8] sm:$0xff]  ;;  %v132_v24 = vld [vmem:[%s1981_s0 + $0x3b0] sm:$0xff] }
  0xb9   :  { %v1012_v32 = vmax.f32 %v981_v29, 0.0  ;;  %1096 = vmatmul.msk.f32.gmra.mxu0 %vm149_vm1, %v35_v27  ;;  %1127 = vmatmul.msk.f32.gmra.mxu1 %vm149_vm1, %v66_v28  ;;  %v920_v35 = vmax.f32 %v559_v30, %v652_v31  ;;  %v39_v28 = vld [vmem:[%s1981_s0 + $0xc8] sm:$0xff]  ;;  %v70_v29 = vld [vmem:[%s1981_s0 + $0x1c0] sm:$0xff] }
  0xba   :  { %v744_v33 = vpop.f32.mrf.mxu2  ;;  %v837_v34 = vpop.f32.mrf.mxu3 }
  0xbb   :  { %1043 = vst [vmem:[%s1983_s3 + $0x20] sm:$0xff] %v1012_v32  ;;  %v745_v36 = vadd.f32 %v1522_v7, %v744_v33  ;;  %v838_v37 = vadd.f32 %v1522_v7, %v837_v34 }
  0xbd   :  { %v951_v40 = vmax.f32 %v745_v36, %v838_v37 }
  0xbe   :  { %v561_v41 = vpop.f32.mrf.mxu0  ;;  %v654_v42 = vpop.f32.mrf.mxu1 }
  0xbf   :  { %v982_v45 = vmax.f32 %v920_v35, %v951_v40  ;;  %1159 = vmatmul.msk.f32.gmra.mxu2 %vm149_vm1, %v98_v38  ;;  %1190 = vmatmul.msk.f32.gmra.mxu3 %vm149_vm1, %v129_v39  ;;  %v562_v46 = vadd.f32 %v1522_v7, %v561_v41  ;;  %v655_v47 = vadd.f32 %v1522_v7, %v654_v42  ;;  %v102_v39 = vld [vmem:[%s1981_s0 + $0x2c0] sm:$0xff]  ;;  %v133_v40 = vld [vmem:[%s1981_s0 + $0x3b8] sm:$0xff] }
  0xc1   :  { %v1013_v48 = vmax.f32 %v982_v45, 0.0  ;;  %1097 = vmatmul.msk.f32.gmra.mxu0 %vm149_vm1, %v36_v43  ;;  %1128 = vmatmul.msk.f32.gmra.mxu1 %vm149_vm1, %v67_v44  ;;  %v921_v51 = vmax.f32 %v562_v46, %v655_v47  ;;  %v40_v44 = vld [vmem:[%s1981_s0 + $0xd0] sm:$0xff]  ;;  %v71_v45 = vld [vmem:[%s1981_s0 + $0x1c8] sm:$0xff] }
  0xc2   :  { %v747_v49 = vpop.f32.mrf.mxu2  ;;  %v840_v50 = vpop.f32.mrf.mxu3 }
  0xc3   :  { %1044 = vst [vmem:[%s1983_s3 + $0x28] sm:$0xff] %v1013_v48  ;;  %v748_v52 = vadd.f32 %v1522_v7, %v747_v49  ;;  %v841_v53 = vadd.f32 %v1522_v7, %v840_v50 }
  0xc5   :  { %v952_v56 = vmax.f32 %v748_v52, %v841_v53 }
  0xc6   :  { %v564_v57 = vpop.f32.mrf.mxu0  ;;  %v657_v58 = vpop.f32.mrf.mxu1 }
  0xc7   :  { %v983_v61 = vmax.f32 %v921_v51, %v952_v56  ;;  %1160 = vmatmul.msk.f32.gmra.mxu2 %vm149_vm1, %v99_v54  ;;  %1191 = vmatmul.msk.f32.gmra.mxu3 %vm149_vm1, %v130_v55  ;;  %v565_v62 = vadd.f32 %v1522_v7, %v564_v57  ;;  %v658_v63 = vadd.f32 %v1522_v7, %v657_v58  ;;  %v103_v55 = vld [vmem:[%s1981_s0 + $0x2c8] sm:$0xff]  ;;  %v134_v56 = vld [vmem:[%s1981_s0 + $0x3c0] sm:$0xff] }
  0xc9   :  { %v1014_v0 = vmax.f32 %v983_v61, 0.0  ;;  %1098 = vmatmul.msk.f32.gmra.mxu0 %vm149_vm1, %v37_v59  ;;  %1129 = vmatmul.msk.f32.gmra.mxu1 %vm149_vm1, %v68_v60  ;;  %v922_v3 = vmax.f32 %v565_v62, %v658_v63  ;;  %v41_v60 = vld [vmem:[%s1981_s0 + $0xd8] sm:$0xff]  ;;  %v72_v61 = vld [vmem:[%s1981_s0 + $0x1d0] sm:$0xff] }
  0xca   :  { %v750_v1 = vpop.f32.mrf.mxu2  ;;  %v843_v2 = vpop.f32.mrf.mxu3 }
  0xcb   :  { %1045 = vst [vmem:[%s1983_s3 + $0x30] sm:$0xff] %v1014_v0  ;;  %v751_v4 = vadd.f32 %v1522_v7, %v750_v1  ;;  %v844_v5 = vadd.f32 %v1522_v7, %v843_v2 }
  0xcd   :  { %v953_v9 = vmax.f32 %v751_v4, %v844_v5 }
  0xce   :  { %v567_v10 = vpop.f32.mrf.mxu0  ;;  %v660_v11 = vpop.f32.mrf.mxu1 }
  0xcf   :  { %v984_v14 = vmax.f32 %v922_v3, %v953_v9  ;;  %1161 = vmatmul.msk.f32.gmra.mxu2 %vm149_vm1, %v100_v6  ;;  %1192 = vmatmul.msk.f32.gmra.mxu3 %vm149_vm1, %v131_v8  ;;  %v568_v15 = vadd.f32 %v1522_v7, %v567_v10  ;;  %v661_v16 = vadd.f32 %v1522_v7, %v660_v11  ;;  %v104_v8 = vld [vmem:[%s1981_s0 + $0x2d0] sm:$0xff]  ;;  %v135_v9 = vld [vmem:[%s1981_s0 + $0x3c8] sm:$0xff] }
  0xd1   :  { %v1015_v17 = vmax.f32 %v984_v14, 0.0  ;;  %1099 = vmatmul.msk.f32.gmra.mxu0 %vm149_vm1, %v38_v12  ;;  %1130 = vmatmul.msk.f32.gmra.mxu1 %vm149_vm1, %v69_v13  ;;  %v923_v20 = vmax.f32 %v568_v15, %v661_v16  ;;  %v42_v13 = vld [vmem:[%s1981_s0 + $0xe0] sm:$0xff]  ;;  %v73_v14 = vld [vmem:[%s1981_s0 + $0x1d8] sm:$0xff] }
  0xd2   :  { %v753_v18 = vpop.f32.mrf.mxu2  ;;  %v846_v19 = vpop.f32.mrf.mxu3 }
  0xd3   :  { %1046 = vst [vmem:[%s1983_s3 + $0x38] sm:$0xff] %v1015_v17  ;;  %v754_v21 = vadd.f32 %v1522_v7, %v753_v18  ;;  %v847_v22 = vadd.f32 %v1522_v7, %v846_v19 }
  0xd5   :  { %v954_v25 = vmax.f32 %v754_v21, %v847_v22 }
  0xd6   :  { %v570_v26 = vpop.f32.mrf.mxu0  ;;  %v663_v27 = vpop.f32.mrf.mxu1 }
  0xd7   :  { %v985_v30 = vmax.f32 %v923_v20, %v954_v25  ;;  %1162 = vmatmul.msk.f32.gmra.mxu2 %vm149_vm1, %v101_v23  ;;  %1193 = vmatmul.msk.f32.gmra.mxu3 %vm149_vm1, %v132_v24  ;;  %v571_v31 = vadd.f32 %v1522_v7, %v570_v26  ;;  %v664_v32 = vadd.f32 %v1522_v7, %v663_v27  ;;  %v105_v24 = vld [vmem:[%s1981_s0 + $0x2d8] sm:$0xff]  ;;  %v136_v25 = vld [vmem:[%s1981_s0 + $0x3d0] sm:$0xff] }
  0xd9   :  { %v1016_v33 = vmax.f32 %v985_v30, 0.0  ;;  %1100 = vmatmul.msk.f32.gmra.mxu0 %vm149_vm1, %v39_v28  ;;  %1131 = vmatmul.msk.f32.gmra.mxu1 %vm149_vm1, %v70_v29  ;;  %v924_v36 = vmax.f32 %v571_v31, %v664_v32  ;;  %v43_v29 = vld [vmem:[%s1981_s0 + $0xe8] sm:$0xff]  ;;  %v74_v30 = vld [vmem:[%s1981_s0 + $0x1e0] sm:$0xff] }
  0xda   :  { %v756_v34 = vpop.f32.mrf.mxu2  ;;  %v849_v35 = vpop.f32.mrf.mxu3 }
  0xdb   :  { %1047 = vst [vmem:[%s1983_s3 + $0x40] sm:$0xff] %v1016_v33  ;;  %v757_v37 = vadd.f32 %v1522_v7, %v756_v34  ;;  %v850_v38 = vadd.f32 %v1522_v7, %v849_v35 }
  0xdd   :  { %v955_v41 = vmax.f32 %v757_v37, %v850_v38 }
  0xde   :  { %v573_v42 = vpop.f32.mrf.mxu0  ;;  %v666_v43 = vpop.f32.mrf.mxu1 }
  0xdf   :  { %v986_v46 = vmax.f32 %v924_v36, %v955_v41  ;;  %1163 = vmatmul.msk.f32.gmra.mxu2 %vm149_vm1, %v102_v39  ;;  %1194 = vmatmul.msk.f32.gmra.mxu3 %vm149_vm1, %v133_v40  ;;  %v574_v47 = vadd.f32 %v1522_v7, %v573_v42  ;;  %v667_v48 = vadd.f32 %v1522_v7, %v666_v43  ;;  %v106_v40 = vld [vmem:[%s1981_s0 + $0x2e0] sm:$0xff]  ;;  %v137_v41 = vld [vmem:[%s1981_s0 + $0x3d8] sm:$0xff] }
  0xe1   :  { %v1017_v49 = vmax.f32 %v986_v46, 0.0  ;;  %1101 = vmatmul.msk.f32.gmra.mxu0 %vm149_vm1, %v40_v44  ;;  %1132 = vmatmul.msk.f32.gmra.mxu1 %vm149_vm1, %v71_v45  ;;  %v925_v52 = vmax.f32 %v574_v47, %v667_v48  ;;  %v44_v45 = vld [vmem:[%s1981_s0 + $0xf0] sm:$0xff]  ;;  %v75_v46 = vld [vmem:[%s1981_s0 + $0x1e8] sm:$0xff] }
  0xe2   :  { %v759_v50 = vpop.f32.mrf.mxu2  ;;  %v852_v51 = vpop.f32.mrf.mxu3 }
  0xe3   :  { %1048 = vst [vmem:[%s1983_s3 + $0x48] sm:$0xff] %v1017_v49  ;;  %v760_v53 = vadd.f32 %v1522_v7, %v759_v50  ;;  %v853_v54 = vadd.f32 %v1522_v7, %v852_v51 }
  0xe5   :  { %v956_v57 = vmax.f32 %v760_v53, %v853_v54 }
  0xe6   :  { %v576_v58 = vpop.f32.mrf.mxu0  ;;  %v669_v59 = vpop.f32.mrf.mxu1 }
  0xe7   :  { %v987_v62 = vmax.f32 %v925_v52, %v956_v57  ;;  %1164 = vmatmul.msk.f32.gmra.mxu2 %vm149_vm1, %v103_v55  ;;  %1195 = vmatmul.msk.f32.gmra.mxu3 %vm149_vm1, %v134_v56  ;;  %v577_v63 = vadd.f32 %v1522_v7, %v576_v58  ;;  %v670_v0 = vadd.f32 %v1522_v7, %v669_v59 }
  0xe9   :  { %v1018_v1 = vmax.f32 %v987_v62, 0.0  ;;  %1102 = vmatmul.msk.f32.gmra.mxu0 %vm149_vm1, %v41_v60  ;;  %1133 = vmatmul.msk.f32.gmra.mxu1 %vm149_vm1, %v72_v61  ;;  %v926_v4 = vmax.f32 %v577_v63, %v670_v0 }
  0xea   :  { %v762_v2 = vpop.f32.mrf.mxu2  ;;  %v855_v3 = vpop.f32.mrf.mxu3 }
  0xeb   :  { %1049 = vst [vmem:[%s1983_s3 + $0x50] sm:$0xff] %v1018_v1  ;;  %v763_v5 = vadd.f32 %v1522_v7, %v762_v2  ;;  %v856_v6 = vadd.f32 %v1522_v7, %v855_v3 }
  0xed   :  { %v957_v10 = vmax.f32 %v763_v5, %v856_v6 }
  0xee   :  { %v579_v11 = vpop.f32.mrf.mxu0  ;;  %v672_v12 = vpop.f32.mrf.mxu1 }
  0xef   :  { %v988_v15 = vmax.f32 %v926_v4, %v957_v10  ;;  %1165 = vmatmul.msk.f32.gmra.mxu2 %vm149_vm1, %v104_v8  ;;  %1196 = vmatmul.msk.f32.gmra.mxu3 %vm149_vm1, %v135_v9  ;;  %v580_v16 = vadd.f32 %v1522_v7, %v579_v11  ;;  %v673_v17 = vadd.f32 %v1522_v7, %v672_v12 }
  0xf1   :  { %v1019_v18 = vmax.f32 %v988_v15, 0.0  ;;  %1103 = vmatmul.msk.f32.gmra.mxu0 %vm149_vm1, %v42_v13  ;;  %1134 = vmatmul.msk.f32.gmra.mxu1 %vm149_vm1, %v73_v14  ;;  %v927_v21 = vmax.f32 %v580_v16, %v673_v17 }
  0xf2   :  { %v765_v19 = vpop.f32.mrf.mxu2  ;;  %v858_v20 = vpop.f32.mrf.mxu3 }
  0xf3   :  { %1050 = vst [vmem:[%s1983_s3 + $0x58] sm:$0xff] %v1019_v18  ;;  %v766_v22 = vadd.f32 %v1522_v7, %v765_v19  ;;  %v859_v23 = vadd.f32 %v1522_v7, %v858_v20 }
  0xf5   :  { %v958_v26 = vmax.f32 %v766_v22, %v859_v23 }
  0xf6   :  { %v582_v27 = vpop.f32.mrf.mxu0  ;;  %v675_v28 = vpop.f32.mrf.mxu1 }
  0xf7   :  { %v989_v31 = vmax.f32 %v927_v21, %v958_v26  ;;  %1166 = vmatmul.msk.f32.gmra.mxu2 %vm149_vm1, %v105_v24  ;;  %1197 = vmatmul.msk.f32.gmra.mxu3 %vm149_vm1, %v136_v25  ;;  %v583_v32 = vadd.f32 %v1522_v7, %v582_v27  ;;  %v676_v33 = vadd.f32 %v1522_v7, %v675_v28 }
  0xf9   :  { %v1020_v34 = vmax.f32 %v989_v31, 0.0  ;;  %1104 = vmatmul.msk.f32.gmra.mxu0 %vm149_vm1, %v43_v29  ;;  %1135 = vmatmul.msk.f32.gmra.mxu1 %vm149_vm1, %v74_v30  ;;  %v928_v37 = vmax.f32 %v583_v32, %v676_v33 }
  0xfa   :  { %v768_v35 = vpop.f32.mrf.mxu2  ;;  %v861_v36 = vpop.f32.mrf.mxu3 }
  0xfb   :  { %1051 = vst [vmem:[%s1983_s3 + $0x60] sm:$0xff] %v1020_v34  ;;  %v769_v38 = vadd.f32 %v1522_v7, %v768_v35  ;;  %v862_v39 = vadd.f32 %v1522_v7, %v861_v36 }
  0xfd   :  { %v959_v42 = vmax.f32 %v769_v38, %v862_v39 }
  0xfe   :  { %v585_v43 = vpop.f32.mrf.mxu0  ;;  %v678_v44 = vpop.f32.mrf.mxu1 }
  0xff   :  { %v990_v47 = vmax.f32 %v928_v37, %v959_v42  ;;  %1167 = vmatmul.msk.f32.gmra.mxu2 %vm149_vm1, %v106_v40  ;;  %1198 = vmatmul.msk.f32.gmra.mxu3 %vm149_vm1, %v137_v41  ;;  %v586_v48 = vadd.f32 %v1522_v7, %v585_v43  ;;  %v679_v49 = vadd.f32 %v1522_v7, %v678_v44 }
 0x101   :  { %v1021_v50 = vmax.f32 %v990_v47, 0.0  ;;  %1105 = vmatmul.msk.f32.gmra.mxu0 %vm149_vm1, %v44_v45  ;;  %1136 = vmatmul.msk.f32.gmra.mxu1 %vm149_vm1, %v75_v46  ;;  %v929_v53 = vmax.f32 %v586_v48, %v679_v49 }
 0x102   :  { %v771_v51 = vpop.f32.mrf.mxu2  ;;  %v864_v52 = vpop.f32.mrf.mxu3 }
 0x103   :  { %1052 = vst [vmem:[%s1983_s3 + $0x68] sm:$0xff] %v1021_v50  ;;  %v772_v54 = vadd.f32 %v1522_v7, %v771_v51  ;;  %v865_v55 = vadd.f32 %v1522_v7, %v864_v52 }
 0x105   :  { %v960_v56 = vmax.f32 %v772_v54, %v865_v55 }
 0x106   :  { %v588_v57 = vpop.f32.mrf.mxu0  ;;  %v681_v58 = vpop.f32.mrf.mxu1 }
 0x107   :  { %v991_v59 = vmax.f32 %v929_v53, %v960_v56  ;;  %v589_v60 = vadd.f32 %v1522_v7, %v588_v57  ;;  %v682_v61 = vadd.f32 %v1522_v7, %v681_v58 }
 0x109   :  { %v1022_v62 = vmax.f32 %v991_v59, 0.0  ;;  %v930_v1 = vmax.f32 %v589_v60, %v682_v61 }
 0x10a   :  { %v774_v63 = vpop.f32.mrf.mxu2  ;;  %v867_v0 = vpop.f32.mrf.mxu3 }
 0x10b   :  { %1053 = vst [vmem:[%s1983_s3 + $0x70] sm:$0xff] %v1022_v62  ;;  %v775_v2 = vadd.f32 %v1522_v7, %v774_v63  ;;  %v868_v3 = vadd.f32 %v1522_v7, %v867_v0 }
 0x10d   :  { %v961_v4 = vmax.f32 %v775_v2, %v868_v3 }
 0x10e   :  { %v591_v5 = vpop.f32.mrf.mxu0  ;;  %v684_v6 = vpop.f32.mrf.mxu1 }
 0x10f   :  { %v992_v8 = vmax.f32 %v930_v1, %v961_v4  ;;  %v592_v9 = vadd.f32 %v1522_v7, %v591_v5  ;;  %v685_v10 = vadd.f32 %v1522_v7, %v684_v6 }
 0x111   :  { %v1023_v11 = vmax.f32 %v992_v8, 0.0  ;;  %v931_v14 = vmax.f32 %v592_v9, %v685_v10 }
 0x112   :  { %v777_v12 = vpop.f32.mrf.mxu2  ;;  %v870_v13 = vpop.f32.mrf.mxu3 }
 0x113   :  { %1054 = vst [vmem:[%s1983_s3 + $0x78] sm:$0xff] %v1023_v11  ;;  %v778_v15 = vadd.f32 %v1522_v7, %v777_v12  ;;  %v871_v16 = vadd.f32 %v1522_v7, %v870_v13 }
 0x115   :  { %v962_v17 = vmax.f32 %v778_v15, %v871_v16 }
 0x116   :  { %v594_v18 = vpop.f32.mrf.mxu0  ;;  %v687_v19 = vpop.f32.mrf.mxu1 }
 0x117   :  { %v993_v20 = vmax.f32 %v931_v14, %v962_v17  ;;  %v595_v21 = vadd.f32 %v1522_v7, %v594_v18  ;;  %v688_v22 = vadd.f32 %v1522_v7, %v687_v19 }
 0x119   :  { %v1024_v23 = vmax.f32 %v993_v20, 0.0  ;;  %v932_v26 = vmax.f32 %v595_v21, %v688_v22 }
 0x11a   :  { %v780_v24 = vpop.f32.mrf.mxu2  ;;  %v873_v25 = vpop.f32.mrf.mxu3 }
 0x11b   :  { %1055 = vst [vmem:[%s1983_s3 + $0x80] sm:$0xff] %v1024_v23  ;;  %v781_v27 = vadd.f32 %v1522_v7, %v780_v24  ;;  %v874_v28 = vadd.f32 %v1522_v7, %v873_v25 }
 0x11d   :  { %v963_v29 = vmax.f32 %v781_v27, %v874_v28 }
 0x11e   :  { %v597_v30 = vpop.f32.mrf.mxu0  ;;  %v690_v31 = vpop.f32.mrf.mxu1 }
 0x11f   :  { %v994_v32 = vmax.f32 %v932_v26, %v963_v29  ;;  %v598_v33 = vadd.f32 %v1522_v7, %v597_v30  ;;  %v691_v34 = vadd.f32 %v1522_v7, %v690_v31 }
 0x121   :  { %v1025_v35 = vmax.f32 %v994_v32, 0.0  ;;  %v933_v38 = vmax.f32 %v598_v33, %v691_v34 }
 0x122   :  { %v783_v36 = vpop.f32.mrf.mxu2  ;;  %v876_v37 = vpop.f32.mrf.mxu3 }
 0x123   :  { %1056 = vst [vmem:[%s1983_s3 + $0x88] sm:$0xff] %v1025_v35  ;;  %v784_v39 = vadd.f32 %v1522_v7, %v783_v36  ;;  %v877_v40 = vadd.f32 %v1522_v7, %v876_v37 }
 0x125   :  { %v964_v41 = vmax.f32 %v784_v39, %v877_v40 }
 0x126   :  { %v600_v42 = vpop.f32.mrf.mxu0  ;;  %v693_v43 = vpop.f32.mrf.mxu1 }
 0x127   :  { %v995_v44 = vmax.f32 %v933_v38, %v964_v41  ;;  %v601_v45 = vadd.f32 %v1522_v7, %v600_v42  ;;  %v694_v46 = vadd.f32 %v1522_v7, %v693_v43 }
 0x129   :  { %v1026_v47 = vmax.f32 %v995_v44, 0.0  ;;  %v934_v50 = vmax.f32 %v601_v45, %v694_v46 }
 0x12a   :  { %v786_v48 = vpop.f32.mrf.mxu2  ;;  %v879_v49 = vpop.f32.mrf.mxu3 }
 0x12b   :  { %1057 = vst [vmem:[%s1983_s3 + $0x90] sm:$0xff] %v1026_v47  ;;  %v787_v51 = vadd.f32 %v1522_v7, %v786_v48  ;;  %v880_v52 = vadd.f32 %v1522_v7, %v879_v49 }
 0x12d   :  { %v965_v53 = vmax.f32 %v787_v51, %v880_v52 }
 0x12e   :  { %v603_v54 = vpop.f32.mrf.mxu0  ;;  %v696_v55 = vpop.f32.mrf.mxu1 }
 0x12f   :  { %v996_v56 = vmax.f32 %v934_v50, %v965_v53  ;;  %v604_v57 = vadd.f32 %v1522_v7, %v603_v54  ;;  %v697_v58 = vadd.f32 %v1522_v7, %v696_v55 }
 0x131   :  { %v1027_v59 = vmax.f32 %v996_v56, 0.0  ;;  %v935_v62 = vmax.f32 %v604_v57, %v697_v58 }
 0x132   :  { %v789_v60 = vpop.f32.mrf.mxu2  ;;  %v882_v61 = vpop.f32.mrf.mxu3 }
 0x133   :  { %1058 = vst [vmem:[%s1983_s3 + $0x98] sm:$0xff] %v1027_v59  ;;  %v790_v63 = vadd.f32 %v1522_v7, %v789_v60  ;;  %v883_v0 = vadd.f32 %v1522_v7, %v882_v61 }
 0x135   :  { %v966_v1 = vmax.f32 %v790_v63, %v883_v0 }
 0x136   :  { %v606_v2 = vpop.f32.mrf.mxu0  ;;  %v699_v3 = vpop.f32.mrf.mxu1 }
 0x137   :  { %v997_v4 = vmax.f32 %v935_v62, %v966_v1  ;;  %v607_v5 = vadd.f32 %v1522_v7, %v606_v2  ;;  %v700_v6 = vadd.f32 %v1522_v7, %v699_v3 }
 0x139   :  { %v1028_v8 = vmax.f32 %v997_v4, 0.0  ;;  %v936_v11 = vmax.f32 %v607_v5, %v700_v6 }
 0x13a   :  { %v792_v9 = vpop.f32.mrf.mxu2  ;;  %v885_v10 = vpop.f32.mrf.mxu3 }
 0x13b   :  { %1059 = vst [vmem:[%s1983_s3 + $0xa0] sm:$0xff] %v1028_v8  ;;  %v793_v12 = vadd.f32 %v1522_v7, %v792_v9  ;;  %v886_v13 = vadd.f32 %v1522_v7, %v885_v10 }
 0x13d   :  { %v967_v14 = vmax.f32 %v793_v12, %v886_v13 }
 0x13e   :  { %v609_v15 = vpop.f32.mrf.mxu0  ;;  %v702_v16 = vpop.f32.mrf.mxu1 }
 0x13f   :  { %v998_v17 = vmax.f32 %v936_v11, %v967_v14  ;;  %v610_v18 = vadd.f32 %v1522_v7, %v609_v15  ;;  %v703_v19 = vadd.f32 %v1522_v7, %v702_v16 }
 0x141   :  { %v1029_v20 = vmax.f32 %v998_v17, 0.0  ;;  %v937_v23 = vmax.f32 %v610_v18, %v703_v19 }
 0x142   :  { %v795_v21 = vpop.f32.mrf.mxu2  ;;  %v888_v22 = vpop.f32.mrf.mxu3 }
 0x143   :  { %1060 = vst [vmem:[%s1983_s3 + $0xa8] sm:$0xff] %v1029_v20  ;;  %v796_v24 = vadd.f32 %v1522_v7, %v795_v21  ;;  %v889_v25 = vadd.f32 %v1522_v7, %v888_v22 }
 0x145   :  { %v968_v26 = vmax.f32 %v796_v24, %v889_v25 }
 0x146   :  { %v612_v27 = vpop.f32.mrf.mxu0  ;;  %v705_v28 = vpop.f32.mrf.mxu1 }
 0x147   :  { %v999_v29 = vmax.f32 %v937_v23, %v968_v26  ;;  %v613_v30 = vadd.f32 %v1522_v7, %v612_v27  ;;  %v706_v31 = vadd.f32 %v1522_v7, %v705_v28 }
 0x149   :  { %v1030_v32 = vmax.f32 %v999_v29, 0.0  ;;  %v938_v35 = vmax.f32 %v613_v30, %v706_v31 }
 0x14a   :  { %v798_v33 = vpop.f32.mrf.mxu2  ;;  %v891_v34 = vpop.f32.mrf.mxu3 }
 0x14b   :  { %1061 = vst [vmem:[%s1983_s3 + $0xb0] sm:$0xff] %v1030_v32  ;;  %v799_v36 = vadd.f32 %v1522_v7, %v798_v33  ;;  %v892_v37 = vadd.f32 %v1522_v7, %v891_v34 }
 0x14d   :  { %v969_v38 = vmax.f32 %v799_v36, %v892_v37 }
 0x14e   :  { %v615_v39 = vpop.f32.mrf.mxu0  ;;  %v708_v40 = vpop.f32.mrf.mxu1 }
 0x14f   :  { %v1000_v41 = vmax.f32 %v938_v35, %v969_v38  ;;  %v616_v42 = vadd.f32 %v1522_v7, %v615_v39  ;;  %v709_v43 = vadd.f32 %v1522_v7, %v708_v40 }
 0x151   :  { %v1031_v44 = vmax.f32 %v1000_v41, 0.0  ;;  %v939_v47 = vmax.f32 %v616_v42, %v709_v43 }
 0x152   :  { %v801_v45 = vpop.f32.mrf.mxu2  ;;  %v894_v46 = vpop.f32.mrf.mxu3 }
 0x153   :  { %1062 = vst [vmem:[%s1983_s3 + $0xb8] sm:$0xff] %v1031_v44  ;;  %v802_v48 = vadd.f32 %v1522_v7, %v801_v45  ;;  %v895_v49 = vadd.f32 %v1522_v7, %v894_v46 }
 0x155   :  { %v970_v50 = vmax.f32 %v802_v48, %v895_v49 }
 0x156   :  { %v618_v51 = vpop.f32.mrf.mxu0  ;;  %v711_v52 = vpop.f32.mrf.mxu1 }
 0x157   :  { %v1001_v53 = vmax.f32 %v939_v47, %v970_v50  ;;  %v619_v54 = vadd.f32 %v1522_v7, %v618_v51  ;;  %v712_v55 = vadd.f32 %v1522_v7, %v711_v52  ;;  %v1221_v51 = vld [vmem:[%s1982_s2] ss:$0 sm:$0xff] }
 0x159   :  { %v1032_v56 = vmax.f32 %v1001_v53, 0.0  ;;  %v940_v59 = vmax.f32 %v619_v54, %v712_v55 }
 0x15a   :  { %v804_v57 = vpop.f32.mrf.mxu2  ;;  %v897_v58 = vpop.f32.mrf.mxu3 }
 0x15b   :  { %1063 = vst [vmem:[%s1983_s3 + $0xc0] sm:$0xff] %v1032_v56  ;;  %v805_v60 = vadd.f32 %v1522_v7, %v804_v57  ;;  %v898_v61 = vadd.f32 %v1522_v7, %v897_v58 }
 0x15d   :  { %v971_v62 = vmax.f32 %v805_v60, %v898_v61 }
 0x15e   :  { %v621_v63 = vpop.f32.mrf.mxu0  ;;  %v714_v0 = vpop.f32.mrf.mxu1 }
 0x15f   :  { %v1002_v1 = vmax.f32 %v940_v59, %v971_v62  ;;  %v622_v2 = vadd.f32 %v1522_v7, %v621_v63  ;;  %v715_v3 = vadd.f32 %v1522_v7, %v714_v0 }
 0x161   :  { %v1033_v4 = vmax.f32 %v1002_v1, 0.0  ;;  %v941_v8 = vmax.f32 %v622_v2, %v715_v3 }
 0x162   :  { %v807_v5 = vpop.f32.mrf.mxu2  ;;  %v900_v6 = vpop.f32.mrf.mxu3 }
 0x163   :  { %1064 = vst [vmem:[%s1983_s3 + $0xc8] sm:$0xff] %v1033_v4  ;;  %v808_v9 = vadd.f32 %v1522_v7, %v807_v5  ;;  %v901_v10 = vadd.f32 %v1522_v7, %v900_v6 }
 0x165   :  { %v972_v11 = vmax.f32 %v808_v9, %v901_v10 }
 0x166   :  { %v624_v12 = vpop.f32.mrf.mxu0  ;;  %v717_v13 = vpop.f32.mrf.mxu1 }
 0x167   :  { %v1003_v14 = vmax.f32 %v941_v8, %v972_v11  ;;  %v625_v15 = vadd.f32 %v1522_v7, %v624_v12  ;;  %v718_v16 = vadd.f32 %v1522_v7, %v717_v13 }
 0x169   :  { %v1034_v17 = vmax.f32 %v1003_v14, 0.0  ;;  %v942_v20 = vmax.f32 %v625_v15, %v718_v16 }
 0x16a   :  { %v810_v18 = vpop.f32.mrf.mxu2  ;;  %v903_v19 = vpop.f32.mrf.mxu3 }
 0x16b   :  { %1065 = vst [vmem:[%s1983_s3 + $0xd0] sm:$0xff] %v1034_v17  ;;  %v811_v21 = vadd.f32 %v1522_v7, %v810_v18  ;;  %v904_v22 = vadd.f32 %v1522_v7, %v903_v19 }
 0x16d   :  { %v973_v23 = vmax.f32 %v811_v21, %v904_v22 }
 0x16e   :  { %v627_v24 = vpop.f32.mrf.mxu0  ;;  %v720_v25 = vpop.f32.mrf.mxu1 }
 0x16f   :  { %v1004_v26 = vmax.f32 %v942_v20, %v973_v23  ;;  %v628_v27 = vadd.f32 %v1522_v7, %v627_v24  ;;  %v721_v28 = vadd.f32 %v1522_v7, %v720_v25 }
 0x171   :  { %v1035_v29 = vmax.f32 %v1004_v26, 0.0  ;;  %v943_v32 = vmax.f32 %v628_v27, %v721_v28 }
 0x172   :  { %v813_v30 = vpop.f32.mrf.mxu2  ;;  %v906_v31 = vpop.f32.mrf.mxu3 }
 0x173   :  { %1066 = vst [vmem:[%s1983_s3 + $0xd8] sm:$0xff] %v1035_v29  ;;  %v814_v33 = vadd.f32 %v1522_v7, %v813_v30  ;;  %v907_v34 = vadd.f32 %v1522_v7, %v906_v31 }
 0x175   :  { %v974_v35 = vmax.f32 %v814_v33, %v907_v34 }
 0x176   :  { %v630_v36 = vpop.f32.mrf.mxu0  ;;  %v723_v37 = vpop.f32.mrf.mxu1 }
 0x177   :  { %v1005_v38 = vmax.f32 %v943_v32, %v974_v35  ;;  %v631_v39 = vadd.f32 %v1522_v7, %v630_v36  ;;  %v724_v40 = vadd.f32 %v1522_v7, %v723_v37 }
 0x179   :  { %v1036_v41 = vmax.f32 %v1005_v38, 0.0  ;;  %v944_v44 = vmax.f32 %v631_v39, %v724_v40 }
 0x17a   :  { %v816_v42 = vpop.f32.mrf.mxu2  ;;  %v909_v43 = vpop.f32.mrf.mxu3 }
 0x17b   :  { %1067 = vst [vmem:[%s1983_s3 + $0xe0] sm:$0xff] %v1036_v41  ;;  %v817_v45 = vadd.f32 %v1522_v7, %v816_v42  ;;  %v910_v46 = vadd.f32 %v1522_v7, %v909_v43 }
 0x17d   :  { %v975_v47 = vmax.f32 %v817_v45, %v910_v46 }
 0x17e   :  { %v633_v48 = vpop.f32.mrf.mxu0  ;;  %v726_v49 = vpop.f32.mrf.mxu1 }
 0x17f   :  { %v1006_v50 = vmax.f32 %v944_v44, %v975_v47  ;;  %v634_v52 = vadd.f32 %v1221_v51, %v633_v48  ;;  %v727_v53 = vadd.f32 %v1221_v51, %v726_v49 }
 0x181   :  { %v1037_v54 = vmax.f32 %v1006_v50, 0.0  ;;  %v945_v57 = vmax.f32 %v634_v52, %v727_v53 }
 0x182   :  { %v819_v55 = vpop.f32.mrf.mxu2  ;;  %v912_v56 = vpop.f32.mrf.mxu3 }
 0x183   :  { %1068 = vst [vmem:[%s1983_s3 + $0xe8] sm:$0xff] %v1037_v54  ;;  %v820_v58 = vadd.f32 %v1221_v51, %v819_v55  ;;  %v913_v7 = vadd.f32 %v1221_v51, %v912_v56 }
 0x185   :  { %v976_v59 = vmax.f32 %v820_v58, %v913_v7 }
 0x187   :  { %v1007_v60 = vmax.f32 %v945_v57, %v976_v59 }
 0x189   :  { %v1038_v61 = vmax.f32 %v1007_v60, 0.0 }
 0x18b   :  { %1069 = vst [vmem:[%s1983_s3 + $0xf0] sm:$0xff] %v1038_v61 }

// kernel: net_forward.7
= control target key start
LH: loop header
LB: loop body
LE: loop exit
PB: predicated region body
PF: predicated region fallthrough
CT: control target
= control target key end

     0   :  { %vm67_vm0 = vcmask 588800   ;;  %s458_s1 = inlined_call_operand.vmem [shape: f32[200,128], index: 1, kind: input, shape index: {}]   ;;  %s459_s0 = inlined_call_operand.vmem [shape: f32[96,200], index: 0, kind: input, shape index: {}]   ;;  %s460_s2 = inlined_call_operand.vmem [shape: f32[1,128], index: 2, kind: input, shape index: {}]   ;;  %s461_s3 = inlined_call_operand.vmem [shape: f32[24,128], index: 3, kind: output, shape index: {}]  }
   0x1   :  { %v53_v0 = vld [vmem:[%s458_s1 + $0x78] sm:$0xff]  ;;  %v62_v1 = vld [vmem:[%s458_s1 + $0xc0] sm:$0xff]  ;;  %v52_v2 = vld [vmem:[%s458_s1 + $0x70] sm:$0xff] }
   0x2   :  { %104 = vmatpush.msra.mxu0 %v53_v0  ;;  %241 = vmatpush.msra.mxu2 %v53_v0  ;;  %v61_v3 = vld [vmem:[%s458_s1 + $0xb8] sm:$0xff]  ;;  %v51_v4 = vld [vmem:[%s458_s1 + $0x68] sm:$0xff]  ;;  %v60_v5 = vld [vmem:[%s458_s1 + $0xb0] sm:$0xff] }
   0x3   :  { %164 = vmatpush.msra.mxu1 %v62_v1  ;;  %257 = vmatpush.msra.mxu3 %v62_v1  ;;  %v50_v6 = vld [vmem:[%s458_s1 + $0x60] sm:$0xff]  ;;  %v59_v7 = vld [vmem:[%s458_s1 + $0xa8] sm:$0xff]  ;;  %v49_v8 = vld [vmem:[%s458_s1 + $0x58] sm:$0xff] }
   0x4   :  { %105 = vmatpush.msra.mxu0 %v52_v2  ;;  %242 = vmatpush.msra.mxu2 %v52_v2  ;;  %v58_v9 = vld [vmem:[%s458_s1 + $0xa0] sm:$0xff]  ;;  %v48_v10 = vld [vmem:[%s458_s1 + $0x50] sm:$0xff]  ;;  %v57_v11 = vld [vmem:[%s458_s1 + $0x98] sm:$0xff] }
   0x5   :  { %165 = vmatpush.msra.mxu1 %v61_v3  ;;  %258 = vmatpush.msra.mxu3 %v61_v3  ;;  %v47_v12 = vld [vmem:[%s458_s1 + $0x48] sm:$0xff]  ;;  %v56_v13 = vld [vmem:[%s458_s1 + $0x90] sm:$0xff]  ;;  %v46_v14 = vld [vmem:[%s458_s1 + $0x40] sm:$0xff] }
   0x6   :  { %106 = vmatpush.msra.mxu0 %v51_v4  ;;  %243 = vmatpush.msra.mxu2 %v51_v4  ;;  %v55_v15 = vld [vmem:[%s458_s1 + $0x88] sm:$0xff]  ;;  %v45_v16 = vld [vmem:[%s458_s1 + $0x38] sm:$0xff]  ;;  %v54_v17 = vld [vmem:[%s458_s1 + $0x80] sm:$0xff] }
   0x7   :  { %166 = vmatpush.msra.mxu1 %v60_v5  ;;  %259 = vmatpush.msra.mxu3 %v60_v5  ;;  %v15_v18 = vld [vmem:[%s459_s0 + $0x8] sm:$0xff]  ;;  %v44_v19 = vld [vmem:[%s458_s1 + $0x30] sm:$0xff]  ;;  %v29_v21 = vld [vmem:[%s459_s0 + $0x78] sm:$0xff] }
   0x8   :  { %107 = vmatpush.msra.mxu0 %v50_v6  ;;  %244 = vmatpush.msra.mxu2 %v50_v6  ;;  %v43_v20 = vld [vmem:[%s458_s1 + $0x28] sm:$0xff]  ;;  %v42_v22 = vld [vmem:[%s458_s1 + $0x20] sm:$0xff]  ;;  %v41_v23 = vld [vmem:[%s458_s1 + $0x18] sm:$0xff] }
   0x9   :  { %167 = vmatpush.msra.mxu1 %v59_v7  ;;  %260 = vmatpush.msra.mxu3 %v59_v7  ;;  %v17_v24 = vld [vmem:[%s459_s0 + $0x18] sm:$0xff]  ;;  %v40_v25 = vld [vmem:[%s458_s1 + $0x10] sm:$0xff]  ;;  %v39_v26 = vld [vmem:[%s458_s1 + $0x8] sm:$0xff] }
   0xa   :  { %108 = vmatpush.msra.mxu0 %v49_v8  ;;  %245 = vmatpush.msra.mxu2 %v49_v8  ;;  %v31_v27 = vld [vmem:[%s459_s0 + $0x88] sm:$0xff]  ;;  %v38_v28 = vld [vmem:[%s458_s1] sm:$0xff]  ;;  %v24_v30 = vld [vmem:[%s459_s0 + $0x50] sm:$0xff] }
   0xb   :  { %168 = vmatpush.msra.mxu1 %v58_v9  ;;  %261 = vmatpush.msra.mxu3 %v58_v9  ;;  %v14_v29 = vld [vmem:[%s459_s0] sm:$0xff]  ;;  %v19_v31 = vld [vmem:[%s459_s0 + $0x28] sm:$0xff]  ;;  %v33_v32 = vld [vmem:[%s459_s0 + $0x98] sm:$0xff] }
   0xc   :  { %109 = vmatpush.msra.mxu0 %v48_v10  ;;  %246 = vmatpush.msra.mxu2 %v48_v10  ;;  %v16_v33 = vld [vmem:[%s459_s0 + $0x10] sm:$0xff]  ;;  %v26_v34 = vld [vmem:[%s459_s0 + $0x60] sm:$0xff]  ;;  %v21_v35 = vld [vmem:[%s459_s0 + $0x38] sm:$0xff] }
   0xd   :  { %169 = vmatpush.msra.mxu1 %v57_v11  ;;  %262 = vmatpush.msra.mxu3 %v57_v11  ;;  %v35_v36 = vld [vmem:[%s459_s0 + $0xa8] sm:$0xff]  ;;  %v18_v37 = vld [vmem:[%s459_s0 + $0x20] sm:$0xff]  ;;  %v28_v38 = vld [vmem:[%s459_s0 + $0x70] sm:$0xff] }
   0xe   :  { %110 = vmatpush.msra.mxu0 %v47_v12  ;;  %247 = vmatpush.msra.mxu2 %v47_v12  ;;  %v23_v39 = vld [vmem:[%s459_s0 + $0x48] sm:$0xff]  ;;  %v37_v40 = vld [vmem:[%s459_s0 + $0xb8] sm:$0xff]  ;;  %v20_v41 = vld [vmem:[%s459_s0 + $0x30] sm:$0xff] }
   0xf   :  { %170 = vmatpush.msra.mxu1 %v56_v13  ;;  %263 = vmatpush.msra.mxu3 %v56_v13  ;;  %v30_v42 = vld [vmem:[%s459_s0 + $0x80] sm:$0xff]  ;;  %v25_v43 = vld [vmem:[%s459_s0 + $0x58] sm:$0xff]  ;;  %v32_v45 = vld [vmem:[%s459_s0 + $0x90] sm:$0xff] }
  0x10   :  { %111 = vmatpush.msra.mxu0 %v46_v14  ;;  %248 = vmatpush.msra.mxu2 %v46_v14  ;;  %v22_v44 = vld [vmem:[%s459_s0 + $0x40] sm:$0xff]  ;;  %v27_v46 = vld [vmem:[%s459_s0 + $0x68] sm:$0xff]  ;;  %v36_v48 = vld [vmem:[%s459_s0 + $0xb0] sm:$0xff] }
  0x11   :  { %171 = vmatpush.msra.mxu1 %v55_v15  ;;  %264 = vmatpush.msra.mxu3 %v55_v15  ;;  %v34_v47 = vld [vmem:[%s459_s0 + $0xa0] sm:$0xff] }
  0x12   :  { %112 = vmatpush.msra.mxu0 %v45_v16  ;;  %249 = vmatpush.msra.mxu2 %v45_v16  ;;  %v266_v1 = vld [vmem:[%s460_s2] ss:$0 sm:$0xff] }
  0x13   :  { %172 = vmatpush.msra.mxu1 %v54_v17  ;;  %265 = vmatpush.msra.mxu3 %v54_v17 }
  0x14   :  { %229 = vmatmul.msk.f32.vlgmr.msra.gmra.mxu1 %vm67_vm0, %v15_v18  ;;  %113 = vmatpush.msra.mxu0 %v44_v19 }
  0x15   :  { %250 = vmatpush.msra.mxu2 %v44_v19  ;;  %236 = vmatmul.msk.f32.vlgmr.msra.gmra.mxu3 %vm67_vm0, %v29_v21 }
  0x16   :  { %114 = vmatpush.msra.mxu0 %v43_v20 }
  0x17   :  { %251 = vmatpush.msra.mxu2 %v43_v20 }
  0x18   :  { %115 = vmatpush.msra.mxu0 %v42_v22 }
  0x19   :  { %252 = vmatpush.msra.mxu2 %v42_v22 }
  0x1a   :  { %116 = vmatpush.msra.mxu0 %v41_v23 }
  0x1b   :  { %253 = vmatpush.msra.mxu2 %v41_v23 }
  0x1c   :  { %230 = vmatmul.msk.f32.gmra.mxu1 %vm67_vm0, %v17_v24  ;;  %117 = vmatpush.msra.mxu0 %v40_v25 }
  0x1d   :  { %254 = vmatpush.msra.mxu2 %v40_v25  ;;  %237 = vmatmul.msk.f32.gmra.mxu3 %vm67_vm0, %v31_v27 }
  0x1e   :  { %118 = vmatpush.msra.mxu0 %v39_v26 }
  0x1f   :  { %255 = vmatpush.msra.mxu2 %v39_v26 }
  0x20   :  { %119 = vmatpush.msra.mxu0 %v38_v28 }
  0x21   :  { %256 = vmatpush.msra.mxu2 %v38_v28  ;;  %120 = vmatmul.f32.vlgmr.msra.gmra.mxu0 %v14_v29 }
  0x22   :  { %135 = vmatmul.f32.vlgmr.msra.gmra.mxu2 %v24_v30 }
  0x24   :  { %231 = vmatmul.msk.f32.gmra.mxu1 %vm67_vm0, %v19_v31 }
  0x25   :  { %238 = vmatmul.msk.f32.gmra.mxu3 %vm67_vm0, %v33_v32 }
  0x29   :  { %123 = vmatmul.f32.gmra.mxu0 %v16_v33 }
  0x2a   :  { %138 = vmatmul.f32.gmra.mxu2 %v26_v34 }
  0x2c   :  { %232 = vmatmul.msk.f32.gmra.mxu1 %vm67_vm0, %v21_v35 }
  0x2d   :  { %239 = vmatmul.msk.f32.gmra.mxu3 %vm67_vm0, %v35_v36 }
  0x31   :  { %126 = vmatmul.f32.gmra.mxu0 %v18_v37 }
  0x32   :  { %141 = vmatmul.f32.gmra.mxu2 %v28_v38 }
  0x34   :  { %233 = vmatmul.msk.f32.gmra.mxu1 %vm67_vm0, %v23_v39 }
  0x35   :  { %240 = vmatmul.msk.f32.gmra.mxu3 %vm67_vm0, %v37_v40 }
  0x39   :  { %129 = vmatmul.f32.gmra.mxu0 %v20_v41 }
  0x3a   :  { %144 = vmatmul.f32.gmra.mxu2 %v30_v42 }
  0x3c   :  { %234 = vmatmul.msk.f32.gmra.mxu1 %vm67_vm0, %v25_v43 }
  0x41   :  { %132 = vmatmul.f32.gmra.mxu0 %v22_v44 }
  0x42   :  { %147 = vmatmul.f32.gmra.mxu2 %v32_v45 }
  0x44   :  { %235 = vmatmul.msk.f32.gmra.mxu1 %vm67_vm0, %v27_v46 }
  0x4a   :  { %150 = vmatmul.f32.gmra.mxu2 %v34_v47 }
  0x52   :  { %153 = vmatmul.f32.gmra.mxu2 %v36_v48 }
  0x91   :  { %v174_v49 = vpop.f32.mrf.mxu1 }
  0x98   :  { %v195_v57 = vpop.f32.mrf.mxu3 }
  0x99   :  { %v177_v50 = vpop.f32.mrf.mxu1 }
  0x9e   :  { %v121_v51 = vpop.f32.mrf.mxu0 }
  0x9f   :  { %v122_v4 = vadd.f32 %v266_v1, %v121_v51 }
  0xa0   :  { %v198_v61 = vpop.f32.mrf.mxu3 }
  0xa1   :  { %v180_v52 = vpop.f32.mrf.mxu1  ;;  %v175_v11 = vadd.f32 %v174_v49, %v122_v4 }
  0xa5   :  { %v136_v53 = vpop.f32.mrf.mxu2 }
  0xa6   :  { %v124_v54 = vpop.f32.mrf.mxu0  ;;  %v137_v30 = vadd.f32 %v266_v1, %v136_v53 }
  0xa7   :  { %v125_v18 = vadd.f32 %v266_v1, %v124_v54 }
  0xa8   :  { %v201_v2 = vpop.f32.mrf.mxu3 }
  0xa9   :  { %v183_v55 = vpop.f32.mrf.mxu1  ;;  %v178_v25 = vadd.f32 %v177_v50, %v125_v18 }
  0xad   :  { %v139_v56 = vpop.f32.mrf.mxu2 }
  0xae   :  { %v127_v59 = vpop.f32.mrf.mxu0  ;;  %v140_v7 = vadd.f32 %v266_v1, %v139_v56 }
  0xaf   :  { %v128_v31 = vadd.f32 %v266_v1, %v127_v59 }
  0xb0   :  { %v204_v17 = vpop.f32.mrf.mxu3 }
  0xb1   :  { %v186_v58 = vpop.f32.mrf.mxu1  ;;  %v181_v39 = vadd.f32 %v180_v52, %v128_v31 }
  0xb5   :  { %v142_v60 = vpop.f32.mrf.mxu2 }
  0xb6   :  { %v130_v63 = vpop.f32.mrf.mxu0  ;;  %v143_v19 = vadd.f32 %v266_v1, %v142_v60 }
  0xb7   :  { %v131_v3 = vadd.f32 %v266_v1, %v130_v63 }
  0xb8   :  { %v196_v26 = vadd.f32 %v195_v57, %v143_v19  ;;  %v207_v35 = vpop.f32.mrf.mxu3 }
  0xb9   :  { %v189_v62 = vpop.f32.mrf.mxu1  ;;  %v184_v8 = vadd.f32 %v183_v55, %v131_v3 }
  0xba   :  { %v190_v36 = vadd.f32 %v189_v62, %v137_v30 }
  0xbb   :  { %v210_v14 = vmax.f32 %v175_v11, %v184_v8 }
  0xbc   :  { %v212_v42 = vmax.f32 %v181_v39, %v190_v36 }
  0xbd   :  { %v145_v0 = vpop.f32.mrf.mxu2 }
  0xbe   :  { %v133_v10 = vpop.f32.mrf.mxu0  ;;  %v146_v32 = vadd.f32 %v266_v1, %v145_v0 }
  0xbf   :  { %v134_v15 = vadd.f32 %v266_v1, %v133_v10 }
  0xc0   :  { %v199_v40 = vadd.f32 %v198_v61, %v146_v32 }
  0xc1   :  { %v192_v5 = vpop.f32.mrf.mxu1  ;;  %v187_v22 = vadd.f32 %v186_v58, %v134_v15 }
  0xc2   :  { %v193_v12 = vadd.f32 %v192_v5, %v140_v7 }
  0xc3   :  { %v211_v28 = vmax.f32 %v178_v25, %v187_v22 }
  0xc5   :  { %v148_v6 = vpop.f32.mrf.mxu2 }
  0xc6   :  { %v149_v9 = vadd.f32 %v266_v1, %v148_v6 }
  0xc8   :  { %v202_v13 = vadd.f32 %v201_v2, %v149_v9 }
  0xca   :  { %v213_v16 = vmax.f32 %v193_v12, %v202_v13 }
  0xcc   :  { %v216_v20 = vmax.f32 %v210_v14, %v213_v16 }
  0xcd   :  { %v151_v21 = vpop.f32.mrf.mxu2 }
  0xce   :  { %v219_v23 = vmax.f32 %v216_v20, 0.0  ;;  %v152_v24 = vadd.f32 %v266_v1, %v151_v21 }
  0xd0   :  { %222 = vst [vmem:[%s461_s3] sm:$0xff] %v219_v23  ;;  %v205_v27 = vadd.f32 %v204_v17, %v152_v24 }
  0xd2   :  { %v214_v29 = vmax.f32 %v196_v26, %v205_v27 }
  0xd4   :  { %v217_v33 = vmax.f32 %v211_v28, %v214_v29 }
  0xd5   :  { %v154_v34 = vpop.f32.mrf.mxu2 }
  0xd6   :  { %v220_v37 = vmax.f32 %v217_v33, 0.0  ;;  %v155_v38 = vadd.f32 %v266_v1, %v154_v34 }
  0xd8   :  { %223 = vst [vmem:[%s461_s3 + $0x8] sm:$0xff] %v220_v37  ;;  %v208_v41 = vadd.f32 %v207_v35, %v155_v38 }
  0xda   :  { %v215_v43 = vmax.f32 %v199_v40, %v208_v41 }
  0xdc   :  { %v218_v44 = vmax.f32 %v212_v42, %v215_v43 }
  0xde   :  { %v221_v45 = vmax.f32 %v218_v44, 0.0 }
  0xe0   :  { %224 = vst [vmem:[%s461_s3 + $0x10] sm:$0xff] %v221_v45 }

// kernel: net_forward.8
= control target key start
LH: loop header
LB: loop body
LE: loop exit
PB: predicated region body
PF: predicated region fallthrough
CT: control target
= control target key end

     0   :  { %s247_s1 = inlined_call_operand.vmem [shape: f32[128,128], index: 1, kind: input, shape index: {}]   ;;  %s248_s3 = inlined_call_operand.vmem [shape: f32[128,128], index: 3, kind: input, shape index: {}]   ;;  %s249_s2 = inlined_call_operand.vmem [shape: f32[1,128], index: 2, kind: input, shape index: {}]   ;;  %s250_s0 = inlined_call_operand.vmem [shape: f32[2,128], index: 0, kind: input, shape index: {}]   ;;  %s251_s4 = inlined_call_operand.vmem [shape: f32[1,128], index: 4, kind: input, shape index: {}]   ;;  %s252_s5 = inlined_call_operand.vmem [shape: f32[2,128], index: 5, kind: output, shape index: {}]  }
   0x1   :  { %v36_v0 = vld [vmem:[%s247_s1 + $0x78] sm:$0xff]  ;;  %v35_v1 = vld [vmem:[%s247_s1 + $0x70] sm:$0xff]  ;;  %v34_v2 = vld [vmem:[%s247_s1 + $0x68] sm:$0xff] }
   0x2   :  { %41 = vmatpush.msra.mxu0 %v36_v0  ;;  %v33_v3 = vld [vmem:[%s247_s1 + $0x60] sm:$0xff]  ;;  %v77_v4 = vld [vmem:[%s248_s3 + $0x78] sm:$0xff]  ;;  %v76_v6 = vld [vmem:[%s248_s3 + $0x70] sm:$0xff] }
   0x3   :  { %v32_v5 = vld [vmem:[%s247_s1 + $0x58] sm:$0xff]  ;;  %82 = vmatpush.msra.mxu1 %v77_v4  ;;  %v75_v7 = vld [vmem:[%s248_s3 + $0x68] sm:$0xff]  ;;  %v31_v8 = vld [vmem:[%s247_s1 + $0x50] sm:$0xff] }
   0x4   :  { %42 = vmatpush.msra.mxu0 %v35_v1  ;;  %v74_v9 = vld [vmem:[%s248_s3 + $0x60] sm:$0xff]  ;;  %v30_v10 = vld [vmem:[%s247_s1 + $0x48] sm:$0xff]  ;;  %v73_v11 = vld [vmem:[%s248_s3 + $0x58] sm:$0xff] }
   0x5   :  { %83 = vmatpush.msra.mxu1 %v76_v6  ;;  %v29_v12 = vld [vmem:[%s247_s1 + $0x40] sm:$0xff]  ;;  %v72_v13 = vld [vmem:[%s248_s3 + $0x50] sm:$0xff]  ;;  %v28_v14 = vld [vmem:[%s247_s1 + $0x38] sm:$0xff] }
   0x6   :  { %43 = vmatpush.msra.mxu0 %v34_v2  ;;  %v71_v15 = vld [vmem:[%s248_s3 + $0x48] sm:$0xff]  ;;  %v27_v16 = vld [vmem:[%s247_s1 + $0x30] sm:$0xff]  ;;  %v70_v17 = vld [vmem:[%s248_s3 + $0x40] sm:$0xff] }
   0x7   :  { %84 = vmatpush.msra.mxu1 %v75_v7  ;;  %v26_v18 = vld [vmem:[%s247_s1 + $0x28] sm:$0xff]  ;;  %v69_v19 = vld [vmem:[%s248_s3 + $0x38] sm:$0xff]  ;;  %v25_v20 = vld [vmem:[%s247_s1 + $0x20] sm:$0xff] }
   0x8   :  { %44 = vmatpush.msra.mxu0 %v33_v3  ;;  %v68_v21 = vld [vmem:[%s248_s3 + $0x30] sm:$0xff]  ;;  %v24_v22 = vld [vmem:[%s247_s1 + $0x18] sm:$0xff]  ;;  %v67_v23 = vld [vmem:[%s248_s3 + $0x28] sm:$0xff] }
   0x9   :  { %85 = vmatpush.msra.mxu1 %v74_v9  ;;  %v23_v24 = vld [vmem:[%s247_s1 + $0x10] sm:$0xff]  ;;  %v66_v25 = vld [vmem:[%s248_s3 + $0x20] sm:$0xff]  ;;  %v22_v26 = vld [vmem:[%s247_s1 + $0x8] sm:$0xff] }
   0xa   :  { %45 = vmatpush.msra.mxu0 %v32_v5  ;;  %v65_v27 = vld [vmem:[%s248_s3 + $0x18] sm:$0xff]  ;;  %v21_v28 = vld [vmem:[%s247_s1] sm:$0xff]  ;;  %v64_v30 = vld [vmem:[%s248_s3 + $0x10] sm:$0xff] }
   0xb   :  { %86 = vmatpush.msra.mxu1 %v73_v11  ;;  %v20_v29 = vld [vmem:[%s250_s0] sm:$0x3]  ;;  %v63_v31 = vld [vmem:[%s248_s3 + $0x8] sm:$0xff] }
   0xc   :  { %46 = vmatpush.msra.mxu0 %v31_v8  ;;  %v62_v32 = vld [vmem:[%s248_s3] sm:$0xff] }
   0xd   :  { %87 = vmatpush.msra.mxu1 %v72_v13  ;;  %v107_v33 = vld [vmem:[%s249_s2] ss:$0 sm:$0xff] }
   0xe   :  { %47 = vmatpush.msra.mxu0 %v30_v10  ;;  %v108_v37 = vld [vmem:[%s251_s4] ss:$0 sm:$0xff] }
   0xf   :  { %88 = vmatpush.msra.mxu1 %v71_v15 }
  0x10   :  { %48 = vmatpush.msra.mxu0 %v29_v12 }
  0x11   :  { %89 = vmatpush.msra.mxu1 %v70_v17 }
  0x12   :  { %49 = vmatpush.msra.mxu0 %v28_v14 }
  0x13   :  { %90 = vmatpush.msra.mxu1 %v69_v19 }
  0x14   :  { %50 = vmatpush.msra.mxu0 %v27_v16 }
  0x15   :  { %91 = vmatpush.msra.mxu1 %v68_v21 }
  0x16   :  { %51 = vmatpush.msra.mxu0 %v26_v18 }
  0x17   :  { %92 = vmatpush.msra.mxu1 %v67_v23 }
  0x18   :  { %52 = vmatpush.msra.mxu0 %v25_v20 }
  0x19   :  { %93 = vmatpush.msra.mxu1 %v66_v25 }
  0x1a   :  { %53 = vmatpush.msra.mxu0 %v24_v22 }
  0x1b   :  { %94 = vmatpush.msra.mxu1 %v65_v27 }
  0x1c   :  { %54 = vmatpush.msra.mxu0 %v23_v24 }
  0x1d   :  { %95 = vmatpush.msra.mxu1 %v64_v30 }
  0x1e   :  { %55 = vmatpush.msra.mxu0 %v22_v26 }
  0x1f   :  { %96 = vmatpush.msra.mxu1 %v63_v31 }
  0x20   :  { %56 = vmatpush.msra.mxu0 %v21_v28 }
  0x21   :  { %57 = vmatmul.f32.vlgmr.msra.gmra.mxu0 %v20_v29  ;;  %97 = vmatpush.msra.mxu1 %v62_v32 }
  0x9e   :  { %v58_v34 = vpop.f32.mrf.mxu0 }
  0x9f   :  { %v59_v35 = vadd.f32 %v107_v33, %v58_v34 }
  0xa1   :  { %v61_v36 = vmax.f32 %v59_v35, 0.0 }
  0xa3   :  { %98 = vmatmul.f32.vlgmr.msra.gmra.mxu1 %v61_v36 }
 0x120   :  { %v99_v38 = vpop.f32.mrf.mxu1 }
 0x121   :  { %v100_v39 = vadd.f32 %v108_v37, %v99_v38 }
 0x123   :  { %102 = vst [vmem:[%s252_s5] sm:$0x3] %v100_v39 }

// kernel: squeeze.5
= control target key start
LH: loop header
LB: loop body
LE: loop exit
PB: predicated region body
PF: predicated region fallthrough
CT: control target
= control target key end

     0   :  { %vm5_vm0 = vcmask 1041409   ;;  %vm65_vm1 = vcmask 97280   ;;  %vm21_vm2 = vcmask 31744   ;;  %s510_s24 = smov 116   ;;  %s511_s6 = smov 124   ;;  %vm69_vm3 = vcmask 130048   ;;  %s818_s0 = inlined_call_operand.vmem [shape: f32[2,28,28], index: 0, kind: input, shape index: {}]   ;;  %s819_s1 = inlined_call_operand.vmem [shape: f32[2,784], index: 1, kind: output, shape index: {}]  }
   0x1   :  { %v419_v0 = vld [vmem:[%s818_s0 + $0x1b] sm:$0x1]   ;;  %v411_v6 = vld [vmem:[%s818_s0 + $0x9] sm:$0x1]   ;;  %v423_v12 = vld [vmem:[%s818_s0 + $0x4] sm:$0x1]  }
   0x2   :  { %v420_v1 = vld [vmem:[%s818_s0 + $0x3a] sm:$0x2]   ;;  %v412_v7 = vld [vmem:[%s818_s0 + $0x28] sm:$0x2]   ;;  %v424_v14 = vld [vmem:[%s818_s0 + $0x23] sm:$0x2]  }
   0x3   :  { %v58_v2 = vsel %vm5_vm0, %v420_v1, %v419_v0  ;;  %v421_v3 = vld [vmem:[%s818_s0 + $0x1b] sm:$0x1]   ;;  %v413_v8 = vld [vmem:[%s818_s0 + $0x9] sm:$0x1]   ;;  %v14_v10 = vsel %vm5_vm0, %v412_v7, %v411_v6  ;;  %v425_v15 = vld [vmem:[%s818_s0 + $0x4] sm:$0x1]   ;;  %v80_v20 = vsel %vm5_vm0, %v424_v14, %v423_v12 }
   0x4   :  { %v422_v4 = vld [vmem:[%s818_s0 + $0x3a] sm:$0x2]   ;;  %v414_v11 = vld [vmem:[%s818_s0 + $0x28] sm:$0x2]   ;;  %v426_v16 = vld [vmem:[%s818_s0 + $0x23] sm:$0x2]  }
   0x5   :  { %v64_v5 = vsel %vm5_vm0, %v422_v4, %v421_v3  ;;  %v20_v13 = vsel %vm5_vm0, %v414_v11, %v413_v8  ;;  %v415_v18 = vld [vmem:[%s818_s0 + $0x12] sm:$0x1]   ;;  %v86_v21 = vsel %vm5_vm0, %v426_v16, %v425_v15  ;;  %vm43_vm4 = vcmask 64512   ;;  %v427_v26 = vld [vmem:[%s818_s0 + $0xd] sm:$0x1]   ;;  %s512_s19 = smov 112  }
   0x6   :  { %v66_v9 = vsel %vm65_vm1, %v64_v5, %v58_v2  ;;  %v22_v17 = vsel %vm21_vm2, %v20_v13, %v14_v10  ;;  %v416_v19 = vld [vmem:[%s818_s0 + $0x31] sm:$0x2]   ;;  %vm47_vm5 = vcmask 162816   ;;  %v88_v27 = vsel %vm69_vm3, %v86_v21, %v80_v20  ;;  %v428_v28 = vld [vmem:[%s818_s0 + $0x2c] sm:$0x2]   ;;  %s513_s20 = smov 108  }
   0x7   :  { %67 = vrot.lane.b32.xlu1 %v66_v9, %s510_s24  ;;  %23 = vrot.lane.b32.xlu0 %v22_v17, %s511_s6  ;;  %v417_v22 = vld [vmem:[%s818_s0 + $0x12] sm:$0x1]   ;;  %v36_v24 = vsel %vm5_vm0, %v416_v19, %v415_v18  ;;  %v429_v29 = vld [vmem:[%s818_s0 + $0xd] sm:$0x1]   ;;  %v101_v31 = vsel %vm5_vm0, %v428_v28, %v427_v26  ;;  %s514_s29 = smov 120   ;;  %vm25_vm6 = vcmask 195584  }
   0x8   :  { %v418_v23 = vld [vmem:[%s818_s0 + $0x31] sm:$0x2]   ;;  %v430_v30 = vld [vmem:[%s818_s0 + $0x2c] sm:$0x2]   ;;  %v431_v35 = vld [vmem:[%s818_s0 + $0x16] sm:$0x1]  }
   0x9   :  { %v42_v25 = vsel %vm5_vm0, %v418_v23, %v417_v22  ;;  %v107_v32 = vsel %vm5_vm0, %v430_v30, %v429_v29  ;;  %v432_v36 = vld [vmem:[%s818_s0 + $0x35] sm:$0x2]   ;;  %v437_v39 = vld [vmem:[%s818_s0 + $0x11] sm:$0x1]   ;;  %v435_v43 = vld [vmem:[%s818_s0 + $0x8] sm:$0x1]  }
   0xa   :  { %v44_v33 = vsel %vm43_vm4, %v42_v25, %v36_v24  ;;  %v109_v34 = vsel %vm47_vm5, %v107_v32, %v101_v31  ;;  %v433_v37 = vld [vmem:[%s818_s0 + $0x16] sm:$0x1]   ;;  %v438_v40 = vld [vmem:[%s818_s0 + $0x30] sm:$0x2]   ;;  %v123_v41 = vsel %vm5_vm0, %v432_v36, %v431_v35  ;;  %v436_v44 = vld [vmem:[%s818_s0 + $0x27] sm:$0x2]  }
   0xb   :  { %110 = vrot.lane.b32.xlu2 %v109_v34, %s513_s20  ;;  %v434_v38 = vld [vmem:[%s818_s0 + $0x35] sm:$0x2]   ;;  %v156_v45 = vsel %vm5_vm0, %v438_v40, %v437_v39  ;;  %v145_v47 = vsel %vm5_vm0, %v436_v44, %v435_v43  ;;  %s515_s9 = smov 92   ;;  %s516_s10 = smov 104   ;;  %v443_v48 = vld [vmem:[%s818_s0 + $0xc] sm:$0x1]  }
   0xc   :  { %v129_v42 = vsel %vm5_vm0, %v434_v38, %v433_v37  ;;  %s517_s13 = smov 96   ;;  %v444_v49 = vld [vmem:[%s818_s0 + $0x2b] sm:$0x2]   ;;  %v439_v50 = vld [vmem:[%s818_s0 + $0x1a] sm:$0x1]   ;;  %s518_s24 = smov 80  }
   0xd   :  { %v131_v46 = vsel %vm25_vm6, %v129_v42, %v123_v41  ;;  %v440_v51 = vld [vmem:[%s818_s0 + $0x39] sm:$0x2]   ;;  %v441_v52 = vld [vmem:[%s818_s0 + $0x3] sm:$0x1]   ;;  %v188_v54 = vsel %vm5_vm0, %v444_v49, %v443_v48  ;;  %s519_s25 = smov 88   ;;  %s520_s28 = smov 84  }
   0xe   :  { %v442_v53 = vld [vmem:[%s818_s0 + $0x22] sm:$0x2]   ;;  %v167_v55 = vsel %vm5_vm0, %v440_v51, %v439_v50  ;;  %v449_v57 = vld [vmem:[%s818_s0 + $0x10] sm:$0x1]   ;;  %v445_v59 = vld [vmem:[%s818_s0 + $0x15] sm:$0x1]  }
   0xf   :  { %89 = vrot.lane.b32.xlu1 %v88_v27, %s512_s19  ;;  %45 = vrot.lane.b32.xlu0 %v44_v33, %s514_s29  ;;  %v178_v56 = vsel %vm5_vm0, %v442_v53, %v441_v52  ;;  %v450_v58 = vld [vmem:[%s818_s0 + $0x2f] sm:$0x2]   ;;  %v446_v60 = vld [vmem:[%s818_s0 + $0x34] sm:$0x2]   ;;  %s522_s11 = smov 76   ;;  %s523_s14 = smov 68  }
  0x10   :  { %v447_v61 = vld [vmem:[%s818_s0 + $0x7] sm:$0x1]   ;;  %v221_v63 = vsel %vm5_vm0, %v450_v58, %v449_v57  ;;  %v199_v0 = vsel %vm5_vm0, %v446_v60, %v445_v59  ;;  %v455_v2 = vld [vmem:[%s818_s0 + $0xb] sm:$0x1]   ;;  %v451_v4 = vld [vmem:[%s818_s0 + $0x19] sm:$0x1]  }
  0x11   :  { %v448_v62 = vld [vmem:[%s818_s0 + $0x26] sm:$0x2]   ;;  %v456_v3 = vld [vmem:[%s818_s0 + $0x2a] sm:$0x2]   ;;  %v452_v5 = vld [vmem:[%s818_s0 + $0x38] sm:$0x2]  }
  0x12   :  { %v210_v1 = vsel %vm5_vm0, %v448_v62, %v447_v61  ;;  %v453_v6 = vld [vmem:[%s818_s0 + $0x2] sm:$0x1]   ;;  %v253_v8 = vsel %vm5_vm0, %v456_v3, %v455_v2  ;;  %v232_v9 = vsel %vm5_vm0, %v452_v5, %v451_v4  ;;  %s525_s26 = smov 60   ;;  %v461_v11 = vld [vmem:[%s818_s0 + $0xf] sm:$0x1]   ;;  %s526_s29 = smov 56  }
  0x13   :  { %132 = vrot.lane.b32.xlu2 %v131_v46, %s516_s10  ;;  %s521_s10 = smov 64   ;;  %v454_v7 = vld [vmem:[%s818_s0 + $0x21] sm:$0x2]   ;;  %v462_v12 = vld [vmem:[%s818_s0 + $0x2e] sm:$0x2]   ;;  %s528_s12 = smov 48  }
  0x14   :  { %v243_v10 = vsel %vm5_vm0, %v454_v7, %v453_v6  ;;  %v457_v13 = vld [vmem:[%s818_s0 + $0x14] sm:$0x1]   ;;  %v459_v15 = vld [vmem:[%s818_s0 + $0x6] sm:$0x1]   ;;  %v286_v17 = vsel %vm5_vm0, %v462_v12, %v461_v11  ;;  %v467_v20 = vld [vmem:[%s818_s0 + $0xa] sm:$0x1]  }
  0x15   :  { %v458_v14 = vld [vmem:[%s818_s0 + $0x33] sm:$0x2]   ;;  %v460_v16 = vld [vmem:[%s818_s0 + $0x25] sm:$0x2]   ;;  %s529_s15 = smov 40   ;;  %s531_s27 = smov 32  }
  0x16   :  { %v264_v18 = vsel %vm5_vm0, %v458_v14, %v457_v13  ;;  %v275_v19 = vsel %vm5_vm0, %v460_v16, %v459_v15  ;;  %v468_v21 = vld [vmem:[%s818_s0 + $0x29] sm:$0x2]   ;;  %v463_v22 = vld [vmem:[%s818_s0 + $0x18] sm:$0x1]   ;;  %v465_v24 = vld [vmem:[%s818_s0 + $0x1] sm:$0x1]  }
  0x17   :  { %157 = vrot.lane.b32.xlu1 %v156_v45, %s515_s9  ;;  %146 = vrot.lane.b32.xlu0 %v145_v47, %s517_s13  ;;  %v464_v23 = vld [vmem:[%s818_s0 + $0x37] sm:$0x2]   ;;  %v466_v25 = vld [vmem:[%s818_s0 + $0x20] sm:$0x2]   ;;  %v318_v26 = vsel %vm5_vm0, %v468_v21, %v467_v20  ;;  %s532_s30 = smov 28   ;;  %s534_s13 = smov 20  }
  0x18   :  { %v297_v27 = vsel %vm5_vm0, %v464_v23, %v463_v22  ;;  %v308_v28 = vsel %vm5_vm0, %v466_v25, %v465_v24  ;;  %v473_v29 = vld [vmem:[%s818_s0 + $0xe] sm:$0x1]   ;;  %v469_v31 = vld [vmem:[%s818_s0 + $0x13] sm:$0x1]   ;;  %v471_v33 = vld [vmem:[%s818_s0 + $0x5] sm:$0x1]  }
  0x19   :  { %v474_v30 = vld [vmem:[%s818_s0 + $0x2d] sm:$0x2]   ;;  %v470_v32 = vld [vmem:[%s818_s0 + $0x32] sm:$0x2]   ;;  %v472_v34 = vld [vmem:[%s818_s0 + $0x24] sm:$0x2]  }
  0x1a   :  { %v351_v35 = vsel %vm5_vm0, %v474_v30, %v473_v29  ;;  %v329_v36 = vsel %vm5_vm0, %v470_v32, %v469_v31  ;;  %v340_v37 = vsel %vm5_vm0, %v472_v34, %v471_v33  ;;  %v475_v38 = vld [vmem:[%s818_s0 + $0x17] sm:$0x1]   ;;  %s536_s19 = smov 4   ;;  %vm7_vm7 = vcmask 228352   ;;  %v2_v41 = vld [vmem:[%s818_s0] sm:$0x1]  }
  0x1b   :  { %168 = vrot.lane.b32.xlu2 %v167_v55, %s519_s25  ;;  %s524_s25 = smov 52   ;;  %v476_v39 = vld [vmem:[%s818_s0 + $0x36] sm:$0x2]   ;;  %v410_v42 = vld [vmem:[%s818_s0 + $0x1f] sm:$0x2]   ;;  %vm72_vm8 = vcmask 1048480  }
  0x1c   :  { %v362_v40 = vsel %vm5_vm0, %v476_v39, %v475_v38  ;;  %v6_v43 = vsel %vm5_vm0, %v410_v42, %v2_v41  ;;  %vm28_vm9 = vcmask 1048544   ;;  %vm115_vm10 = vcmask 1048416  }
  0x1d   :  { %8 = vst.msk [vmem:[#allocation0] sm:$0x3] %vm7_vm7, %v6_v43   ;;  %vm170_vm11 = vcmask 949952   ;;  %vm94_vm12 = vcmask 1048448   ;;  %vm50_vm13 = vcmask 1048512   ;;  %vm137_vm14 = vcmask 1048384  }
  0x1e   :  { %vm202_vm15 = vcmask 851552   ;;  %vm159_vm0 = vcmask 982752   ;;  %vm300_vm7 = vcmask 490752  }
  0x1f   :  { %189 = vrot.lane.b32.xlu1 %v188_v54, %s518_s24  ;;  %179 = vrot.lane.b32.xlu0 %v178_v56, %s520_s28 }
  0x23   :  { %200 = vrot.lane.b32.xlu2 %v199_v0, %s522_s11  ;;  %s527_s11 = smov 36  }
  0x27   :  { %222 = vrot.lane.b32.xlu1 %v221_v63, %s521_s10  ;;  %211 = vrot.lane.b32.xlu0 %v210_v1, %s523_s14  ;;  %s535_s14 = smov 12  }
  0x2b   :  { %233 = vrot.lane.b32.xlu2 %v232_v9, %s525_s26  ;;  %s530_s26 = smov 24  }
  0x2f   :  { %254 = vrot.lane.b32.xlu1 %v253_v8, %s524_s25  ;;  %244 = vrot.lane.b32.xlu0 %v243_v10, %s526_s29 }
  0x33   :  { %265 = vrot.lane.b32.xlu2 %v264_v18, %s528_s12  ;;  %s533_s12 = smov 8  }
  0x37   :  { %287 = vrot.lane.b32.xlu1 %v286_v17, %s527_s11  ;;  %276 = vrot.lane.b32.xlu0 %v275_v19, %s529_s15 }
  0x3b   :  { %298 = vrot.lane.b32.xlu2 %v297_v27, %s531_s27 }
  0x3f   :  { %319 = vrot.lane.b32.xlu1 %v318_v26, %s530_s26  ;;  %309 = vrot.lane.b32.xlu0 %v308_v28, %s532_s30 }
  0x43   :  { %330 = vrot.lane.b32.xlu2 %v329_v36, %s534_s13 }
  0x47   :  { %352 = vrot.lane.b32.xlu1 %v351_v35, %s533_s12  ;;  %341 = vrot.lane.b32.xlu0 %v340_v37, %s535_s14 }
  0x4b   :  { %363 = vrot.lane.b32.xlu2 %v362_v40, %s536_s19 }
  0x65   :  { %v111_v44 = vpop.permute.xlu2 %110  }
  0x6d   :  { %v133_v45 = vpop.permute.xlu2 %132  }
  0x75   :  { %v169_v47 = vpop.permute.xlu2 %168  }
  0x79   :  { %v68_v46 = vpop.permute.xlu1 %67   ;;  %v24_v48 = vpop.permute.xlu0 %23  }
  0x7a   :  { %71 = vst.msk [vmem:[#allocation0 + $0x30] sm:$0x3] %vm69_vm3, %v68_v46   ;;  %vm191_vm3 = vcmask 884352  }
  0x7b   :  { %74 = vst.msk [vmem:[#allocation0 + $0x28] sm:$0x3] %vm72_vm8, %v68_v46   ;;  %vm213_vm8 = vcmask 785952  }
  0x7c   :  { %27 = vst.msk [vmem:[#allocation0 + $0x10] sm:$0x3] %vm25_vm6, %v24_v48   ;;  %vm224_vm6 = vcmask 753152  }
  0x7d   :  { %30 = vst.msk [vmem:[#allocation0 + $0x8] sm:$0x3] %vm28_vm9, %v24_v48   ;;  %v201_v51 = vpop.permute.xlu2 %200   ;;  %vm256_vm9 = vcmask 654752  }
  0x7e   :  { %117 = vst.msk [vmem:[#allocation0 + $0x10] sm:$0x3] %vm115_vm10, %v111_v44   ;;  %vm332_vm10 = vcmask 392352  }
  0x7f   :  { %136 = vst.msk [vmem:[#allocation0 + $0x28] sm:$0x3] %vm21_vm2, %v133_v45   ;;  %vm148_vm2 = vcmask 1015552  }
  0x80   :  { %172 = vst.msk [vmem:[#allocation0 + $0x28] sm:$0x3] %vm170_vm11, %v169_v47   ;;  %vm246_vm11 = vcmask 687552  }
  0x81   :  { %v405_v49 = vld [vmem:[#allocation0 + $0x30] sm:$0x3]  ;;  %v90_v50 = vpop.permute.xlu1 %89   ;;  %v46_v52 = vpop.permute.xlu0 %45  }
  0x82   :  { %482 = vst [vmem:[%s819_s1 + $0xc] sm:$0x3] %v405_v49 }
  0x83   :  { %93 = vst.msk [vmem:[#allocation0 + $0x8] sm:$0x3] %vm65_vm1, %v90_v50   ;;  %vm235_vm1 = vcmask 720352  }
  0x84   :  { %95 = vst.msk [vmem:[#allocation0] sm:$0x3] %vm94_vm12, %v90_v50   ;;  %vm289_vm12 = vcmask 523552  }
  0x85   :  { %49 = vst.msk [vmem:[#allocation0 + $0x20] sm:$0x3] %vm47_vm5, %v46_v52   ;;  %v234_v54 = vpop.permute.xlu2 %233   ;;  %vm181_vm5 = vcmask 917152  }
  0x86   :  { %52 = vst.msk [vmem:[#allocation0 + $0x18] sm:$0x3] %vm50_vm13, %v46_v52   ;;  %vm278_vm13 = vcmask 556352  }
  0x87   :  { %114 = vst.msk [vmem:[#allocation0 + $0x18] sm:$0x3] %vm43_vm4, %v111_v44   ;;  %vm267_vm4 = vcmask 621952  }
  0x88   :  { %139 = vst.msk [vmem:[#allocation0 + $0x20] sm:$0x3] %vm137_vm14, %v133_v45   ;;  %vm365_vm14 = vcmask 261152  }
  0x89   :  { %v158_v53 = vpop.permute.xlu1 %157   ;;  %204 = vst.msk [vmem:[#allocation0 + $0x20] sm:$0x3] %vm202_vm15, %v201_v51   ;;  %v147_v55 = vpop.permute.xlu0 %146   ;;  %vm321_vm15 = vcmask 425152  }
  0x8a   :  { %161 = vst.msk [vmem:[#allocation0 + $0x18] sm:$0x3] %vm159_vm0, %v158_v53   ;;  %vm311_vm0 = vcmask 457952  }
  0x8b   :  { %237 = vst.msk [vmem:[#allocation0 + $0x28] sm:$0x3] %vm235_vm1, %v234_v54   ;;  %vm354_vm1 = vcmask 293952  }
  0x8c   :  { %150 = vst.msk [vmem:[#allocation0 + $0x8] sm:$0x3] %vm148_vm2, %v147_v55   ;;  %vm343_vm2 = vcmask 326752  }
  0x8d   :  { %v266_v57 = vpop.permute.xlu2 %265  }
  0x8e   :  { %269 = vst.msk [vmem:[#allocation0 + $0x20] sm:$0x3] %vm267_vm4, %v266_v57  }
  0x91   :  { %v190_v56 = vpop.permute.xlu1 %189   ;;  %v180_v58 = vpop.permute.xlu0 %179  }
  0x92   :  { %193 = vst.msk [vmem:[#allocation0 + $0x10] sm:$0x3] %vm191_vm3, %v190_v56  }
  0x93   :  { %182 = vst.msk [vmem:[#allocation0] sm:$0x3] %vm181_vm5, %v180_v58  }
  0x95   :  { %v299_v60 = vpop.permute.xlu2 %298  }
  0x96   :  { %302 = vst.msk [vmem:[#allocation0 + $0x28] sm:$0x3] %vm300_vm7, %v299_v60  }
  0x99   :  { %v223_v59 = vpop.permute.xlu1 %222   ;;  %v212_v61 = vpop.permute.xlu0 %211  }
  0x9a   :  { %226 = vst.msk [vmem:[#allocation0 + $0x18] sm:$0x3] %vm224_vm6, %v223_v59  }
  0x9b   :  { %215 = vst.msk [vmem:[#allocation0 + $0x8] sm:$0x3] %vm213_vm8, %v212_v61  }
  0x9d   :  { %v331_v63 = vpop.permute.xlu2 %330  }
  0x9e   :  { %334 = vst.msk [vmem:[#allocation0 + $0x20] sm:$0x3] %vm332_vm10, %v331_v63  }
  0xa1   :  { %v255_v62 = vpop.permute.xlu1 %254   ;;  %v245_v0 = vpop.permute.xlu0 %244  }
  0xa2   :  { %258 = vst.msk [vmem:[#allocation0 + $0x10] sm:$0x3] %vm256_vm9, %v255_v62  }
  0xa3   :  { %247 = vst.msk [vmem:[#allocation0] sm:$0x3] %vm246_vm11, %v245_v0  }
  0xa5   :  { %v364_v2 = vpop.permute.xlu2 %363   ;;  %v393_v3 = vld [vmem:[#allocation0 + $0x20] sm:$0x3] }
  0xa6   :  { %480 = vst [vmem:[%s819_s1 + $0x8] sm:$0x3] %v393_v3 }
  0xa7   :  { %367 = vst.msk [vmem:[#allocation0 + $0x28] sm:$0x3] %vm365_vm14, %v364_v2  }
  0xa9   :  { %v288_v1 = vpop.permute.xlu1 %287   ;;  %v277_v4 = vpop.permute.xlu0 %276  }
  0xaa   :  { %291 = vst.msk [vmem:[#allocation0 + $0x18] sm:$0x3] %vm289_vm12, %v288_v1  }
  0xab   :  { %280 = vst.msk [vmem:[#allocation0 + $0x8] sm:$0x3] %vm278_vm13, %v277_v4  }
  0xae   :  { %v399_v7 = vld [vmem:[#allocation0 + $0x28] sm:$0x3] }
  0xaf   :  { %481 = vst [vmem:[%s819_s1 + $0xa] sm:$0x3] %v399_v7 }
  0xb1   :  { %v320_v5 = vpop.permute.xlu1 %319   ;;  %v310_v6 = vpop.permute.xlu0 %309  }
  0xb2   :  { %323 = vst.msk [vmem:[#allocation0 + $0x10] sm:$0x3] %vm321_vm15, %v320_v5  }
  0xb3   :  { %312 = vst.msk [vmem:[#allocation0] sm:$0x3] %vm311_vm0, %v310_v6  }
  0xb9   :  { %v381_v8 = vld [vmem:[#allocation0 + $0x10] sm:$0x3]  ;;  %v353_v9 = vpop.permute.xlu1 %352   ;;  %v342_v11 = vpop.permute.xlu0 %341  }
  0xba   :  { %478 = vst [vmem:[%s819_s1 + $0x4] sm:$0x3] %v381_v8  ;;  %v370_v10 = vld [vmem:[#allocation0] sm:$0x3] }
  0xbb   :  { %356 = vst.msk [vmem:[#allocation0 + $0x18] sm:$0x3] %vm354_vm1, %v353_v9  }
  0xbc   :  { %373 = vst [vmem:[%s819_s1] sm:$0x3] %v370_v10 }
  0xbd   :  { %345 = vst.msk [vmem:[#allocation0 + $0x8] sm:$0x3] %vm343_vm2, %v342_v11  }
  0xc2   :  { %v387_v12 = vld [vmem:[#allocation0 + $0x18] sm:$0x3] }
  0xc3   :  { %479 = vst [vmem:[%s819_s1 + $0x6] sm:$0x3] %v387_v12 }
  0xc4   :  { %v375_v13 = vld [vmem:[#allocation0 + $0x8] sm:$0x3] }
  0xc5   :  { %477 = vst [vmem:[%s819_s1 + $0x2] sm:$0x3] %v375_v13 }

// kernel: net_forward.9
= control target key start
LH: loop header
LB: loop body
LE: loop exit
PB: predicated region body
PF: predicated region fallthrough
CT: control target
= control target key end

     0   :  { %vm599_vm0 = vcmask 1040384   ;;  %vm166_vm1 = vcmask 203776   ;;  %s2265_s1 = inlined_call_operand.vmem [shape: f32[25,128], index: 1, kind: input, shape index: {}]   ;;  %s2266_s0 = inlined_call_operand.vmem [shape: f32[1152,25], index: 0, kind: input, shape index: {}]   ;;  %s2267_s2 = inlined_call_operand.vmem [shape: f32[1,128], index: 2, kind: input, shape index: {}]   ;;  %s2268_s3 = inlined_call_operand.vmem [shape: f32[288,128], index: 3, kind: output, shape index: {}]  }
   0x1   :  { %v161_v0 = vld [vmem:[%s2265_s1 + $0x18] sm:$0x1]  ;;  %v160_v1 = vld [vmem:[%s2265_s1 + $0x10] sm:$0xff]  ;;  %v159_v2 = vld [vmem:[%s2265_s1 + $0x8] sm:$0xff] }
   0x2   :  { %1382 = vmatpush.msk.msra.mxu2 %vm599_vm0, %v161_v0  ;;  %1383 = vmatpush.msk.msra.mxu3 %vm599_vm0, %v161_v0  ;;  %v158_v3 = vld [vmem:[%s2265_s1] sm:$0xff]  ;;  %v87_v8 = vld [vmem:[%s2266_s0 + $0x248] sm:$0xff]  ;;  %v88_v12 = vld [vmem:[%s2266_s0 + $0x250] sm:$0xff] }
   0x3   :  { %1236 = vmatpush.msk.msra.mxu0 %vm599_vm0, %v161_v0  ;;  %1381 = vmatpush.msk.msra.mxu1 %vm599_vm0, %v161_v0  ;;  %v86_v4 = vld [vmem:[%s2266_s0 + $0x240] sm:$0xff]  ;;  %v123_v9 = vld [vmem:[%s2266_s0 + $0x368] sm:$0xff]  ;;  %v124_v13 = vld [vmem:[%s2266_s0 + $0x370] sm:$0xff] }
   0x4   :  { %1385 = vmatpush.msra.mxu2 %v160_v1  ;;  %1386 = vmatpush.msra.mxu3 %v160_v1  ;;  %v122_v5 = vld [vmem:[%s2266_s0 + $0x360] sm:$0xff]  ;;  %v15_v10 = vld [vmem:[%s2266_s0 + $0x8] sm:$0xff]  ;;  %v16_v14 = vld [vmem:[%s2266_s0 + $0x10] sm:$0xff] }
   0x5   :  { %616 = vmatpush.msra.mxu0 %v160_v1  ;;  %1384 = vmatpush.msra.mxu1 %v160_v1  ;;  %v14_v6 = vld [vmem:[%s2266_s0] sm:$0xff]  ;;  %v51_v11 = vld [vmem:[%s2266_s0 + $0x128] sm:$0xff]  ;;  %v52_v15 = vld [vmem:[%s2266_s0 + $0x130] sm:$0xff] }
   0x6   :  { %1388 = vmatpush.msra.mxu2 %v159_v2  ;;  %1389 = vmatpush.msra.mxu3 %v159_v2  ;;  %v50_v7 = vld [vmem:[%s2266_s0 + $0x120] sm:$0xff]  ;;  %v89_v16 = vld [vmem:[%s2266_s0 + $0x258] sm:$0xff]  ;;  %v91_v24 = vld [vmem:[%s2266_s0 + $0x268] sm:$0xff] }
   0x7   :  { %617 = vmatpush.msra.mxu0 %v159_v2  ;;  %1387 = vmatpush.msra.mxu1 %v159_v2  ;;  %v125_v17 = vld [vmem:[%s2266_s0 + $0x378] sm:$0xff]  ;;  %v90_v20 = vld [vmem:[%s2266_s0 + $0x260] sm:$0xff]  ;;  %v127_v25 = vld [vmem:[%s2266_s0 + $0x388] sm:$0xff] }
   0x8   :  { %1391 = vmatpush.msra.mxu2 %v158_v3  ;;  %1392 = vmatpush.msra.mxu3 %v158_v3  ;;  %v17_v18 = vld [vmem:[%s2266_s0 + $0x18] sm:$0xff]  ;;  %v126_v21 = vld [vmem:[%s2266_s0 + $0x380] sm:$0xff]  ;;  %v19_v26 = vld [vmem:[%s2266_s0 + $0x28] sm:$0xff] }
   0x9   :  { %1309 = vmatmul.msk.f32.vlgmr.msra.gmra.mxu2 %vm166_vm1, %v86_v4  ;;  %1345 = vmatmul.msk.f32.vlgmr.msra.gmra.mxu3 %vm166_vm1, %v122_v5  ;;  %v53_v19 = vld [vmem:[%s2266_s0 + $0x138] sm:$0xff]  ;;  %v18_v22 = vld [vmem:[%s2266_s0 + $0x20] sm:$0xff]  ;;  %v55_v27 = vld [vmem:[%s2266_s0 + $0x148] sm:$0xff] }
   0xa   :  { %618 = vmatpush.msra.mxu0 %v158_v3  ;;  %1390 = vmatpush.msra.mxu1 %v158_v3  ;;  %v54_v23 = vld [vmem:[%s2266_s0 + $0x140] sm:$0xff]  ;;  %v92_v28 = vld [vmem:[%s2266_s0 + $0x270] sm:$0xff]  ;;  %v93_v32 = vld [vmem:[%s2266_s0 + $0x278] sm:$0xff] }
   0xb   :  { %1237 = vmatmul.msk.f32.vlgmr.msra.gmra.mxu0 %vm166_vm1, %v14_v6  ;;  %1273 = vmatmul.msk.f32.vlgmr.msra.gmra.mxu1 %vm166_vm1, %v50_v7  ;;  %v128_v29 = vld [vmem:[%s2266_s0 + $0x390] sm:$0xff]  ;;  %v129_v33 = vld [vmem:[%s2266_s0 + $0x398] sm:$0xff]  ;;  %v94_v36 = vld [vmem:[%s2266_s0 + $0x280] sm:$0xff] }
   0xc   :  { %v20_v30 = vld [vmem:[%s2266_s0 + $0x30] sm:$0xff]  ;;  %v21_v34 = vld [vmem:[%s2266_s0 + $0x38] sm:$0xff]  ;;  %v130_v37 = vld [vmem:[%s2266_s0 + $0x3a0] sm:$0xff] }
   0xd   :  { %v56_v31 = vld [vmem:[%s2266_s0 + $0x150] sm:$0xff]  ;;  %v57_v35 = vld [vmem:[%s2266_s0 + $0x158] sm:$0xff]  ;;  %v22_v38 = vld [vmem:[%s2266_s0 + $0x40] sm:$0xff] }
   0xe   :  { %v58_v39 = vld [vmem:[%s2266_s0 + $0x160] sm:$0xff]  ;;  %v95_v40 = vld [vmem:[%s2266_s0 + $0x288] sm:$0xff]  ;;  %v96_v44 = vld [vmem:[%s2266_s0 + $0x290] sm:$0xff] }
   0xf   :  { %v131_v41 = vld [vmem:[%s2266_s0 + $0x3a8] sm:$0xff]  ;;  %v132_v45 = vld [vmem:[%s2266_s0 + $0x3b0] sm:$0xff]  ;;  %v97_v48 = vld [vmem:[%s2266_s0 + $0x298] sm:$0xff] }
  0x10   :  { %v23_v42 = vld [vmem:[%s2266_s0 + $0x48] sm:$0xff]  ;;  %v24_v46 = vld [vmem:[%s2266_s0 + $0x50] sm:$0xff]  ;;  %v133_v49 = vld [vmem:[%s2266_s0 + $0x3b8] sm:$0xff] }
  0x11   :  { %1310 = vmatmul.msk.f32.gmra.mxu2 %vm166_vm1, %v87_v8  ;;  %1346 = vmatmul.msk.f32.gmra.mxu3 %vm166_vm1, %v123_v9  ;;  %v59_v43 = vld [vmem:[%s2266_s0 + $0x168] sm:$0xff]  ;;  %v60_v47 = vld [vmem:[%s2266_s0 + $0x170] sm:$0xff]  ;;  %v25_v50 = vld [vmem:[%s2266_s0 + $0x58] sm:$0xff] }
  0x12   :  { %v61_v51 = vld [vmem:[%s2266_s0 + $0x178] sm:$0xff]  ;;  %v98_v52 = vld [vmem:[%s2266_s0 + $0x2a0] sm:$0xff]  ;;  %v99_v56 = vld [vmem:[%s2266_s0 + $0x2a8] sm:$0xff] }
  0x13   :  { %1238 = vmatmul.msk.f32.gmra.mxu0 %vm166_vm1, %v15_v10  ;;  %1274 = vmatmul.msk.f32.gmra.mxu1 %vm166_vm1, %v51_v11  ;;  %v134_v53 = vld [vmem:[%s2266_s0 + $0x3c0] sm:$0xff]  ;;  %v135_v57 = vld [vmem:[%s2266_s0 + $0x3c8] sm:$0xff]  ;;  %v100_v60 = vld [vmem:[%s2266_s0 + $0x2b0] sm:$0xff] }
  0x14   :  { %v26_v54 = vld [vmem:[%s2266_s0 + $0x60] sm:$0xff]  ;;  %v27_v58 = vld [vmem:[%s2266_s0 + $0x68] sm:$0xff]  ;;  %v136_v61 = vld [vmem:[%s2266_s0 + $0x3d0] sm:$0xff] }
  0x15   :  { %v62_v55 = vld [vmem:[%s2266_s0 + $0x180] sm:$0xff]  ;;  %v63_v59 = vld [vmem:[%s2266_s0 + $0x188] sm:$0xff]  ;;  %v28_v62 = vld [vmem:[%s2266_s0 + $0x70] sm:$0xff] }
  0x16   :  { %v64_v63 = vld [vmem:[%s2266_s0 + $0x190] sm:$0xff]  ;;  %v101_v0 = vld [vmem:[%s2266_s0 + $0x2b8] sm:$0xff]  ;;  %v1686_v4 = vld [vmem:[%s2267_s2] ss:$0 sm:$0xff] }
  0x17   :  { %v137_v1 = vld [vmem:[%s2266_s0 + $0x3d8] sm:$0xff]  ;;  %v102_v5 = vld [vmem:[%s2266_s0 + $0x2c0] sm:$0xff] }
  0x18   :  { %v29_v2 = vld [vmem:[%s2266_s0 + $0x78] sm:$0xff]  ;;  %v138_v6 = vld [vmem:[%s2266_s0 + $0x3e0] sm:$0xff] }
  0x19   :  { %1311 = vmatmul.msk.f32.gmra.mxu2 %vm166_vm1, %v88_v12  ;;  %1347 = vmatmul.msk.f32.gmra.mxu3 %vm166_vm1, %v124_v13  ;;  %v65_v3 = vld [vmem:[%s2266_s0 + $0x198] sm:$0xff]  ;;  %v30_v9 = vld [vmem:[%s2266_s0 + $0x80] sm:$0xff] }
  0x1a   :  { %v66_v10 = vld [vmem:[%s2266_s0 + $0x1a0] sm:$0xff] }
  0x1b   :  { %1239 = vmatmul.msk.f32.gmra.mxu0 %vm166_vm1, %v16_v14  ;;  %1275 = vmatmul.msk.f32.gmra.mxu1 %vm166_vm1, %v52_v15 }
  0x21   :  { %1312 = vmatmul.msk.f32.gmra.mxu2 %vm166_vm1, %v89_v16  ;;  %1348 = vmatmul.msk.f32.gmra.mxu3 %vm166_vm1, %v125_v17 }
  0x23   :  { %1240 = vmatmul.msk.f32.gmra.mxu0 %vm166_vm1, %v17_v18  ;;  %1276 = vmatmul.msk.f32.gmra.mxu1 %vm166_vm1, %v53_v19  ;;  %v103_v18 = vld [vmem:[%s2266_s0 + $0x2c8] sm:$0xff] }
  0x24   :  { %v139_v19 = vld [vmem:[%s2266_s0 + $0x3e8] sm:$0xff] }
  0x29   :  { %1313 = vmatmul.msk.f32.gmra.mxu2 %vm166_vm1, %v90_v20  ;;  %1349 = vmatmul.msk.f32.gmra.mxu3 %vm166_vm1, %v126_v21 }
  0x2b   :  { %1241 = vmatmul.msk.f32.gmra.mxu0 %vm166_vm1, %v18_v22  ;;  %1277 = vmatmul.msk.f32.gmra.mxu1 %vm166_vm1, %v54_v23  ;;  %v31_v23 = vld [vmem:[%s2266_s0 + $0x88] sm:$0xff] }
  0x31   :  { %1314 = vmatmul.msk.f32.gmra.mxu2 %vm166_vm1, %v91_v24  ;;  %1350 = vmatmul.msk.f32.gmra.mxu3 %vm166_vm1, %v127_v25  ;;  %v67_v24 = vld [vmem:[%s2266_s0 + $0x1a8] sm:$0xff] }
  0x33   :  { %1242 = vmatmul.msk.f32.gmra.mxu0 %vm166_vm1, %v19_v26  ;;  %1278 = vmatmul.msk.f32.gmra.mxu1 %vm166_vm1, %v55_v27 }
  0x39   :  { %1315 = vmatmul.msk.f32.gmra.mxu2 %vm166_vm1, %v92_v28  ;;  %1351 = vmatmul.msk.f32.gmra.mxu3 %vm166_vm1, %v128_v29 }
  0x3b   :  { %1243 = vmatmul.msk.f32.gmra.mxu0 %vm166_vm1, %v20_v30  ;;  %1279 = vmatmul.msk.f32.gmra.mxu1 %vm166_vm1, %v56_v31 }
  0x41   :  { %1316 = vmatmul.msk.f32.gmra.mxu2 %vm166_vm1, %v93_v32  ;;  %1352 = vmatmul.msk.f32.gmra.mxu3 %vm166_vm1, %v129_v33 }
  0x43   :  { %1244 = vmatmul.msk.f32.gmra.mxu0 %vm166_vm1, %v21_v34  ;;  %1280 = vmatmul.msk.f32.gmra.mxu1 %vm166_vm1, %v57_v35  ;;  %v104_v34 = vld [vmem:[%s2266_s0 + $0x2d0] sm:$0xff] }
  0x44   :  { %v140_v35 = vld [vmem:[%s2266_s0 + $0x3f0] sm:$0xff] }
  0x49   :  { %1317 = vmatmul.msk.f32.gmra.mxu2 %vm166_vm1, %v94_v36  ;;  %1353 = vmatmul.msk.f32.gmra.mxu3 %vm166_vm1, %v130_v37 }
  0x4b   :  { %1245 = vmatmul.msk.f32.gmra.mxu0 %vm166_vm1, %v22_v38  ;;  %1281 = vmatmul.msk.f32.gmra.mxu1 %vm166_vm1, %v58_v39  ;;  %v32_v39 = vld [vmem:[%s2266_s0 + $0x90] sm:$0xff] }
  0x51   :  { %1318 = vmatmul.msk.f32.gmra.mxu2 %vm166_vm1, %v95_v40  ;;  %1354 = vmatmul.msk.f32.gmra.mxu3 %vm166_vm1, %v131_v41  ;;  %v68_v40 = vld [vmem:[%s2266_s0 + $0x1b0] sm:$0xff] }
  0x53   :  { %1246 = vmatmul.msk.f32.gmra.mxu0 %vm166_vm1, %v23_v42  ;;  %1282 = vmatmul.msk.f32.gmra.mxu1 %vm166_vm1, %v59_v43 }
  0x59   :  { %1319 = vmatmul.msk.f32.gmra.mxu2 %vm166_vm1, %v96_v44  ;;  %1355 = vmatmul.msk.f32.gmra.mxu3 %vm166_vm1, %v132_v45 }
  0x5b   :  { %1247 = vmatmul.msk.f32.gmra.mxu0 %vm166_vm1, %v24_v46  ;;  %1283 = vmatmul.msk.f32.gmra.mxu1 %vm166_vm1, %v60_v47 }
  0x61   :  { %1320 = vmatmul.msk.f32.gmra.mxu2 %vm166_vm1, %v97_v48  ;;  %1356 = vmatmul.msk.f32.gmra.mxu3 %vm166_vm1, %v133_v49 }
  0x63   :  { %1248 = vmatmul.msk.f32.gmra.mxu0 %vm166_vm1, %v25_v50  ;;  %1284 = vmatmul.msk.f32.gmra.mxu1 %vm166_vm1, %v61_v51  ;;  %v105_v50 = vld [vmem:[%s2266_s0 + $0x2d8] sm:$0xff] }
  0x64   :  { %v141_v51 = vld [vmem:[%s2266_s0 + $0x3f8] sm:$0xff] }
  0x69   :  { %1321 = vmatmul.msk.f32.gmra.mxu2 %vm166_vm1, %v98_v52  ;;  %1357 = vmatmul.msk.f32.gmra.mxu3 %vm166_vm1, %v134_v53 }
  0x6b   :  { %1249 = vmatmul.msk.f32.gmra.mxu0 %vm166_vm1, %v26_v54  ;;  %1285 = vmatmul.msk.f32.gmra.mxu1 %vm166_vm1, %v62_v55  ;;  %v33_v55 = vld [vmem:[%s2266_s0 + $0x98] sm:$0xff] }
  0x71   :  { %1322 = vmatmul.msk.f32.gmra.mxu2 %vm166_vm1, %v99_v56  ;;  %1358 = vmatmul.msk.f32.gmra.mxu3 %vm166_vm1, %v135_v57  ;;  %v69_v56 = vld [vmem:[%s2266_s0 + $0x1b8] sm:$0xff] }
  0x73   :  { %1250 = vmatmul.msk.f32.gmra.mxu0 %vm166_vm1, %v27_v58  ;;  %1286 = vmatmul.msk.f32.gmra.mxu1 %vm166_vm1, %v63_v59 }
  0x79   :  { %1323 = vmatmul.msk.f32.gmra.mxu2 %vm166_vm1, %v100_v60  ;;  %1359 = vmatmul.msk.f32.gmra.mxu3 %vm166_vm1, %v136_v61 }
  0x7b   :  { %1251 = vmatmul.msk.f32.gmra.mxu0 %vm166_vm1, %v28_v62  ;;  %1287 = vmatmul.msk.f32.gmra.mxu1 %vm166_vm1, %v64_v63 }
  0x81   :  { %1324 = vmatmul.msk.f32.gmra.mxu2 %vm166_vm1, %v101_v0  ;;  %1360 = vmatmul.msk.f32.gmra.mxu3 %vm166_vm1, %v137_v1 }
  0x83   :  { %1252 = vmatmul.msk.f32.gmra.mxu0 %vm166_vm1, %v29_v2  ;;  %1288 = vmatmul.msk.f32.gmra.mxu1 %vm166_vm1, %v65_v3  ;;  %v106_v2 = vld [vmem:[%s2266_s0 + $0x2e0] sm:$0xff] }
  0x84   :  { %v142_v3 = vld [vmem:[%s2266_s0 + $0x400] sm:$0xff] }
  0x88   :  { %v620_v7 = vpop.f32.mrf.mxu0  ;;  %v728_v8 = vpop.f32.mrf.mxu1 }
  0x89   :  { %1325 = vmatmul.msk.f32.gmra.mxu2 %vm166_vm1, %v102_v5  ;;  %1361 = vmatmul.msk.f32.gmra.mxu3 %vm166_vm1, %v138_v6  ;;  %v621_v11 = vadd.f32 %v1686_v4, %v620_v7  ;;  %v729_v12 = vadd.f32 %v1686_v4, %v728_v8  ;;  %v34_v8 = vld [vmem:[%s2266_s0 + $0xa0] sm:$0xff] }
  0x8b   :  { %1253 = vmatmul.msk.f32.gmra.mxu0 %vm166_vm1, %v30_v9  ;;  %1289 = vmatmul.msk.f32.gmra.mxu1 %vm166_vm1, %v66_v10  ;;  %v1052_v15 = vmax.f32 %v621_v11, %v729_v12  ;;  %v70_v9 = vld [vmem:[%s2266_s0 + $0x1c0] sm:$0xff] }
  0x8c   :  { %v836_v13 = vpop.f32.mrf.mxu2  ;;  %v944_v14 = vpop.f32.mrf.mxu3 }
  0x8d   :  { %v837_v16 = vadd.f32 %v1686_v4, %v836_v13  ;;  %v945_v17 = vadd.f32 %v1686_v4, %v944_v14 }
  0x8f   :  { %v1088_v20 = vmax.f32 %v837_v16, %v945_v17 }
  0x90   :  { %v623_v21 = vpop.f32.mrf.mxu0  ;;  %v731_v22 = vpop.f32.mrf.mxu1 }
  0x91   :  { %v1124_v25 = vmax.f32 %v1052_v15, %v1088_v20  ;;  %1326 = vmatmul.msk.f32.gmra.mxu2 %vm166_vm1, %v103_v18  ;;  %1362 = vmatmul.msk.f32.gmra.mxu3 %vm166_vm1, %v139_v19  ;;  %v624_v26 = vadd.f32 %v1686_v4, %v623_v21  ;;  %v732_v27 = vadd.f32 %v1686_v4, %v731_v22  ;;  %v107_v19 = vld [vmem:[%s2266_s0 + $0x2e8] sm:$0xff] }
  0x92   :  { %v143_v20 = vld [vmem:[%s2266_s0 + $0x408] sm:$0xff] }
  0x93   :  { %v1160_v28 = vmax.f32 %v1124_v25, 0.0  ;;  %1254 = vmatmul.msk.f32.gmra.mxu0 %vm166_vm1, %v31_v23  ;;  %1290 = vmatmul.msk.f32.gmra.mxu1 %vm166_vm1, %v67_v24  ;;  %v1053_v31 = vmax.f32 %v624_v26, %v732_v27  ;;  %v35_v24 = vld [vmem:[%s2266_s0 + $0xa8] sm:$0xff] }
  0x94   :  { %v839_v29 = vpop.f32.mrf.mxu2  ;;  %v947_v30 = vpop.f32.mrf.mxu3  ;;  %v71_v25 = vld [vmem:[%s2266_s0 + $0x1c8] sm:$0xff] }
  0x95   :  { %1196 = vst [vmem:[%s2268_s3] sm:$0xff] %v1160_v28  ;;  %v840_v32 = vadd.f32 %v1686_v4, %v839_v29  ;;  %v948_v33 = vadd.f32 %v1686_v4, %v947_v30 }
  0x97   :  { %v1089_v36 = vmax.f32 %v840_v32, %v948_v33 }
  0x98   :  { %v626_v37 = vpop.f32.mrf.mxu0  ;;  %v734_v38 = vpop.f32.mrf.mxu1 }
  0x99   :  { %v1125_v41 = vmax.f32 %v1053_v31, %v1089_v36  ;;  %1327 = vmatmul.msk.f32.gmra.mxu2 %vm166_vm1, %v104_v34  ;;  %1363 = vmatmul.msk.f32.gmra.mxu3 %vm166_vm1, %v140_v35  ;;  %v627_v42 = vadd.f32 %v1686_v4, %v626_v37  ;;  %v735_v43 = vadd.f32 %v1686_v4, %v734_v38  ;;  %v108_v35 = vld [vmem:[%s2266_s0 + $0x2f0] sm:$0xff] }
  0x9a   :  { %v144_v36 = vld [vmem:[%s2266_s0 + $0x410] sm:$0xff] }
  0x9b   :  { %v1161_v44 = vmax.f32 %v1125_v41, 0.0  ;;  %1255 = vmatmul.msk.f32.gmra.mxu0 %vm166_vm1, %v32_v39  ;;  %1291 = vmatmul.msk.f32.gmra.mxu1 %vm166_vm1, %v68_v40  ;;  %v1054_v47 = vmax.f32 %v627_v42, %v735_v43  ;;  %v36_v40 = vld [vmem:[%s2266_s0 + $0xb0] sm:$0xff] }
  0x9c   :  { %v842_v45 = vpop.f32.mrf.mxu2  ;;  %v950_v46 = vpop.f32.mrf.mxu3  ;;  %v72_v41 = vld [vmem:[%s2266_s0 + $0x1d0] sm:$0xff] }
  0x9d   :  { %1197 = vst [vmem:[%s2268_s3 + $0x8] sm:$0xff] %v1161_v44  ;;  %v843_v48 = vadd.f32 %v1686_v4, %v842_v45  ;;  %v951_v49 = vadd.f32 %v1686_v4, %v950_v46 }
  0x9f   :  { %v1090_v52 = vmax.f32 %v843_v48, %v951_v49 }
  0xa0   :  { %v629_v53 = vpop.f32.mrf.mxu0  ;;  %v737_v54 = vpop.f32.mrf.mxu1 }
  0xa1   :  { %v1126_v57 = vmax.f32 %v1054_v47, %v1090_v52  ;;  %1328 = vmatmul.msk.f32.gmra.mxu2 %vm166_vm1, %v105_v50  ;;  %1364 = vmatmul.msk.f32.gmra.mxu3 %vm166_vm1, %v141_v51  ;;  %v630_v58 = vadd.f32 %v1686_v4, %v629_v53  ;;  %v738_v59 = vadd.f32 %v1686_v4, %v737_v54  ;;  %v109_v51 = vld [vmem:[%s2266_s0 + $0x2f8] sm:$0xff] }
  0xa2   :  { %v145_v52 = vld [vmem:[%s2266_s0 + $0x418] sm:$0xff] }
  0xa3   :  { %v1162_v60 = vmax.f32 %v1126_v57, 0.0  ;;  %1256 = vmatmul.msk.f32.gmra.mxu0 %vm166_vm1, %v33_v55  ;;  %1292 = vmatmul.msk.f32.gmra.mxu1 %vm166_vm1, %v69_v56  ;;  %v1055_v63 = vmax.f32 %v630_v58, %v738_v59  ;;  %v37_v56 = vld [vmem:[%s2266_s0 + $0xb8] sm:$0xff] }
  0xa4   :  { %v845_v61 = vpop.f32.mrf.mxu2  ;;  %v953_v62 = vpop.f32.mrf.mxu3  ;;  %v73_v57 = vld [vmem:[%s2266_s0 + $0x1d8] sm:$0xff] }
  0xa5   :  { %1198 = vst [vmem:[%s2268_s3 + $0x10] sm:$0xff] %v1162_v60  ;;  %v846_v0 = vadd.f32 %v1686_v4, %v845_v61  ;;  %v954_v1 = vadd.f32 %v1686_v4, %v953_v62 }
  0xa7   :  { %v1091_v5 = vmax.f32 %v846_v0, %v954_v1 }
  0xa8   :  { %v632_v6 = vpop.f32.mrf.mxu0  ;;  %v740_v7 = vpop.f32.mrf.mxu1 }
  0xa9   :  { %v1127_v10 = vmax.f32 %v1055_v63, %v1091_v5  ;;  %1329 = vmatmul.msk.f32.gmra.mxu2 %vm166_vm1, %v106_v2  ;;  %1365 = vmatmul.msk.f32.gmra.mxu3 %vm166_vm1, %v142_v3  ;;  %v633_v11 = vadd.f32 %v1686_v4, %v632_v6  ;;  %v741_v12 = vadd.f32 %v1686_v4, %v740_v7  ;;  %v110_v3 = vld [vmem:[%s2266_s0 + $0x300] sm:$0xff] }
  0xaa   :  { %v146_v5 = vld [vmem:[%s2266_s0 + $0x420] sm:$0xff] }
  0xab   :  { %v1163_v13 = vmax.f32 %v1127_v10, 0.0  ;;  %1257 = vmatmul.msk.f32.gmra.mxu0 %vm166_vm1, %v34_v8  ;;  %1293 = vmatmul.msk.f32.gmra.mxu1 %vm166_vm1, %v70_v9  ;;  %v1056_v16 = vmax.f32 %v633_v11, %v741_v12  ;;  %v38_v9 = vld [vmem:[%s2266_s0 + $0xc0] sm:$0xff] }
  0xac   :  { %v848_v14 = vpop.f32.mrf.mxu2  ;;  %v956_v15 = vpop.f32.mrf.mxu3  ;;  %v74_v10 = vld [vmem:[%s2266_s0 + $0x1e0] sm:$0xff] }
  0xad   :  { %1199 = vst [vmem:[%s2268_s3 + $0x18] sm:$0xff] %v1163_v13  ;;  %v849_v17 = vadd.f32 %v1686_v4, %v848_v14  ;;  %v957_v18 = vadd.f32 %v1686_v4, %v956_v15 }
  0xaf   :  { %v1092_v21 = vmax.f32 %v849_v17, %v957_v18 }
  0xb0   :  { %v635_v22 = vpop.f32.mrf.mxu0  ;;  %v743_v23 = vpop.f32.mrf.mxu1 }
  0xb1   :  { %v1128_v26 = vmax.f32 %v1056_v16, %v1092_v21  ;;  %1330 = vmatmul.msk.f32.gmra.mxu2 %vm166_vm1, %v107_v19  ;;  %1366 = vmatmul.msk.f32.gmra.mxu3 %vm166_vm1, %v143_v20  ;;  %v636_v27 = vadd.f32 %v1686_v4, %v635_v22  ;;  %v744_v28 = vadd.f32 %v1686_v4, %v743_v23  ;;  %v111_v20 = vld [vmem:[%s2266_s0 + $0x308] sm:$0xff] }
  0xb2   :  { %v147_v21 = vld [vmem:[%s2266_s0 + $0x428] sm:$0xff] }
  0xb3   :  { %v1164_v29 = vmax.f32 %v1128_v26, 0.0  ;;  %1258 = vmatmul.msk.f32.gmra.mxu0 %vm166_vm1, %v35_v24  ;;  %1294 = vmatmul.msk.f32.gmra.mxu1 %vm166_vm1, %v71_v25  ;;  %v1057_v32 = vmax.f32 %v636_v27, %v744_v28  ;;  %v39_v25 = vld [vmem:[%s2266_s0 + $0xc8] sm:$0xff] }
  0xb4   :  { %v851_v30 = vpop.f32.mrf.mxu2  ;;  %v959_v31 = vpop.f32.mrf.mxu3  ;;  %v75_v26 = vld [vmem:[%s2266_s0 + $0x1e8] sm:$0xff] }
  0xb5   :  { %1200 = vst [vmem:[%s2268_s3 + $0x20] sm:$0xff] %v1164_v29  ;;  %v852_v33 = vadd.f32 %v1686_v4, %v851_v30  ;;  %v960_v34 = vadd.f32 %v1686_v4, %v959_v31 }
  0xb7   :  { %v1093_v37 = vmax.f32 %v852_v33, %v960_v34 }
  0xb8   :  { %v638_v38 = vpop.f32.mrf.mxu0  ;;  %v746_v39 = vpop.f32.mrf.mxu1 }
  0xb9   :  { %v1129_v42 = vmax.f32 %v1057_v32, %v1093_v37  ;;  %1331 = vmatmul.msk.f32.gmra.mxu2 %vm166_vm1, %v108_v35  ;;  %1367 = vmatmul.msk.f32.gmra.mxu3 %vm166_vm1, %v144_v36  ;;  %v639_v43 = vadd.f32 %v1686_v4, %v638_v38  ;;  %v747_v44 = vadd.f32 %v1686_v4, %v746_v39  ;;  %v112_v36 = vld [vmem:[%s2266_s0 + $0x310] sm:$0xff] }
  0xba   :  { %v148_v37 = vld [vmem:[%s2266_s0 + $0x430] sm:$0xff] }
  0xbb   :  { %v1165_v45 = vmax.f32 %v1129_v42, 0.0  ;;  %1259 = vmatmul.msk.f32.gmra.mxu0 %vm166_vm1, %v36_v40  ;;  %1295 = vmatmul.msk.f32.gmra.mxu1 %vm166_vm1, %v72_v41  ;;  %v1058_v48 = vmax.f32 %v639_v43, %v747_v44  ;;  %v40_v41 = vld [vmem:[%s2266_s0 + $0xd0] sm:$0xff] }
  0xbc   :  { %v854_v46 = vpop.f32.mrf.mxu2  ;;  %v962_v47 = vpop.f32.mrf.mxu3  ;;  %v76_v42 = vld [vmem:[%s2266_s0 + $0x1f0] sm:$0xff] }
  0xbd   :  { %1201 = vst [vmem:[%s2268_s3 + $0x28] sm:$0xff] %v1165_v45  ;;  %v855_v49 = vadd.f32 %v1686_v4, %v854_v46  ;;  %v963_v50 = vadd.f32 %v1686_v4, %v962_v47 }
  0xbf   :  { %v1094_v53 = vmax.f32 %v855_v49, %v963_v50 }
  0xc0   :  { %v641_v54 = vpop.f32.mrf.mxu0  ;;  %v749_v55 = vpop.f32.mrf.mxu1 }
  0xc1   :  { %v1130_v58 = vmax.f32 %v1058_v48, %v1094_v53  ;;  %1332 = vmatmul.msk.f32.gmra.mxu2 %vm166_vm1, %v109_v51  ;;  %1368 = vmatmul.msk.f32.gmra.mxu3 %vm166_vm1, %v145_v52  ;;  %v642_v59 = vadd.f32 %v1686_v4, %v641_v54  ;;  %v750_v60 = vadd.f32 %v1686_v4, %v749_v55  ;;  %v113_v52 = vld [vmem:[%s2266_s0 + $0x318] sm:$0xff] }
  0xc2   :  { %v149_v53 = vld [vmem:[%s2266_s0 + $0x438] sm:$0xff] }
  0xc3   :  { %v1166_v61 = vmax.f32 %v1130_v58, 0.0  ;;  %1260 = vmatmul.msk.f32.gmra.mxu0 %vm166_vm1, %v37_v56  ;;  %1296 = vmatmul.msk.f32.gmra.mxu1 %vm166_vm1, %v73_v57  ;;  %v1059_v0 = vmax.f32 %v642_v59, %v750_v60  ;;  %v41_v57 = vld [vmem:[%s2266_s0 + $0xd8] sm:$0xff] }
  0xc4   :  { %v857_v62 = vpop.f32.mrf.mxu2  ;;  %v965_v63 = vpop.f32.mrf.mxu3  ;;  %v77_v58 = vld [vmem:[%s2266_s0 + $0x1f8] sm:$0xff] }
  0xc5   :  { %1202 = vst [vmem:[%s2268_s3 + $0x30] sm:$0xff] %v1166_v61  ;;  %v858_v1 = vadd.f32 %v1686_v4, %v857_v62  ;;  %v966_v2 = vadd.f32 %v1686_v4, %v965_v63 }
  0xc7   :  { %v1095_v6 = vmax.f32 %v858_v1, %v966_v2 }
  0xc8   :  { %v644_v7 = vpop.f32.mrf.mxu0  ;;  %v752_v8 = vpop.f32.mrf.mxu1 }
  0xc9   :  { %v1131_v11 = vmax.f32 %v1059_v0, %v1095_v6  ;;  %1333 = vmatmul.msk.f32.gmra.mxu2 %vm166_vm1, %v110_v3  ;;  %1369 = vmatmul.msk.f32.gmra.mxu3 %vm166_vm1, %v146_v5  ;;  %v645_v12 = vadd.f32 %v1686_v4, %v644_v7  ;;  %v753_v13 = vadd.f32 %v1686_v4, %v752_v8  ;;  %v114_v5 = vld [vmem:[%s2266_s0 + $0x320] sm:$0xff] }
  0xca   :  { %v150_v6 = vld [vmem:[%s2266_s0 + $0x440] sm:$0xff] }
  0xcb   :  { %v1167_v14 = vmax.f32 %v1131_v11, 0.0  ;;  %1261 = vmatmul.msk.f32.gmra.mxu0 %vm166_vm1, %v38_v9  ;;  %1297 = vmatmul.msk.f32.gmra.mxu1 %vm166_vm1, %v74_v10  ;;  %v1060_v17 = vmax.f32 %v645_v12, %v753_v13  ;;  %v42_v10 = vld [vmem:[%s2266_s0 + $0xe0] sm:$0xff] }
  0xcc   :  { %v860_v15 = vpop.f32.mrf.mxu2  ;;  %v968_v16 = vpop.f32.mrf.mxu3  ;;  %v78_v11 = vld [vmem:[%s2266_s0 + $0x200] sm:$0xff] }
  0xcd   :  { %1203 = vst [vmem:[%s2268_s3 + $0x38] sm:$0xff] %v1167_v14  ;;  %v861_v18 = vadd.f32 %v1686_v4, %v860_v15  ;;  %v969_v19 = vadd.f32 %v1686_v4, %v968_v16 }
  0xcf   :  { %v1096_v22 = vmax.f32 %v861_v18, %v969_v19 }
  0xd0   :  { %v647_v23 = vpop.f32.mrf.mxu0  ;;  %v755_v24 = vpop.f32.mrf.mxu1 }
  0xd1   :  { %v1132_v27 = vmax.f32 %v1060_v17, %v1096_v22  ;;  %1334 = vmatmul.msk.f32.gmra.mxu2 %vm166_vm1, %v111_v20  ;;  %1370 = vmatmul.msk.f32.gmra.mxu3 %vm166_vm1, %v147_v21  ;;  %v648_v28 = vadd.f32 %v1686_v4, %v647_v23  ;;  %v756_v29 = vadd.f32 %v1686_v4, %v755_v24  ;;  %v115_v21 = vld [vmem:[%s2266_s0 + $0x328] sm:$0xff] }
  0xd2   :  { %v151_v22 = vld [vmem:[%s2266_s0 + $0x448] sm:$0xff] }
  0xd3   :  { %v1168_v30 = vmax.f32 %v1132_v27, 0.0  ;;  %1262 = vmatmul.msk.f32.gmra.mxu0 %vm166_vm1, %v39_v25  ;;  %1298 = vmatmul.msk.f32.gmra.mxu1 %vm166_vm1, %v75_v26  ;;  %v1061_v33 = vmax.f32 %v648_v28, %v756_v29  ;;  %v43_v26 = vld [vmem:[%s2266_s0 + $0xe8] sm:$0xff] }
  0xd4   :  { %v863_v31 = vpop.f32.mrf.mxu2  ;;  %v971_v32 = vpop.f32.mrf.mxu3  ;;  %v79_v27 = vld [vmem:[%s2266_s0 + $0x208] sm:$0xff] }
  0xd5   :  { %1204 = vst [vmem:[%s2268_s3 + $0x40] sm:$0xff] %v1168_v30  ;;  %v864_v34 = vadd.f32 %v1686_v4, %v863_v31  ;;  %v972_v35 = vadd.f32 %v1686_v4, %v971_v32 }
  0xd7   :  { %v1097_v38 = vmax.f32 %v864_v34, %v972_v35 }
  0xd8   :  { %v650_v39 = vpop.f32.mrf.mxu0  ;;  %v758_v40 = vpop.f32.mrf.mxu1 }
  0xd9   :  { %v1133_v43 = vmax.f32 %v1061_v33, %v1097_v38  ;;  %1335 = vmatmul.msk.f32.gmra.mxu2 %vm166_vm1, %v112_v36  ;;  %1371 = vmatmul.msk.f32.gmra.mxu3 %vm166_vm1, %v148_v37  ;;  %v651_v44 = vadd.f32 %v1686_v4, %v650_v39  ;;  %v759_v45 = vadd.f32 %v1686_v4, %v758_v40  ;;  %v116_v37 = vld [vmem:[%s2266_s0 + $0x330] sm:$0xff] }
  0xda   :  { %v152_v38 = vld [vmem:[%s2266_s0 + $0x450] sm:$0xff] }
  0xdb   :  { %v1169_v46 = vmax.f32 %v1133_v43, 0.0  ;;  %1263 = vmatmul.msk.f32.gmra.mxu0 %vm166_vm1, %v40_v41  ;;  %1299 = vmatmul.msk.f32.gmra.mxu1 %vm166_vm1, %v76_v42  ;;  %v1062_v49 = vmax.f32 %v651_v44, %v759_v45  ;;  %v44_v42 = vld [vmem:[%s2266_s0 + $0xf0] sm:$0xff] }
  0xdc   :  { %v866_v47 = vpop.f32.mrf.mxu2  ;;  %v974_v48 = vpop.f32.mrf.mxu3  ;;  %v80_v43 = vld [vmem:[%s2266_s0 + $0x210] sm:$0xff] }
  0xdd   :  { %1205 = vst [vmem:[%s2268_s3 + $0x48] sm:$0xff] %v1169_v46  ;;  %v867_v50 = vadd.f32 %v1686_v4, %v866_v47  ;;  %v975_v51 = vadd.f32 %v1686_v4, %v974_v48 }
  0xdf   :  { %v1098_v54 = vmax.f32 %v867_v50, %v975_v51 }
  0xe0   :  { %v653_v55 = vpop.f32.mrf.mxu0  ;;  %v761_v56 = vpop.f32.mrf.mxu1 }
  0xe1   :  { %v1134_v59 = vmax.f32 %v1062_v49, %v1098_v54  ;;  %1336 = vmatmul.msk.f32.gmra.mxu2 %vm166_vm1, %v113_v52  ;;  %1372 = vmatmul.msk.f32.gmra.mxu3 %vm166_vm1, %v149_v53  ;;  %v654_v60 = vadd.f32 %v1686_v4, %v653_v55  ;;  %v762_v61 = vadd.f32 %v1686_v4, %v761_v56  ;;  %v117_v53 = vld [vmem:[%s2266_s0 + $0x338] sm:$0xff] }
  0xe2   :  { %v153_v54 = vld [vmem:[%s2266_s0 + $0x458] sm:$0xff] }
  0xe3   :  { %v1170_v62 = vmax.f32 %v1134_v59, 0.0  ;;  %1264 = vmatmul.msk.f32.gmra.mxu0 %vm166_vm1, %v41_v57  ;;  %1300 = vmatmul.msk.f32.gmra.mxu1 %vm166_vm1, %v77_v58  ;;  %v1063_v1 = vmax.f32 %v654_v60, %v762_v61  ;;  %v45_v58 = vld [vmem:[%s2266_s0 + $0xf8] sm:$0xff] }
  0xe4   :  { %v869_v63 = vpop.f32.mrf.mxu2  ;;  %v977_v0 = vpop.f32.mrf.mxu3  ;;  %v81_v59 = vld [vmem:[%s2266_s0 + $0x218] sm:$0xff] }
  0xe5   :  { %1206 = vst [vmem:[%s2268_s3 + $0x50] sm:$0xff] %v1170_v62  ;;  %v870_v2 = vadd.f32 %v1686_v4, %v869_v63  ;;  %v978_v3 = vadd.f32 %v1686_v4, %v977_v0 }
  0xe7   :  { %v1099_v7 = vmax.f32 %v870_v2, %v978_v3 }
  0xe8   :  { %v656_v8 = vpop.f32.mrf.mxu0  ;;  %v764_v9 = vpop.f32.mrf.mxu1 }
  0xe9   :  { %v1135_v12 = vmax.f32 %v1063_v1, %v1099_v7  ;;  %1337 = vmatmul.msk.f32.gmra.mxu2 %vm166_vm1, %v114_v5  ;;  %1373 = vmatmul.msk.f32.gmra.mxu3 %vm166_vm1, %v150_v6  ;;  %v657_v13 = vadd.f32 %v1686_v4, %v656_v8  ;;  %v765_v14 = vadd.f32 %v1686_v4, %v764_v9  ;;  %v118_v6 = vld [vmem:[%s2266_s0 + $0x340] sm:$0xff] }
  0xea   :  { %v154_v7 = vld [vmem:[%s2266_s0 + $0x460] sm:$0xff] }
  0xeb   :  { %v1171_v15 = vmax.f32 %v1135_v12, 0.0  ;;  %1265 = vmatmul.msk.f32.gmra.mxu0 %vm166_vm1, %v42_v10  ;;  %1301 = vmatmul.msk.f32.gmra.mxu1 %vm166_vm1, %v78_v11  ;;  %v1064_v18 = vmax.f32 %v657_v13, %v765_v14  ;;  %v46_v11 = vld [vmem:[%s2266_s0 + $0x100] sm:$0xff] }
  0xec   :  { %v872_v16 = vpop.f32.mrf.mxu2  ;;  %v980_v17 = vpop.f32.mrf.mxu3  ;;  %v82_v12 = vld [vmem:[%s2266_s0 + $0x220] sm:$0xff] }
  0xed   :  { %1207 = vst [vmem:[%s2268_s3 + $0x58] sm:$0xff] %v1171_v15  ;;  %v873_v19 = vadd.f32 %v1686_v4, %v872_v16  ;;  %v981_v20 = vadd.f32 %v1686_v4, %v980_v17 }
  0xef   :  { %v1100_v23 = vmax.f32 %v873_v19, %v981_v20 }
  0xf0   :  { %v659_v24 = vpop.f32.mrf.mxu0  ;;  %v767_v25 = vpop.f32.mrf.mxu1 }
  0xf1   :  { %v1136_v28 = vmax.f32 %v1064_v18, %v1100_v23  ;;  %1338 = vmatmul.msk.f32.gmra.mxu2 %vm166_vm1, %v115_v21  ;;  %1374 = vmatmul.msk.f32.gmra.mxu3 %vm166_vm1, %v151_v22  ;;  %v660_v29 = vadd.f32 %v1686_v4, %v659_v24  ;;  %v768_v30 = vadd.f32 %v1686_v4, %v767_v25  ;;  %v119_v22 = vld [vmem:[%s2266_s0 + $0x348] sm:$0xff] }
  0xf2   :  { %v155_v23 = vld [vmem:[%s2266_s0 + $0x468] sm:$0xff] }
  0xf3   :  { %v1172_v31 = vmax.f32 %v1136_v28, 0.0  ;;  %1266 = vmatmul.msk.f32.gmra.mxu0 %vm166_vm1, %v43_v26  ;;  %1302 = vmatmul.msk.f32.gmra.mxu1 %vm166_vm1, %v79_v27  ;;  %v1065_v34 = vmax.f32 %v660_v29, %v768_v30  ;;  %v47_v27 = vld [vmem:[%s2266_s0 + $0x108] sm:$0xff] }
  0xf4   :  { %v875_v32 = vpop.f32.mrf.mxu2  ;;  %v983_v33 = vpop.f32.mrf.mxu3  ;;  %v83_v28 = vld [vmem:[%s2266_s0 + $0x228] sm:$0xff] }
  0xf5   :  { %1208 = vst [vmem:[%s2268_s3 + $0x60] sm:$0xff] %v1172_v31  ;;  %v876_v35 = vadd.f32 %v1686_v4, %v875_v32  ;;  %v984_v36 = vadd.f32 %v1686_v4, %v983_v33 }
  0xf7   :  { %v1101_v39 = vmax.f32 %v876_v35, %v984_v36 }
  0xf8   :  { %v662_v40 = vpop.f32.mrf.mxu0  ;;  %v770_v41 = vpop.f32.mrf.mxu1 }
  0xf9   :  { %v1137_v44 = vmax.f32 %v1065_v34, %v1101_v39  ;;  %1339 = vmatmul.msk.f32.gmra.mxu2 %vm166_vm1, %v116_v37  ;;  %1375 = vmatmul.msk.f32.gmra.mxu3 %vm166_vm1, %v152_v38  ;;  %v663_v45 = vadd.f32 %v1686_v4, %v662_v40  ;;  %v771_v46 = vadd.f32 %v1686_v4, %v770_v41  ;;  %v120_v38 = vld [vmem:[%s2266_s0 + $0x350] sm:$0xff] }
  0xfa   :  { %v156_v39 = vld [vmem:[%s2266_s0 + $0x470] sm:$0xff] }
  0xfb   :  { %v1173_v47 = vmax.f32 %v1137_v44, 0.0  ;;  %1267 = vmatmul.msk.f32.gmra.mxu0 %vm166_vm1, %v44_v42  ;;  %1303 = vmatmul.msk.f32.gmra.mxu1 %vm166_vm1, %v80_v43  ;;  %v1066_v50 = vmax.f32 %v663_v45, %v771_v46  ;;  %v48_v43 = vld [vmem:[%s2266_s0 + $0x110] sm:$0xff] }
  0xfc   :  { %v878_v48 = vpop.f32.mrf.mxu2  ;;  %v986_v49 = vpop.f32.mrf.mxu3  ;;  %v84_v44 = vld [vmem:[%s2266_s0 + $0x230] sm:$0xff] }
  0xfd   :  { %1209 = vst [vmem:[%s2268_s3 + $0x68] sm:$0xff] %v1173_v47  ;;  %v879_v51 = vadd.f32 %v1686_v4, %v878_v48  ;;  %v987_v52 = vadd.f32 %v1686_v4, %v986_v49 }
  0xff   :  { %v1102_v55 = vmax.f32 %v879_v51, %v987_v52 }
 0x100   :  { %v665_v56 = vpop.f32.mrf.mxu0  ;;  %v773_v57 = vpop.f32.mrf.mxu1 }
 0x101   :  { %v1138_v60 = vmax.f32 %v1066_v50, %v1102_v55  ;;  %1340 = vmatmul.msk.f32.gmra.mxu2 %vm166_vm1, %v117_v53  ;;  %1376 = vmatmul.msk.f32.gmra.mxu3 %vm166_vm1, %v153_v54  ;;  %v666_v61 = vadd.f32 %v1686_v4, %v665_v56  ;;  %v774_v62 = vadd.f32 %v1686_v4, %v773_v57  ;;  %v121_v54 = vld [vmem:[%s2266_s0 + $0x358] sm:$0xff] }
 0x102   :  { %v157_v55 = vld [vmem:[%s2266_s0 + $0x478] sm:$0xff] }
 0x103   :  { %v1174_v63 = vmax.f32 %v1138_v60, 0.0  ;;  %1268 = vmatmul.msk.f32.gmra.mxu0 %vm166_vm1, %v45_v58  ;;  %1304 = vmatmul.msk.f32.gmra.mxu1 %vm166_vm1, %v81_v59  ;;  %v1067_v2 = vmax.f32 %v666_v61, %v774_v62  ;;  %v49_v59 = vld [vmem:[%s2266_s0 + $0x118] sm:$0xff] }
 0x104   :  { %v881_v0 = vpop.f32.mrf.mxu2  ;;  %v989_v1 = vpop.f32.mrf.mxu3  ;;  %v85_v60 = vld [vmem:[%s2266_s0 + $0x238] sm:$0xff] }
 0x105   :  { %1210 = vst [vmem:[%s2268_s3 + $0x70] sm:$0xff] %v1174_v63  ;;  %v882_v3 = vadd.f32 %v1686_v4, %v881_v0  ;;  %v990_v5 = vadd.f32 %v1686_v4, %v989_v1 }
 0x107   :  { %v1103_v8 = vmax.f32 %v882_v3, %v990_v5 }
 0x108   :  { %v668_v9 = vpop.f32.mrf.mxu0  ;;  %v776_v10 = vpop.f32.mrf.mxu1 }
 0x109   :  { %v1139_v13 = vmax.f32 %v1067_v2, %v1103_v8  ;;  %1341 = vmatmul.msk.f32.gmra.mxu2 %vm166_vm1, %v118_v6  ;;  %1377 = vmatmul.msk.f32.gmra.mxu3 %vm166_vm1, %v154_v7  ;;  %v669_v14 = vadd.f32 %v1686_v4, %v668_v9  ;;  %v777_v15 = vadd.f32 %v1686_v4, %v776_v10 }
 0x10b   :  { %v1175_v16 = vmax.f32 %v1139_v13, 0.0  ;;  %1269 = vmatmul.msk.f32.gmra.mxu0 %vm166_vm1, %v46_v11  ;;  %1305 = vmatmul.msk.f32.gmra.mxu1 %vm166_vm1, %v82_v12  ;;  %v1068_v19 = vmax.f32 %v669_v14, %v777_v15 }
 0x10c   :  { %v884_v17 = vpop.f32.mrf.mxu2  ;;  %v992_v18 = vpop.f32.mrf.mxu3 }
 0x10d   :  { %1211 = vst [vmem:[%s2268_s3 + $0x78] sm:$0xff] %v1175_v16  ;;  %v885_v20 = vadd.f32 %v1686_v4, %v884_v17  ;;  %v993_v21 = vadd.f32 %v1686_v4, %v992_v18 }
 0x10f   :  { %v1104_v24 = vmax.f32 %v885_v20, %v993_v21 }
 0x110   :  { %v671_v25 = vpop.f32.mrf.mxu0  ;;  %v779_v26 = vpop.f32.mrf.mxu1 }
 0x111   :  { %v1140_v29 = vmax.f32 %v1068_v19, %v1104_v24  ;;  %1342 = vmatmul.msk.f32.gmra.mxu2 %vm166_vm1, %v119_v22  ;;  %1378 = vmatmul.msk.f32.gmra.mxu3 %vm166_vm1, %v155_v23  ;;  %v672_v30 = vadd.f32 %v1686_v4, %v671_v25  ;;  %v780_v31 = vadd.f32 %v1686_v4, %v779_v26 }
 0x113   :  { %v1176_v32 = vmax.f32 %v1140_v29, 0.0  ;;  %1270 = vmatmul.msk.f32.gmra.mxu0 %vm166_vm1, %v47_v27  ;;  %1306 = vmatmul.msk.f32.gmra.mxu1 %vm166_vm1, %v83_v28  ;;  %v1069_v35 = vmax.f32 %v672_v30, %v780_v31 }
 0x114   :  { %v887_v33 = vpop.f32.mrf.mxu2  ;;  %v995_v34 = vpop.f32.mrf.mxu3 }
 0x115   :  { %1212 = vst [vmem:[%s2268_s3 + $0x80] sm:$0xff] %v1176_v32  ;;  %v888_v36 = vadd.f32 %v1686_v4, %v887_v33  ;;  %v996_v37 = vadd.f32 %v1686_v4, %v995_v34 }
 0x117   :  { %v1105_v40 = vmax.f32 %v888_v36, %v996_v37 }
 0x118   :  { %v674_v41 = vpop.f32.mrf.mxu0  ;;  %v782_v42 = vpop.f32.mrf.mxu1 }
 0x119   :  { %v1141_v45 = vmax.f32 %v1069_v35, %v1105_v40  ;;  %1343 = vmatmul.msk.f32.gmra.mxu2 %vm166_vm1, %v120_v38  ;;  %1379 = vmatmul.msk.f32.gmra.mxu3 %vm166_vm1, %v156_v39  ;;  %v675_v46 = vadd.f32 %v1686_v4, %v674_v41  ;;  %v783_v47 = vadd.f32 %v1686_v4, %v782_v42 }
 0x11b   :  { %v1177_v48 = vmax.f32 %v1141_v45, 0.0  ;;  %1271 = vmatmul.msk.f32.gmra.mxu0 %vm166_vm1, %v48_v43  ;;  %1307 = vmatmul.msk.f32.gmra.mxu1 %vm166_vm1, %v84_v44  ;;  %v1070_v51 = vmax.f32 %v675_v46, %v783_v47 }
 0x11c   :  { %v890_v49 = vpop.f32.mrf.mxu2  ;;  %v998_v50 = vpop.f32.mrf.mxu3 }
 0x11d   :  { %1213 = vst [vmem:[%s2268_s3 + $0x88] sm:$0xff] %v1177_v48  ;;  %v891_v52 = vadd.f32 %v1686_v4, %v890_v49  ;;  %v999_v53 = vadd.f32 %v1686_v4, %v998_v50 }
 0x11f   :  { %v1106_v56 = vmax.f32 %v891_v52, %v999_v53 }
 0x120   :  { %v677_v57 = vpop.f32.mrf.mxu0  ;;  %v785_v58 = vpop.f32.mrf.mxu1 }
 0x121   :  { %v1142_v61 = vmax.f32 %v1070_v51, %v1106_v56  ;;  %1344 = vmatmul.msk.f32.gmra.mxu2 %vm166_vm1, %v121_v54  ;;  %1380 = vmatmul.msk.f32.gmra.mxu3 %vm166_vm1, %v157_v55  ;;  %v678_v62 = vadd.f32 %v1686_v4, %v677_v57  ;;  %v786_v63 = vadd.f32 %v1686_v4, %v785_v58 }
 0x123   :  { %v1178_v0 = vmax.f32 %v1142_v61, 0.0  ;;  %1272 = vmatmul.msk.f32.gmra.mxu0 %vm166_vm1, %v49_v59  ;;  %1308 = vmatmul.msk.f32.gmra.mxu1 %vm166_vm1, %v85_v60  ;;  %v1071_v3 = vmax.f32 %v678_v62, %v786_v63 }
 0x124   :  { %v893_v1 = vpop.f32.mrf.mxu2  ;;  %v1001_v2 = vpop.f32.mrf.mxu3 }
 0x125   :  { %1214 = vst [vmem:[%s2268_s3 + $0x90] sm:$0xff] %v1178_v0  ;;  %v894_v5 = vadd.f32 %v1686_v4, %v893_v1  ;;  %v1002_v6 = vadd.f32 %v1686_v4, %v1001_v2 }
 0x127   :  { %v1107_v7 = vmax.f32 %v894_v5, %v1002_v6 }
 0x128   :  { %v680_v8 = vpop.f32.mrf.mxu0  ;;  %v788_v9 = vpop.f32.mrf.mxu1 }
 0x129   :  { %v1143_v10 = vmax.f32 %v1071_v3, %v1107_v7  ;;  %v681_v11 = vadd.f32 %v1686_v4, %v680_v8  ;;  %v789_v12 = vadd.f32 %v1686_v4, %v788_v9 }
 0x12b   :  { %v1179_v13 = vmax.f32 %v1143_v10, 0.0  ;;  %v1072_v16 = vmax.f32 %v681_v11, %v789_v12 }
 0x12c   :  { %v896_v14 = vpop.f32.mrf.mxu2  ;;  %v1004_v15 = vpop.f32.mrf.mxu3 }
 0x12d   :  { %1215 = vst [vmem:[%s2268_s3 + $0x98] sm:$0xff] %v1179_v13  ;;  %v897_v17 = vadd.f32 %v1686_v4, %v896_v14  ;;  %v1005_v18 = vadd.f32 %v1686_v4, %v1004_v15 }
 0x12f   :  { %v1108_v19 = vmax.f32 %v897_v17, %v1005_v18 }
 0x130   :  { %v683_v20 = vpop.f32.mrf.mxu0  ;;  %v791_v21 = vpop.f32.mrf.mxu1 }
 0x131   :  { %v1144_v22 = vmax.f32 %v1072_v16, %v1108_v19  ;;  %v684_v23 = vadd.f32 %v1686_v4, %v683_v20  ;;  %v792_v24 = vadd.f32 %v1686_v4, %v791_v21 }
 0x133   :  { %v1180_v25 = vmax.f32 %v1144_v22, 0.0  ;;  %v1073_v28 = vmax.f32 %v684_v23, %v792_v24 }
 0x134   :  { %v899_v26 = vpop.f32.mrf.mxu2  ;;  %v1007_v27 = vpop.f32.mrf.mxu3 }
 0x135   :  { %1216 = vst [vmem:[%s2268_s3 + $0xa0] sm:$0xff] %v1180_v25  ;;  %v900_v29 = vadd.f32 %v1686_v4, %v899_v26  ;;  %v1008_v30 = vadd.f32 %v1686_v4, %v1007_v27 }
 0x137   :  { %v1109_v31 = vmax.f32 %v900_v29, %v1008_v30 }
 0x138   :  { %v686_v32 = vpop.f32.mrf.mxu0  ;;  %v794_v33 = vpop.f32.mrf.mxu1 }
 0x139   :  { %v1145_v34 = vmax.f32 %v1073_v28, %v1109_v31  ;;  %v687_v35 = vadd.f32 %v1686_v4, %v686_v32  ;;  %v795_v36 = vadd.f32 %v1686_v4, %v794_v33  ;;  %v2197_v32 = vld [vmem:[%s2267_s2] ss:$0 sm:$0xff] }
 0x13b   :  { %v1181_v37 = vmax.f32 %v1145_v34, 0.0  ;;  %v1074_v40 = vmax.f32 %v687_v35, %v795_v36 }
 0x13c   :  { %v902_v38 = vpop.f32.mrf.mxu2  ;;  %v1010_v39 = vpop.f32.mrf.mxu3 }
 0x13d   :  { %1217 = vst [vmem:[%s2268_s3 + $0xa8] sm:$0xff] %v1181_v37  ;;  %v903_v41 = vadd.f32 %v1686_v4, %v902_v38  ;;  %v1011_v42 = vadd.f32 %v1686_v4, %v1010_v39 }
 0x13f   :  { %v1110_v43 = vmax.f32 %v903_v41, %v1011_v42 }
 0x140   :  { %v689_v44 = vpop.f32.mrf.mxu0  ;;  %v797_v45 = vpop.f32.mrf.mxu1 }
 0x141   :  { %v1146_v46 = vmax.f32 %v1074_v40, %v1110_v43  ;;  %v690_v47 = vadd.f32 %v1686_v4, %v689_v44  ;;  %v798_v48 = vadd.f32 %v1686_v4, %v797_v45 }
 0x143   :  { %v1182_v49 = vmax.f32 %v1146_v46, 0.0  ;;  %v1075_v52 = vmax.f32 %v690_v47, %v798_v48 }
 0x144   :  { %v905_v50 = vpop.f32.mrf.mxu2  ;;  %v1013_v51 = vpop.f32.mrf.mxu3 }
 0x145   :  { %1218 = vst [vmem:[%s2268_s3 + $0xb0] sm:$0xff] %v1182_v49  ;;  %v906_v53 = vadd.f32 %v1686_v4, %v905_v50  ;;  %v1014_v54 = vadd.f32 %v1686_v4, %v1013_v51 }
 0x147   :  { %v1111_v55 = vmax.f32 %v906_v53, %v1014_v54 }
 0x148   :  { %v692_v56 = vpop.f32.mrf.mxu0  ;;  %v800_v57 = vpop.f32.mrf.mxu1 }
 0x149   :  { %v1147_v58 = vmax.f32 %v1075_v52, %v1111_v55  ;;  %v693_v59 = vadd.f32 %v1686_v4, %v692_v56  ;;  %v801_v60 = vadd.f32 %v1686_v4, %v800_v57 }
 0x14b   :  { %v1183_v61 = vmax.f32 %v1147_v58, 0.0  ;;  %v1076_v0 = vmax.f32 %v693_v59, %v801_v60 }
 0x14c   :  { %v908_v62 = vpop.f32.mrf.mxu2  ;;  %v1016_v63 = vpop.f32.mrf.mxu3 }
 0x14d   :  { %1219 = vst [vmem:[%s2268_s3 + $0xb8] sm:$0xff] %v1183_v61  ;;  %v909_v1 = vadd.f32 %v1686_v4, %v908_v62  ;;  %v1017_v2 = vadd.f32 %v1686_v4, %v1016_v63 }
 0x14f   :  { %v1112_v3 = vmax.f32 %v909_v1, %v1017_v2 }
 0x150   :  { %v695_v5 = vpop.f32.mrf.mxu0  ;;  %v803_v6 = vpop.f32.mrf.mxu1 }
 0x151   :  { %v1148_v7 = vmax.f32 %v1076_v0, %v1112_v3  ;;  %v696_v8 = vadd.f32 %v1686_v4, %v695_v5  ;;  %v804_v9 = vadd.f32 %v1686_v4, %v803_v6 }
 0x153   :  { %v1184_v10 = vmax.f32 %v1148_v7, 0.0  ;;  %v1077_v13 = vmax.f32 %v696_v8, %v804_v9 }
 0x154   :  { %v911_v11 = vpop.f32.mrf.mxu2  ;;  %v1019_v12 = vpop.f32.mrf.mxu3 }
 0x155   :  { %1220 = vst [vmem:[%s2268_s3 + $0xc0] sm:$0xff] %v1184_v10  ;;  %v912_v14 = vadd.f32 %v1686_v4, %v911_v11  ;;  %v1020_v15 = vadd.f32 %v1686_v4, %v1019_v12 }
 0x157   :  { %v1113_v16 = vmax.f32 %v912_v14, %v1020_v15 }
 0x158   :  { %v698_v17 = vpop.f32.mrf.mxu0  ;;  %v806_v18 = vpop.f32.mrf.mxu1 }
 0x159   :  { %v1149_v19 = vmax.f32 %v1077_v13, %v1113_v16  ;;  %v699_v20 = vadd.f32 %v1686_v4, %v698_v17  ;;  %v807_v21 = vadd.f32 %v1686_v4, %v806_v18 }
 0x15b   :  { %v1185_v22 = vmax.f32 %v1149_v19, 0.0  ;;  %v1078_v25 = vmax.f32 %v699_v20, %v807_v21 }
 0x15c   :  { %v914_v23 = vpop.f32.mrf.mxu2  ;;  %v1022_v24 = vpop.f32.mrf.mxu3 }
 0x15d   :  { %1221 = vst [vmem:[%s2268_s3 + $0xc8] sm:$0xff] %v1185_v22  ;;  %v915_v26 = vadd.f32 %v1686_v4, %v914_v23  ;;  %v1023_v27 = vadd.f32 %v1686_v4, %v1022_v24 }
 0x15f   :  { %v1114_v28 = vmax.f32 %v915_v26, %v1023_v27 }
 0x160   :  { %v701_v29 = vpop.f32.mrf.mxu0  ;;  %v809_v30 = vpop.f32.mrf.mxu1 }
 0x161   :  { %v1150_v31 = vmax.f32 %v1078_v25, %v1114_v28  ;;  %v702_v33 = vadd.f32 %v2197_v32, %v701_v29  ;;  %v810_v34 = vadd.f32 %v2197_v32, %v809_v30 }
 0x163   :  { %v1186_v35 = vmax.f32 %v1150_v31, 0.0  ;;  %v1079_v4 = vmax.f32 %v702_v33, %v810_v34 }
 0x164   :  { %v917_v36 = vpop.f32.mrf.mxu2  ;;  %v1025_v37 = vpop.f32.mrf.mxu3 }
 0x165   :  { %1222 = vst [vmem:[%s2268_s3 + $0xd0] sm:$0xff] %v1186_v35  ;;  %v918_v38 = vadd.f32 %v2197_v32, %v917_v36  ;;  %v1026_v39 = vadd.f32 %v2197_v32, %v1025_v37 }
 0x167   :  { %v1115_v40 = vmax.f32 %v918_v38, %v1026_v39 }
 0x168   :  { %v704_v41 = vpop.f32.mrf.mxu0  ;;  %v812_v42 = vpop.f32.mrf.mxu1 }
 0x169   :  { %v1151_v43 = vmax.f32 %v1079_v4, %v1115_v40  ;;  %v705_v44 = vadd.f32 %v2197_v32, %v704_v41  ;;  %v813_v45 = vadd.f32 %v2197_v32, %v812_v42 }
 0x16b   :  { %v1187_v46 = vmax.f32 %v1151_v43, 0.0  ;;  %v1080_v49 = vmax.f32 %v705_v44, %v813_v45 }
 0x16c   :  { %v920_v47 = vpop.f32.mrf.mxu2  ;;  %v1028_v48 = vpop.f32.mrf.mxu3 }
 0x16d   :  { %1223 = vst [vmem:[%s2268_s3 + $0xd8] sm:$0xff] %v1187_v46  ;;  %v921_v50 = vadd.f32 %v2197_v32, %v920_v47  ;;  %v1029_v51 = vadd.f32 %v2197_v32, %v1028_v48 }
 0x16f   :  { %v1116_v52 = vmax.f32 %v921_v50, %v1029_v51 }
 0x170   :  { %v707_v53 = vpop.f32.mrf.mxu0  ;;  %v815_v54 = vpop.f32.mrf.mxu1 }
 0x171   :  { %v1152_v55 = vmax.f32 %v1080_v49, %v1116_v52  ;;  %v708_v56 = vadd.f32 %v2197_v32, %v707_v53  ;;  %v816_v57 = vadd.f32 %v2197_v32, %v815_v54 }
 0x173   :  { %v1188_v58 = vmax.f32 %v1152_v55, 0.0  ;;  %v1081_v61 = vmax.f32 %v708_v56, %v816_v57 }
 0x174   :  { %v923_v59 = vpop.f32.mrf.mxu2  ;;  %v1031_v60 = vpop.f32.mrf.mxu3 }
 0x175   :  { %1224 = vst [vmem:[%s2268_s3 + $0xe0] sm:$0xff] %v1188_v58  ;;  %v924_v62 = vadd.f32 %v2197_v32, %v923_v59  ;;  %v1032_v63 = vadd.f32 %v2197_v32, %v1031_v60 }
 0x177   :  { %v1117_v0 = vmax.f32 %v924_v62, %v1032_v63 }
 0x178   :  { %v710_v1 = vpop.f32.mrf.mxu0  ;;  %v818_v2 = vpop.f32.mrf.mxu1 }
 0x179   :  { %v1153_v3 = vmax.f32 %v1081_v61, %v1117_v0  ;;  %v711_v5 = vadd.f32 %v2197_v32, %v710_v1  ;;  %v819_v6 = vadd.f32 %v2197_v32, %v818_v2 }
 0x17b   :  { %v1189_v7 = vmax.f32 %v1153_v3, 0.0  ;;  %v1082_v10 = vmax.f32 %v711_v5, %v819_v6 }
 0x17c   :  { %v926_v8 = vpop.f32.mrf.mxu2  ;;  %v1034_v9 = vpop.f32.mrf.mxu3 }
 0x17d   :  { %1225 = vst [vmem:[%s2268_s3 + $0xe8] sm:$0xff] %v1189_v7  ;;  %v927_v11 = vadd.f32 %v2197_v32, %v926_v8  ;;  %v1035_v12 = vadd.f32 %v2197_v32, %v1034_v9 }
 0x17f   :  { %v1118_v13 = vmax.f32 %v927_v11, %v1035_v12 }
 0x180   :  { %v713_v14 = vpop.f32.mrf.mxu0  ;;  %v821_v15 = vpop.f32.mrf.mxu1 }
 0x181   :  { %v1154_v16 = vmax.f32 %v1082_v10, %v1118_v13  ;;  %v714_v17 = vadd.f32 %v2197_v32, %v713_v14  ;;  %v822_v18 = vadd.f32 %v2197_v32, %v821_v15 }
 0x183   :  { %v1190_v19 = vmax.f32 %v1154_v16, 0.0  ;;  %v1083_v22 = vmax.f32 %v714_v17, %v822_v18 }
 0x184   :  { %v929_v20 = vpop.f32.mrf.mxu2  ;;  %v1037_v21 = vpop.f32.mrf.mxu3 }
 0x185   :  { %1226 = vst [vmem:[%s2268_s3 + $0xf0] sm:$0xff] %v1190_v19  ;;  %v930_v23 = vadd.f32 %v2197_v32, %v929_v20  ;;  %v1038_v24 = vadd.f32 %v2197_v32, %v1037_v21 }
 0x187   :  { %v1119_v25 = vmax.f32 %v930_v23, %v1038_v24 }
 0x188   :  { %v716_v26 = vpop.f32.mrf.mxu0  ;;  %v824_v27 = vpop.f32.mrf.mxu1 }
 0x189   :  { %v1155_v28 = vmax.f32 %v1083_v22, %v1119_v25  ;;  %v717_v29 = vadd.f32 %v2197_v32, %v716_v26  ;;  %v825_v30 = vadd.f32 %v2197_v32, %v824_v27 }
 0x18b   :  { %v1191_v31 = vmax.f32 %v1155_v28, 0.0  ;;  %v1084_v35 = vmax.f32 %v717_v29, %v825_v30 }
 0x18c   :  { %v932_v33 = vpop.f32.mrf.mxu2  ;;  %v1040_v34 = vpop.f32.mrf.mxu3 }
 0x18d   :  { %1227 = vst [vmem:[%s2268_s3 + $0xf8] sm:$0xff] %v1191_v31  ;;  %v933_v36 = vadd.f32 %v2197_v32, %v932_v33  ;;  %v1041_v37 = vadd.f32 %v2197_v32, %v1040_v34 }
 0x18f   :  { %v1120_v4 = vmax.f32 %v933_v36, %v1041_v37 }
 0x190   :  { %v719_v38 = vpop.f32.mrf.mxu0  ;;  %v827_v39 = vpop.f32.mrf.mxu1 }
 0x191   :  { %v1156_v40 = vmax.f32 %v1084_v35, %v1120_v4  ;;  %v720_v41 = vadd.f32 %v2197_v32, %v719_v38  ;;  %v828_v42 = vadd.f32 %v2197_v32, %v827_v39 }
 0x193   :  { %v1192_v43 = vmax.f32 %v1156_v40, 0.0  ;;  %v1085_v46 = vmax.f32 %v720_v41, %v828_v42 }
 0x194   :  { %v935_v44 = vpop.f32.mrf.mxu2  ;;  %v1043_v45 = vpop.f32.mrf.mxu3 }
 0x195   :  { %1228 = vst [vmem:[%s2268_s3 + $0x100] sm:$0xff] %v1192_v43  ;;  %v936_v47 = vadd.f32 %v2197_v32, %v935_v44  ;;  %v1044_v48 = vadd.f32 %v2197_v32, %v1043_v45 }
 0x197   :  { %v1121_v49 = vmax.f32 %v936_v47, %v1044_v48 }
 0x198   :  { %v722_v50 = vpop.f32.mrf.mxu0  ;;  %v830_v51 = vpop.f32.mrf.mxu1 }
 0x199   :  { %v1157_v52 = vmax.f32 %v1085_v46, %v1121_v49  ;;  %v723_v53 = vadd.f32 %v2197_v32, %v722_v50  ;;  %v831_v54 = vadd.f32 %v2197_v32, %v830_v51 }
 0x19b   :  { %v1193_v55 = vmax.f32 %v1157_v52, 0.0  ;;  %v1086_v58 = vmax.f32 %v723_v53, %v831_v54 }
 0x19c   :  { %v938_v56 = vpop.f32.mrf.mxu2  ;;  %v1046_v57 = vpop.f32.mrf.mxu3 }
 0x19d   :  { %1229 = vst [vmem:[%s2268_s3 + $0x108] sm:$0xff] %v1193_v55  ;;  %v939_v59 = vadd.f32 %v2197_v32, %v938_v56  ;;  %v1047_v60 = vadd.f32 %v2197_v32, %v1046_v57 }
 0x19f   :  { %v1122_v61 = vmax.f32 %v939_v59, %v1047_v60 }
 0x1a0   :  { %v725_v62 = vpop.f32.mrf.mxu0  ;;  %v833_v63 = vpop.f32.mrf.mxu1 }
 0x1a1   :  { %v1158_v0 = vmax.f32 %v1086_v58, %v1122_v61  ;;  %v726_v1 = vadd.f32 %v2197_v32, %v725_v62  ;;  %v834_v2 = vadd.f32 %v2197_v32, %v833_v63 }
 0x1a3   :  { %v1194_v3 = vmax.f32 %v1158_v0, 0.0  ;;  %v1087_v7 = vmax.f32 %v726_v1, %v834_v2 }
 0x1a4   :  { %v941_v5 = vpop.f32.mrf.mxu2  ;;  %v1049_v6 = vpop.f32.mrf.mxu3 }
 0x1a5   :  { %1230 = vst [vmem:[%s2268_s3 + $0x110] sm:$0xff] %v1194_v3  ;;  %v942_v8 = vadd.f32 %v2197_v32, %v941_v5  ;;  %v1050_v9 = vadd.f32 %v2197_v32, %v1049_v6 }
 0x1a7   :  { %v1123_v10 = vmax.f32 %v942_v8, %v1050_v9 }
 0x1a9   :  { %v1159_v11 = vmax.f32 %v1087_v7, %v1123_v10 }
 0x1ab   :  { %v1195_v12 = vmax.f32 %v1159_v11, 0.0 }
 0x1ad   :  { %1231 = vst [vmem:[%s2268_s3 + $0x118] sm:$0xff] %v1195_v12 }

// kernel: net_forward.10
= control target key start
LH: loop header
LB: loop body
LE: loop exit
PB: predicated region body
PF: predicated region fallthrough
CT: control target
= control target key end

     0   :  { %vm131_vm0 = vcmask 1041408   ;;  %vm82_vm1 = vcmask 998400   ;;  %s585_s1 = inlined_call_operand.vmem [shape: f32[250,128], index: 1, kind: input, shape index: {}]   ;;  %s586_s2 = inlined_call_operand.vmem [shape: f32[1,128], index: 2, kind: input, shape index: {}]   ;;  %s587_s0 = inlined_call_operand.vmem [shape: f32[128,250], index: 0, kind: input, shape index: {}]   ;;  %s588_s3 = inlined_call_operand.vmem [shape: f32[32,128], index: 3, kind: output, shape index: {}]  }
   0x1   :  { %v61_v0 = vld [vmem:[%s585_s1 + $0x78] sm:$0xff]  ;;  %v60_v1 = vld [vmem:[%s585_s1 + $0x70] sm:$0xff]  ;;  %v59_v4 = vld [vmem:[%s585_s1 + $0x68] sm:$0xff] }
   0x2   :  { %v77_v2 = vld [vmem:[%s585_s1 + $0xf8] sm:$0x3]  ;;  %135 = vmatpush.msra.mxu0 %v61_v0  ;;  %306 = vmatpush.msra.mxu2 %v61_v0  ;;  %v76_v3 = vld [vmem:[%s585_s1 + $0xf0] sm:$0xff]  ;;  %v75_v5 = vld [vmem:[%s585_s1 + $0xe8] sm:$0xff] }
   0x3   :  { %289 = vmatpush.msk.msra.mxu1 %vm131_vm0, %v77_v2  ;;  %322 = vmatpush.msk.msra.mxu3 %vm131_vm0, %v77_v2  ;;  %v58_v6 = vld [vmem:[%s585_s1 + $0x60] sm:$0xff]  ;;  %v57_v8 = vld [vmem:[%s585_s1 + $0x58] sm:$0xff]  ;;  %v56_v10 = vld [vmem:[%s585_s1 + $0x50] sm:$0xff] }
   0x4   :  { %136 = vmatpush.msra.mxu0 %v60_v1  ;;  %307 = vmatpush.msra.mxu2 %v60_v1  ;;  %v74_v7 = vld [vmem:[%s585_s1 + $0xe0] sm:$0xff]  ;;  %v73_v9 = vld [vmem:[%s585_s1 + $0xd8] sm:$0xff]  ;;  %v72_v11 = vld [vmem:[%s585_s1 + $0xd0] sm:$0xff] }
   0x5   :  { %201 = vmatpush.msra.mxu1 %v76_v3  ;;  %323 = vmatpush.msra.mxu3 %v76_v3  ;;  %v55_v12 = vld [vmem:[%s585_s1 + $0x48] sm:$0xff]  ;;  %v54_v14 = vld [vmem:[%s585_s1 + $0x40] sm:$0xff]  ;;  %v53_v16 = vld [vmem:[%s585_s1 + $0x38] sm:$0xff] }
   0x6   :  { %137 = vmatpush.msra.mxu0 %v59_v4  ;;  %308 = vmatpush.msra.mxu2 %v59_v4  ;;  %v71_v13 = vld [vmem:[%s585_s1 + $0xc8] sm:$0xff]  ;;  %v70_v15 = vld [vmem:[%s585_s1 + $0xc0] sm:$0xff]  ;;  %v69_v17 = vld [vmem:[%s585_s1 + $0xb8] sm:$0xff] }
   0x7   :  { %202 = vmatpush.msra.mxu1 %v75_v5  ;;  %324 = vmatpush.msra.mxu3 %v75_v5  ;;  %v52_v18 = vld [vmem:[%s585_s1 + $0x30] sm:$0xff]  ;;  %v51_v20 = vld [vmem:[%s585_s1 + $0x28] sm:$0xff]  ;;  %v50_v22 = vld [vmem:[%s585_s1 + $0x20] sm:$0xff] }
   0x8   :  { %138 = vmatpush.msra.mxu0 %v58_v6  ;;  %309 = vmatpush.msra.mxu2 %v58_v6  ;;  %v68_v19 = vld [vmem:[%s585_s1 + $0xb0] sm:$0xff]  ;;  %v67_v21 = vld [vmem:[%s585_s1 + $0xa8] sm:$0xff]  ;;  %v66_v23 = vld [vmem:[%s585_s1 + $0xa0] sm:$0xff] }
   0x9   :  { %203 = vmatpush.msra.mxu1 %v74_v7  ;;  %325 = vmatpush.msra.mxu3 %v74_v7  ;;  %v49_v24 = vld [vmem:[%s585_s1 + $0x18] sm:$0xff]  ;;  %v48_v26 = vld [vmem:[%s585_s1 + $0x10] sm:$0xff]  ;;  %v47_v28 = vld [vmem:[%s585_s1 + $0x8] sm:$0xff] }
   0xa   :  { %139 = vmatpush.msra.mxu0 %v57_v8  ;;  %310 = vmatpush.msra.mxu2 %v57_v8  ;;  %v65_v25 = vld [vmem:[%s585_s1 + $0x98] sm:$0xff]  ;;  %v64_v27 = vld [vmem:[%s585_s1 + $0x90] sm:$0xff]  ;;  %v63_v29 = vld [vmem:[%s585_s1 + $0x88] sm:$0xff] }
   0xb   :  { %204 = vmatpush.msra.mxu1 %v73_v9  ;;  %326 = vmatpush.msra.mxu3 %v73_v9  ;;  %v46_v30 = vld [vmem:[%s585_s1] sm:$0xff]  ;;  %v15_v34 = vld [vmem:[%s587_s0 + $0x8] sm:$0xff]  ;;  %v16_v36 = vld [vmem:[%s587_s0 + $0x10] sm:$0xff] }
   0xc   :  { %140 = vmatpush.msra.mxu0 %v56_v10  ;;  %311 = vmatpush.msra.mxu2 %v56_v10  ;;  %v14_v31 = vld [vmem:[%s587_s0] sm:$0xff]  ;;  %v31_v35 = vld [vmem:[%s587_s0 + $0x88] sm:$0xff]  ;;  %v32_v37 = vld [vmem:[%s587_s0 + $0x90] sm:$0xff] }
   0xd   :  { %205 = vmatpush.msra.mxu1 %v72_v11  ;;  %327 = vmatpush.msra.mxu3 %v72_v11  ;;  %v30_v32 = vld [vmem:[%s587_s0 + $0x80] sm:$0xff]  ;;  %v17_v38 = vld [vmem:[%s587_s0 + $0x18] sm:$0xff]  ;;  %v19_v42 = vld [vmem:[%s587_s0 + $0x28] sm:$0xff] }
   0xe   :  { %141 = vmatpush.msra.mxu0 %v55_v12  ;;  %312 = vmatpush.msra.mxu2 %v55_v12  ;;  %v62_v33 = vld [vmem:[%s585_s1 + $0x80] sm:$0xff]  ;;  %v33_v39 = vld [vmem:[%s587_s0 + $0x98] sm:$0xff]  ;;  %v35_v43 = vld [vmem:[%s587_s0 + $0xa8] sm:$0xff] }
   0xf   :  { %206 = vmatpush.msra.mxu1 %v71_v13  ;;  %328 = vmatpush.msra.mxu3 %v71_v13  ;;  %v18_v40 = vld [vmem:[%s587_s0 + $0x20] sm:$0xff]  ;;  %v20_v44 = vld [vmem:[%s587_s0 + $0x30] sm:$0xff]  ;;  %v21_v46 = vld [vmem:[%s587_s0 + $0x38] sm:$0xff] }
  0x10   :  { %142 = vmatpush.msra.mxu0 %v54_v14  ;;  %313 = vmatpush.msra.mxu2 %v54_v14  ;;  %v34_v41 = vld [vmem:[%s587_s0 + $0xa0] sm:$0xff]  ;;  %v36_v45 = vld [vmem:[%s587_s0 + $0xb0] sm:$0xff]  ;;  %v37_v47 = vld [vmem:[%s587_s0 + $0xb8] sm:$0xff] }
  0x11   :  { %207 = vmatpush.msra.mxu1 %v70_v15  ;;  %329 = vmatpush.msra.mxu3 %v70_v15  ;;  %v22_v48 = vld [vmem:[%s587_s0 + $0x40] sm:$0xff]  ;;  %v23_v50 = vld [vmem:[%s587_s0 + $0x48] sm:$0xff]  ;;  %v24_v52 = vld [vmem:[%s587_s0 + $0x50] sm:$0xff] }
  0x12   :  { %143 = vmatpush.msra.mxu0 %v53_v16  ;;  %314 = vmatpush.msra.mxu2 %v53_v16  ;;  %v38_v49 = vld [vmem:[%s587_s0 + $0xc0] sm:$0xff]  ;;  %v39_v51 = vld [vmem:[%s587_s0 + $0xc8] sm:$0xff]  ;;  %v40_v53 = vld [vmem:[%s587_s0 + $0xd0] sm:$0xff] }
  0x13   :  { %208 = vmatpush.msra.mxu1 %v69_v17  ;;  %330 = vmatpush.msra.mxu3 %v69_v17  ;;  %v25_v54 = vld [vmem:[%s587_s0 + $0x58] sm:$0xff]  ;;  %v26_v56 = vld [vmem:[%s587_s0 + $0x60] sm:$0xff]  ;;  %v27_v58 = vld [vmem:[%s587_s0 + $0x68] sm:$0xff] }
  0x14   :  { %144 = vmatpush.msra.mxu0 %v52_v18  ;;  %315 = vmatpush.msra.mxu2 %v52_v18  ;;  %v41_v55 = vld [vmem:[%s587_s0 + $0xd8] sm:$0xff]  ;;  %v42_v57 = vld [vmem:[%s587_s0 + $0xe0] sm:$0xff]  ;;  %v43_v59 = vld [vmem:[%s587_s0 + $0xe8] sm:$0xff] }
  0x15   :  { %209 = vmatpush.msra.mxu1 %v68_v19  ;;  %331 = vmatpush.msra.mxu3 %v68_v19  ;;  %v28_v60 = vld [vmem:[%s587_s0 + $0x70] sm:$0xff]  ;;  %v29_v62 = vld [vmem:[%s587_s0 + $0x78] sm:$0xff]  ;;  %v338_v17 = vld [vmem:[%s586_s2] ss:$0 sm:$0xff] }
  0x16   :  { %145 = vmatpush.msra.mxu0 %v51_v20  ;;  %316 = vmatpush.msra.mxu2 %v51_v20  ;;  %v44_v61 = vld [vmem:[%s587_s0 + $0xf0] sm:$0xff]  ;;  %v45_v63 = vld [vmem:[%s587_s0 + $0xf8] sm:$0xff] }
  0x17   :  { %210 = vmatpush.msra.mxu1 %v67_v21  ;;  %332 = vmatpush.msra.mxu3 %v67_v21 }
  0x18   :  { %146 = vmatpush.msra.mxu0 %v50_v22  ;;  %317 = vmatpush.msra.mxu2 %v50_v22 }
  0x19   :  { %211 = vmatpush.msra.mxu1 %v66_v23  ;;  %333 = vmatpush.msra.mxu3 %v66_v23 }
  0x1a   :  { %147 = vmatpush.msra.mxu0 %v49_v24  ;;  %318 = vmatpush.msra.mxu2 %v49_v24 }
  0x1b   :  { %212 = vmatpush.msra.mxu1 %v65_v25  ;;  %334 = vmatpush.msra.mxu3 %v65_v25 }
  0x1c   :  { %148 = vmatpush.msra.mxu0 %v48_v26  ;;  %319 = vmatpush.msra.mxu2 %v48_v26 }
  0x1d   :  { %213 = vmatpush.msra.mxu1 %v64_v27  ;;  %335 = vmatpush.msra.mxu3 %v64_v27 }
  0x1e   :  { %149 = vmatpush.msra.mxu0 %v47_v28  ;;  %320 = vmatpush.msra.mxu2 %v47_v28 }
  0x1f   :  { %214 = vmatpush.msra.mxu1 %v63_v29  ;;  %336 = vmatpush.msra.mxu3 %v63_v29 }
  0x20   :  { %150 = vmatpush.msra.mxu0 %v46_v30  ;;  %321 = vmatpush.msra.mxu2 %v46_v30 }
  0x21   :  { %151 = vmatmul.f32.vlgmr.msra.gmra.mxu0 %v14_v31  ;;  %175 = vmatmul.f32.vlgmr.msra.gmra.mxu2 %v30_v32 }
  0x22   :  { %215 = vmatpush.msra.mxu1 %v62_v33  ;;  %337 = vmatpush.msra.mxu3 %v62_v33 }
  0x23   :  { %290 = vmatmul.msk.f32.vlgmr.msra.gmra.mxu1 %vm82_vm1, %v15_v34  ;;  %298 = vmatmul.msk.f32.vlgmr.msra.gmra.mxu3 %vm82_vm1, %v31_v35 }
  0x29   :  { %154 = vmatmul.f32.gmra.mxu0 %v16_v36  ;;  %178 = vmatmul.f32.gmra.mxu2 %v32_v37 }
  0x2b   :  { %291 = vmatmul.msk.f32.gmra.mxu1 %vm82_vm1, %v17_v38  ;;  %299 = vmatmul.msk.f32.gmra.mxu3 %vm82_vm1, %v33_v39 }
  0x31   :  { %157 = vmatmul.f32.gmra.mxu0 %v18_v40  ;;  %181 = vmatmul.f32.gmra.mxu2 %v34_v41 }
  0x33   :  { %292 = vmatmul.msk.f32.gmra.mxu1 %vm82_vm1, %v19_v42  ;;  %300 = vmatmul.msk.f32.gmra.mxu3 %vm82_vm1, %v35_v43 }
  0x39   :  { %160 = vmatmul.f32.gmra.mxu0 %v20_v44  ;;  %184 = vmatmul.f32.gmra.mxu2 %v36_v45 }
  0x3b   :  { %293 = vmatmul.msk.f32.gmra.mxu1 %vm82_vm1, %v21_v46  ;;  %301 = vmatmul.msk.f32.gmra.mxu3 %vm82_vm1, %v37_v47 }
  0x41   :  { %163 = vmatmul.f32.gmra.mxu0 %v22_v48  ;;  %187 = vmatmul.f32.gmra.mxu2 %v38_v49 }
  0x43   :  { %294 = vmatmul.msk.f32.gmra.mxu1 %vm82_vm1, %v23_v50  ;;  %302 = vmatmul.msk.f32.gmra.mxu3 %vm82_vm1, %v39_v51 }
  0x49   :  { %166 = vmatmul.f32.gmra.mxu0 %v24_v52  ;;  %190 = vmatmul.f32.gmra.mxu2 %v40_v53 }
  0x4b   :  { %295 = vmatmul.msk.f32.gmra.mxu1 %vm82_vm1, %v25_v54  ;;  %303 = vmatmul.msk.f32.gmra.mxu3 %vm82_vm1, %v41_v55 }
  0x51   :  { %169 = vmatmul.f32.gmra.mxu0 %v26_v56  ;;  %193 = vmatmul.f32.gmra.mxu2 %v42_v57 }
  0x53   :  { %296 = vmatmul.msk.f32.gmra.mxu1 %vm82_vm1, %v27_v58  ;;  %304 = vmatmul.msk.f32.gmra.mxu3 %vm82_vm1, %v43_v59 }
  0x59   :  { %172 = vmatmul.f32.gmra.mxu0 %v28_v60  ;;  %196 = vmatmul.f32.gmra.mxu2 %v44_v61 }
  0x5b   :  { %297 = vmatmul.msk.f32.gmra.mxu1 %vm82_vm1, %v29_v62  ;;  %305 = vmatmul.msk.f32.gmra.mxu3 %vm82_vm1, %v45_v63 }
  0x9e   :  { %v152_v0 = vpop.f32.mrf.mxu0 }
  0x9f   :  { %v153_v20 = vadd.f32 %v338_v17, %v152_v0 }
  0xa0   :  { %v217_v1 = vpop.f32.mrf.mxu1 }
  0xa1   :  { %v218_v27 = vadd.f32 %v217_v1, %v153_v20 }
  0xa4   :  { %v176_v2 = vpop.f32.mrf.mxu2 }
  0xa5   :  { %v177_v21 = vadd.f32 %v338_v17, %v176_v2 }
  0xa6   :  { %v155_v3 = vpop.f32.mrf.mxu0  ;;  %v241_v4 = vpop.f32.mrf.mxu3 }
  0xa7   :  { %v242_v28 = vadd.f32 %v241_v4, %v177_v21  ;;  %v156_v34 = vadd.f32 %v338_v17, %v155_v3 }
  0xa8   :  { %v220_v5 = vpop.f32.mrf.mxu1 }
  0xa9   :  { %v221_v43 = vadd.f32 %v220_v5, %v156_v34 }
  0xac   :  { %v179_v6 = vpop.f32.mrf.mxu2 }
  0xad   :  { %v180_v35 = vadd.f32 %v338_v17, %v179_v6 }
  0xae   :  { %v158_v7 = vpop.f32.mrf.mxu0  ;;  %v244_v8 = vpop.f32.mrf.mxu3 }
  0xaf   :  { %v245_v44 = vadd.f32 %v244_v8, %v180_v35  ;;  %v159_v50 = vadd.f32 %v338_v17, %v158_v7 }
  0xb0   :  { %v223_v9 = vpop.f32.mrf.mxu1 }
  0xb1   :  { %v224_v59 = vadd.f32 %v223_v9, %v159_v50 }
  0xb4   :  { %v182_v10 = vpop.f32.mrf.mxu2 }
  0xb5   :  { %v183_v51 = vadd.f32 %v338_v17, %v182_v10 }
  0xb6   :  { %v161_v11 = vpop.f32.mrf.mxu0  ;;  %v247_v12 = vpop.f32.mrf.mxu3 }
  0xb7   :  { %v248_v60 = vadd.f32 %v247_v12, %v183_v51  ;;  %v162_v2 = vadd.f32 %v338_v17, %v161_v11 }
  0xb8   :  { %v567_v13 = vpop.f32.mrf.mxu1 }
  0xb9   :  { %v227_v9 = vadd.f32 %v567_v13, %v162_v2 }
  0xbc   :  { %v185_v14 = vpop.f32.mrf.mxu2 }
  0xbd   :  { %v186_v3 = vadd.f32 %v338_v17, %v185_v14 }
  0xbe   :  { %v164_v15 = vpop.f32.mrf.mxu0  ;;  %v250_v16 = vpop.f32.mrf.mxu3 }
  0xbf   :  { %v165_v19 = vadd.f32 %v338_v17, %v164_v15  ;;  %v251_v12 = vadd.f32 %v250_v16, %v186_v3 }
  0xc0   :  { %v229_v18 = vpop.f32.mrf.mxu1 }
  0xc1   :  { %v230_v23 = vadd.f32 %v229_v18, %v165_v19 }
  0xc3   :  { %v265_v31 = vmax.f32 %v218_v27, %v230_v23 }
  0xc4   :  { %v188_v22 = vpop.f32.mrf.mxu2 }
  0xc5   :  { %v189_v24 = vadd.f32 %v338_v17, %v188_v22 }
  0xc6   :  { %v167_v25 = vpop.f32.mrf.mxu0  ;;  %v253_v26 = vpop.f32.mrf.mxu3 }
  0xc7   :  { %v254_v29 = vadd.f32 %v253_v26, %v189_v24  ;;  %v168_v32 = vadd.f32 %v338_v17, %v167_v25 }
  0xc8   :  { %v232_v30 = vpop.f32.mrf.mxu1 }
  0xc9   :  { %v269_v33 = vmax.f32 %v242_v28, %v254_v29  ;;  %v233_v39 = vadd.f32 %v232_v30, %v168_v32 }
  0xcb   :  { %v273_v36 = vmax.f32 %v265_v31, %v269_v33  ;;  %v266_v47 = vmax.f32 %v221_v43, %v233_v39 }
  0xcc   :  { %v191_v37 = vpop.f32.mrf.mxu2 }
  0xcd   :  { %v277_v38 = vmax.f32 %v273_v36, 0.0  ;;  %v192_v40 = vadd.f32 %v338_v17, %v191_v37 }
  0xce   :  { %v170_v41 = vpop.f32.mrf.mxu0  ;;  %v256_v42 = vpop.f32.mrf.mxu3 }
  0xcf   :  { %281 = vst [vmem:[%s588_s3] sm:$0xff] %v277_v38  ;;  %v257_v45 = vadd.f32 %v256_v42, %v192_v40  ;;  %v171_v48 = vadd.f32 %v338_v17, %v170_v41 }
  0xd0   :  { %v235_v46 = vpop.f32.mrf.mxu1 }
  0xd1   :  { %v270_v49 = vmax.f32 %v245_v44, %v257_v45  ;;  %v236_v55 = vadd.f32 %v235_v46, %v171_v48 }
  0xd3   :  { %v274_v52 = vmax.f32 %v266_v47, %v270_v49  ;;  %v267_v62 = vmax.f32 %v224_v59, %v236_v55 }
  0xd4   :  { %v194_v53 = vpop.f32.mrf.mxu2 }
  0xd5   :  { %v278_v54 = vmax.f32 %v274_v52, 0.0  ;;  %v195_v56 = vadd.f32 %v338_v17, %v194_v53 }
  0xd6   :  { %v173_v57 = vpop.f32.mrf.mxu0  ;;  %v259_v58 = vpop.f32.mrf.mxu3 }
  0xd7   :  { %282 = vst [vmem:[%s588_s3 + $0x8] sm:$0xff] %v278_v54  ;;  %v260_v61 = vadd.f32 %v259_v58, %v195_v56  ;;  %v174_v63 = vadd.f32 %v338_v17, %v173_v57 }
  0xd8   :  { %v238_v1 = vpop.f32.mrf.mxu1 }
  0xd9   :  { %v271_v0 = vmax.f32 %v248_v60, %v260_v61  ;;  %v239_v7 = vadd.f32 %v238_v1, %v174_v63 }
  0xdb   :  { %v275_v4 = vmax.f32 %v267_v62, %v271_v0  ;;  %v268_v18 = vmax.f32 %v227_v9, %v239_v7 }
  0xdc   :  { %v197_v5 = vpop.f32.mrf.mxu2 }
  0xdd   :  { %v279_v6 = vmax.f32 %v275_v4, 0.0  ;;  %v198_v8 = vadd.f32 %v338_v17, %v197_v5 }
  0xde   :  { %v262_v10 = vpop.f32.mrf.mxu3 }
  0xdf   :  { %283 = vst [vmem:[%s588_s3 + $0x10] sm:$0xff] %v279_v6  ;;  %v263_v15 = vadd.f32 %v262_v10, %v198_v8 }
  0xe1   :  { %v272_v19 = vmax.f32 %v251_v12, %v263_v15 }
  0xe3   :  { %v276_v20 = vmax.f32 %v268_v18, %v272_v19 }
  0xe5   :  { %v280_v21 = vmax.f32 %v276_v20, 0.0 }
  0xe7   :  { %284 = vst [vmem:[%s588_s3 + $0x18] sm:$0xff] %v280_v21 }

// kernel: net_forward.11
= control target key start
LH: loop header
LB: loop body
LE: loop exit
PB: predicated region body
PF: predicated region fallthrough
CT: control target
= control target key end

     0   :  { %s485_s0 = inlined_call_operand.vmem [shape: f32[2,384], index: 0, kind: input, shape index: {}]   ;;  %s486_s1 = inlined_call_operand.vmem [shape: f32[384,128], index: 1, kind: input, shape index: {}]   ;;  %s487_s2 = inlined_call_operand.vmem [shape: f32[1,128], index: 2, kind: input, shape index: {}]   ;;  %s488_s3 = inlined_call_operand.vmem [shape: f32[128,128], index: 3, kind: input, shape index: {}]   ;;  %s489_s4 = inlined_call_operand.vmem [shape: f32[1,128], index: 4, kind: input, shape index: {}]   ;;  %s490_s5 = inlined_call_operand.hbm [shape: f32[2,128], index: 5, kind: output, shape index: {}]  }
   0x1   :  { %v69_v0 = vld [vmem:[%s486_s1 + $0x178] sm:$0xff]  ;;  %v68_v2 = vld [vmem:[%s486_s1 + $0x170] sm:$0xff]  ;;  %v67_v5 = vld [vmem:[%s486_s1 + $0x168] sm:$0xff] }
   0x2   :  { %v37_v1 = vld [vmem:[%s486_s1 + $0x78] sm:$0xff]  ;;  %122 = vmatpush.msra.mxu2 %v69_v0  ;;  %v36_v3 = vld [vmem:[%s486_s1 + $0x70] sm:$0xff]  ;;  %v35_v6 = vld [vmem:[%s486_s1 + $0x68] sm:$0xff] }
   0x3   :  { %82 = vmatpush.msra.mxu0 %v37_v1  ;;  %v53_v4 = vld [vmem:[%s486_s1 + $0xf8] sm:$0xff]  ;;  %v52_v7 = vld [vmem:[%s486_s1 + $0xf0] sm:$0xff]  ;;  %v51_v8 = vld [vmem:[%s486_s1 + $0xe8] sm:$0xff] }
   0x4   :  { %102 = vmatpush.msra.mxu1 %v53_v4  ;;  %123 = vmatpush.msra.mxu2 %v68_v2  ;;  %v66_v9 = vld [vmem:[%s486_s1 + $0x160] sm:$0xff]  ;;  %v65_v12 = vld [vmem:[%s486_s1 + $0x158] sm:$0xff]  ;;  %v64_v15 = vld [vmem:[%s486_s1 + $0x150] sm:$0xff] }
   0x5   :  { %83 = vmatpush.msra.mxu0 %v36_v3  ;;  %v34_v10 = vld [vmem:[%s486_s1 + $0x60] sm:$0xff]  ;;  %v33_v13 = vld [vmem:[%s486_s1 + $0x58] sm:$0xff]  ;;  %v32_v16 = vld [vmem:[%s486_s1 + $0x50] sm:$0xff] }
   0x6   :  { %103 = vmatpush.msra.mxu1 %v52_v7  ;;  %124 = vmatpush.msra.mxu2 %v67_v5  ;;  %v50_v11 = vld [vmem:[%s486_s1 + $0xe0] sm:$0xff]  ;;  %v49_v14 = vld [vmem:[%s486_s1 + $0xd8] sm:$0xff]  ;;  %v48_v17 = vld [vmem:[%s486_s1 + $0xd0] sm:$0xff] }
   0x7   :  { %84 = vmatpush.msra.mxu0 %v35_v6  ;;  %v63_v18 = vld [vmem:[%s486_s1 + $0x148] sm:$0xff]  ;;  %v62_v21 = vld [vmem:[%s486_s1 + $0x140] sm:$0xff]  ;;  %v61_v24 = vld [vmem:[%s486_s1 + $0x138] sm:$0xff] }
   0x8   :  { %104 = vmatpush.msra.mxu1 %v51_v8  ;;  %125 = vmatpush.msra.mxu2 %v66_v9  ;;  %v31_v19 = vld [vmem:[%s486_s1 + $0x48] sm:$0xff]  ;;  %v30_v22 = vld [vmem:[%s486_s1 + $0x40] sm:$0xff]  ;;  %v29_v25 = vld [vmem:[%s486_s1 + $0x38] sm:$0xff] }
   0x9   :  { %85 = vmatpush.msra.mxu0 %v34_v10  ;;  %v47_v20 = vld [vmem:[%s486_s1 + $0xc8] sm:$0xff]  ;;  %v46_v23 = vld [vmem:[%s486_s1 + $0xc0] sm:$0xff]  ;;  %v45_v26 = vld [vmem:[%s486_s1 + $0xb8] sm:$0xff] }
   0xa   :  { %105 = vmatpush.msra.mxu1 %v50_v11  ;;  %126 = vmatpush.msra.mxu2 %v65_v12  ;;  %v21_v27 = vld [vmem:[%s485_s0] sm:$0x3f]  ;;  %v60_v28 = vld [vmem:[%s486_s1 + $0x130] sm:$0xff]  ;;  %v158_v30 = vld [vmem:[%s488_s3 + $0x78] sm:$0xff] }
   0xb   :  { %86 = vmatpush.msra.mxu0 %v33_v13  ;;  %v28_v29 = vld [vmem:[%s486_s1 + $0x30] sm:$0xff]  ;;  %75 = vst [vmem:[#allocation1] ss:$4 sm:$0xff] %v21_v27  ;;  %v59_v33 = vld [vmem:[%s486_s1 + $0x128] sm:$0xff]  ;;  %163 = vmatpush.msra.mxu3 %v158_v30  ;;  %v58_v35 = vld [vmem:[%s486_s1 + $0x120] sm:$0xff] }
   0xc   :  { %106 = vmatpush.msra.mxu1 %v49_v14  ;;  %127 = vmatpush.msra.mxu2 %v64_v15  ;;  %v44_v31 = vld [vmem:[%s486_s1 + $0xb0] sm:$0xff]  ;;  %v27_v34 = vld [vmem:[%s486_s1 + $0x28] sm:$0xff]  ;;  %v26_v38 = vld [vmem:[%s486_s1 + $0x20] sm:$0xff] }
   0xd   :  { %87 = vmatpush.msra.mxu0 %v32_v16  ;;  %v157_v32 = vld [vmem:[%s488_s3 + $0x70] sm:$0xff]  ;;  %v43_v36 = vld [vmem:[%s486_s1 + $0xa8] sm:$0xff]  ;;  %v42_v39 = vld [vmem:[%s486_s1 + $0xa0] sm:$0xff] }
   0xe   :  { %107 = vmatpush.msra.mxu1 %v48_v17  ;;  %128 = vmatpush.msra.mxu2 %v63_v18  ;;  %v156_v37 = vld [vmem:[%s488_s3 + $0x68] sm:$0xff]  ;;  %v155_v40 = vld [vmem:[%s488_s3 + $0x60] sm:$0xff] }
   0xf   :  { %88 = vmatpush.msra.mxu0 %v31_v19  ;;  %164 = vmatpush.msra.mxu3 %v157_v32 }
  0x10   :  { %108 = vmatpush.msra.mxu1 %v47_v20  ;;  %129 = vmatpush.msra.mxu2 %v62_v21 }
  0x11   :  { %89 = vmatpush.msra.mxu0 %v30_v22 }
  0x12   :  { %109 = vmatpush.msra.mxu1 %v46_v23  ;;  %130 = vmatpush.msra.mxu2 %v61_v24 }
  0x13   :  { %90 = vmatpush.msra.mxu0 %v29_v25 }
  0x14   :  { %110 = vmatpush.msra.mxu1 %v45_v26  ;;  %131 = vmatpush.msra.mxu2 %v60_v28 }
  0x15   :  { %91 = vmatpush.msra.mxu0 %v28_v29 }
  0x16   :  { %111 = vmatpush.msra.mxu1 %v44_v31  ;;  %132 = vmatpush.msra.mxu2 %v59_v33 }
  0x17   :  { %92 = vmatpush.msra.mxu0 %v27_v34 }
  0x18   :  { %10 = vsyncpa [#allocation3], 0  ;;  %112 = vmatpush.msra.mxu1 %v43_v36  ;;  %v57_v41 = vld [vmem:[%s486_s1 + $0x118] sm:$0xff]  ;;  %165 = vmatpush.msra.mxu3 %v156_v37  ;;  %v56_v45 = vld [vmem:[%s486_s1 + $0x110] sm:$0xff]  ;;  %v183_v12 = vlaneseq  ;;  %vm187_vm1 = vcmask 1041408   ;;  %s208_s24 = sshll.u32 %s490_s5, 4  ;;  %s209_s24 = int_to_ptr.hbm [resolvable:$true] %s208_s24 }
  0x19   :  { %v25_v42 = vld [vmem:[%s486_s1 + $0x18] sm:$0xff]  ;;  %133 = vmatpush.msra.mxu2 %v58_v35  ;;  %93 = vmatpush.msra.mxu0 %v26_v38  ;;  %v24_v46 = vld [vmem:[%s486_s1 + $0x10] sm:$0xff]  ;;  %v55_v49 = vld [vmem:[%s486_s1 + $0x108] sm:$0xff] }
  0x1a   :  { %v41_v43 = vld [vmem:[%s486_s1 + $0x98] sm:$0xff]  ;;  %113 = vmatpush.msra.mxu1 %v42_v39  ;;  %166 = vmatpush.msra.mxu3 %v155_v40  ;;  %v40_v47 = vld [vmem:[%s486_s1 + $0x90] sm:$0xff]  ;;  %v23_v50 = vld [vmem:[%s486_s1 + $0x8] sm:$0xff]  ;;  %v184_v13 = vand.u32 127, %v183_v12 }
  0x1b   :  { %v154_v44 = vld [vmem:[%s488_s3 + $0x58] sm:$0xff]  ;;  %134 = vmatpush.msra.mxu2 %v57_v41  ;;  %94 = vmatpush.msra.mxu0 %v25_v42  ;;  %v153_v48 = vld [vmem:[%s488_s3 + $0x50] sm:$0xff]  ;;  %v39_v51 = vld [vmem:[%s486_s1 + $0x88] sm:$0xff] }
  0x1c   :  { %114 = vmatpush.msra.mxu1 %v41_v43  ;;  %167 = vmatpush.msra.mxu3 %v154_v44  ;;  %v152_v52 = vld [vmem:[%s488_s3 + $0x48] sm:$0xff]  ;;  %v54_v53 = vld [vmem:[%s486_s1 + $0x100] sm:$0xff]  ;;  %v78_v55 = vld.sshfl [vmem:[#allocation1 + $0x10] sm:$0xff pattern:$0x73625140]  ;;  %vm185_vm0 = vcmp.lt.s32.totalorder %v184_v13, 10 }
  0x1d   :  { %135 = vmatpush.msra.mxu2 %v56_v45  ;;  %95 = vmatpush.msra.mxu0 %v24_v46  ;;  %v22_v54 = vld [vmem:[%s486_s1] sm:$0xff]  ;;  %v77_v59 = vld.sshfl [vmem:[#allocation1 + $0x8] sm:$0xff pattern:$0x73625140]  ;;  %v150_v60 = vld [vmem:[%s488_s3 + $0x38] sm:$0xff] }
  0x1e   :  { %115 = vmatpush.msra.mxu1 %v40_v47  ;;  %168 = vmatpush.msra.mxu3 %v153_v48  ;;  %v76_v56 = vld.sshfl [vmem:[#allocation1] sm:$0xff pattern:$0x73625140]  ;;  %v149_v61 = vld [vmem:[%s488_s3 + $0x30] sm:$0xff]  ;;  %v148_v62 = vld [vmem:[%s488_s3 + $0x28] sm:$0xff] }
  0x1f   :  { %136 = vmatpush.msra.mxu2 %v55_v49  ;;  %96 = vmatpush.msra.mxu0 %v23_v50  ;;  %v38_v57 = vld [vmem:[%s486_s1 + $0x80] sm:$0xff]  ;;  %v146_v0 = vld [vmem:[%s488_s3 + $0x18] sm:$0xff]  ;;  %v145_v1 = vld [vmem:[%s488_s3 + $0x10] sm:$0xff] }
  0x20   :  { %116 = vmatpush.msra.mxu1 %v39_v51  ;;  %169 = vmatpush.msra.mxu3 %v152_v52  ;;  %v151_v58 = vld [vmem:[%s488_s3 + $0x40] sm:$0xff]  ;;  %v144_v2 = vld [vmem:[%s488_s3 + $0x8] sm:$0xff] }
  0x21   :  { %137 = vmatpush.msra.mxu2 %v54_v53  ;;  %97 = vmatpush.msra.mxu0 %v22_v54  ;;  %v147_v63 = vld [vmem:[%s488_s3 + $0x20] sm:$0xff] }
  0x22   :  { %138 = vmatmul.f32.vlgmr.msra.gmra.mxu2 %v78_v55  ;;  %98 = vmatmul.f32.vlgmr.msra.gmra.mxu0 %v76_v56  ;;  %v143_v3 = vld [vmem:[%s488_s3] sm:$0xff] }
  0x23   :  { %117 = vmatpush.msra.mxu1 %v38_v57  ;;  %170 = vmatpush.msra.mxu3 %v151_v58  ;;  %v218_v4 = vld [vmem:[%s487_s2] ss:$0 sm:$0xff]  ;;  %s250_s2 = smov [#allocation2]  }
  0x24   :  { %118 = vmatmul.f32.vlgmr.msra.gmra.mxu1 %v77_v59  ;;  %v219_v14 = vld [vmem:[%s489_s4] ss:$0 sm:$0xff]  ;;  %s206_s3 = sshll.u32 %s250_s2, 4  ;;  %s207_s3 = int_to_ptr.vmem [resolvable:$true] %s206_s3 }
  0x25   :  { %171 = vmatpush.msra.mxu3 %v150_v60 }
  0x27   :  { %172 = vmatpush.msra.mxu3 %v149_v61 }
  0x29   :  { %173 = vmatpush.msra.mxu3 %v148_v62 }
  0x2b   :  { %174 = vmatpush.msra.mxu3 %v147_v63 }
  0x2d   :  { %175 = vmatpush.msra.mxu3 %v146_v0 }
  0x2f   :  { %176 = vmatpush.msra.mxu3 %v145_v1 }
  0x31   :  { %177 = vmatpush.msra.mxu3 %v144_v2 }
  0x33   :  { %178 = vmatpush.msra.mxu3 %v143_v3 }
  0x9f   :  { %v99_v5 = vpop.f32.mrf.mxu0 }
  0xa0   :  { %v100_v6 = vadd.f32 %v218_v4, %v99_v5 }
  0xa1   :  { %v119_v7 = vpop.f32.mrf.mxu1 }
  0xa2   :  { %v120_v8 = vadd.f32 %v119_v7, %v100_v6 }
  0xa5   :  { %v139_v9 = vpop.f32.mrf.mxu2 }
  0xa6   :  { %v140_v10 = vadd.f32 %v139_v9, %v120_v8 }
  0xa8   :  { %v142_v11 = vmax.f32 %v140_v10, 0.0 }
  0xaa   :  { %179 = vmatmul.f32.vlgmr.msra.gmra.mxu3 %v142_v11 }
 0x12d   :  { %v180_v15 = vpop.f32.mrf.mxu3 }
 0x12e   :  { %v181_v16 = vadd.f32 %v219_v14, %v180_v15 }
 0x130   :  { %v186_v17 = vsel %vm185_vm0, %v181_v16, -1e+30 }
 0x131   :  { %v188_v18 = vsel %vm187_vm1, %v186_v17, -inf }
 0x132   :  { %189 = vmax.xlane.f32.xlu0 %v188_v18 }
 0x1a5   :  { %v190_v19 = vpop.xlane.xlu0 %189 }
 0x1a6   :  { %v191_v20 = vsub.f32 %v186_v17, %v190_v19 }
 0x1a8   :  { %v192_v21 = vmul.f32 1.442695, %v191_v20 }
 0x1aa   :  { %220 = vpow2.f32 %v192_v21 }
 0x1b0   :  { %v221_v22 = vpop.eup %220 }
 0x1b1   :  { %v194_v23 = vsel %vm187_vm1, %v221_v22, 0.0 }
 0x1b2   :  { %195 = vadd.xlane.f32.xlu0 %v194_v23 }
 0x225   :  { %v196_v24 = vpop.xlane.xlu0 %195 }
 0x226   :  { %222 = vlog2.f32 %v196_v24 }
 0x22c   :  { %v223_v25 = vpop.eup %222 }
 0x22d   :  { %v198_v26 = vmul.f32 0.6931472, %v223_v25 }
 0x22f   :  { %v199_v27 = vsub.f32 %v191_v20, %v198_v26 }
 0x231   :  { %200 = vst [vmem:[#allocation2] sm:$0x3] %v199_v27 }
 0x232   :  { %211 = dma.vmem_to_hbm [thread:$0]  %s207_s3, 32, %s209_s24, [#allocation3]  }
 0x233   :  { %248 = dma.done.wait [#allocation3], 32  }
 0x234   :  { %249 = vsyncadd [#allocation3], 4294967264 }
 0x235   :  { %216 = vsyncpa [#allocation3], 1 }

</bundles_post_ra>
